<compile_context>
chip_gen: v7x
topology: tpu7x:2x2x1
jax: 0.10.0
libtpu: 0.0.40
codegen_flags: <defaults>
</compile_context>

<pallas_src>
import functools
import math

import jax
import jax.numpy as jnp
from jax.experimental import pallas as pl
from jax.experimental.pallas import tpu as pltpu


# ----------------------------- device-aware limits -----------------------------

def _pick_vmem_limit():
    cap = None
    try:
        info = pltpu.get_tpu_info()
        cap = getattr(info, "vmem_capacity_bytes", None)
    except Exception:
        cap = None
    if not cap:
        cap = 64 * 1024 * 1024          # conservative: assume a 64 MiB (v7x) part
    # leave headroom for Mosaic internal scratch; cap at 100 MiB on 128 MiB parts
    return int(min(cap * 3 // 4, 100 * 1024 * 1024))


_VMEM_LIMIT = _pick_vmem_limit()


# ----------------------------- tiling helpers -----------------------------

def _round_up(x, m):
    return (x + m - 1) // m * m


def _row_tile(M, target=512):
    """Largest multiple-of-8 divisor of M that is <= target and leaves >= 2 blocks.

    Keeping >= 2 row blocks lets the parallel grid axis shard across the two
    TensorCores on v7x; full-M fallback when M is not a multiple of 8.
    """
    if M % 8 != 0 or M <= 8:
        return M
    upper = min(target, M // 2)
    if upper < 8:
        return M
    best = 8
    for t in range(8, upper + 1, 8):
        if M % t == 0:
            best = t
    return best


# ----------------------------- Pallas kernels -----------------------------

def _gelu(y):
    # exact GELU (matches torch.nn.GELU default)
    return 0.5 * y * (1.0 + jax.lax.erf(y * jnp.float32(1.0 / math.sqrt(2.0))))


def _ln_matmul_kernel(x_ref, g_ref, b_ref, w_ref, bias_ref, o_ref, *,
                      eps, activation):
    # Fused LayerNorm(x) @ W + bias (+ GELU). Full K and full N per row tile,
    # so LN statistics are computed exactly once per row and the whole weight
    # is a single resident block.
    x = x_ref[...].astype(jnp.float32)
    mean = jnp.mean(x, axis=-1, keepdims=True)
    var = jnp.mean(jnp.square(x - mean), axis=-1, keepdims=True)
    xn = (x - mean) * jax.lax.rsqrt(var + eps)
    xn = xn * g_ref[...].astype(jnp.float32) + b_ref[...].astype(jnp.float32)
    y = jnp.dot(xn.astype(w_ref.dtype), w_ref[...],
                preferred_element_type=jnp.float32)
    y = y + bias_ref[...].astype(jnp.float32)
    if activation == "gelu":
        y = _gelu(y)
    o_ref[...] = y.astype(o_ref.dtype)


def ln_matmul(x, g, b, w, bias, activation=None, out_dtype=jnp.bfloat16,
              eps=1e-6):
    M, K = x.shape
    _, N = w.shape
    tm = _row_tile(M)
    grid = (M // tm,)
    kernel = functools.partial(_ln_matmul_kernel, eps=eps, activation=activation)
    flops = 2 * M * N * K + 10 * M * K
    bytes_accessed = (M * K * x.dtype.itemsize + K * N * w.dtype.itemsize
                      + M * N * jnp.dtype(out_dtype).itemsize)
    return pl.pallas_call(
        kernel,
        out_shape=jax.ShapeDtypeStruct((M, N), out_dtype),
        grid=grid,
        in_specs=[pl.BlockSpec((tm, K), lambda i: (i, 0)),
                  pl.BlockSpec((1, K), lambda i: (0, 0)),
                  pl.BlockSpec((1, K), lambda i: (0, 0)),
                  pl.BlockSpec((K, N), lambda i: (0, 0)),     # weight resident
                  pl.BlockSpec((1, N), lambda i: (0, 0))],
        out_specs=pl.BlockSpec((tm, N), lambda i: (i, 0)),
        compiler_params=pltpu.CompilerParams(
            dimension_semantics=("parallel",),
            vmem_limit_bytes=_VMEM_LIMIT),
        cost_estimate=pl.CostEstimate(
            flops=flops,
            transcendentals=M * N if activation == "gelu" else M,
            bytes_accessed=bytes_accessed),
    )(x, g.reshape(1, K), b.reshape(1, K), w, bias.reshape(1, N))


def _matmul_bias_kernel(x_ref, w_ref, b_ref, *rest, activation, has_residual):
    if has_residual:
        r_ref, o_ref = rest
    else:
        (o_ref,) = rest
    y = jnp.dot(x_ref[...].astype(w_ref.dtype), w_ref[...],
                preferred_element_type=jnp.float32)
    y = y + b_ref[...].astype(jnp.float32)
    if activation == "gelu":
        y = _gelu(y)
    if has_residual:
        y = y + r_ref[...].astype(jnp.float32)
    o_ref[...] = y.astype(o_ref.dtype)


def matmul_bias(x, w, bias, residual=None, activation=None,
                out_dtype=jnp.bfloat16):
    M, K = x.shape
    _, N = w.shape
    tm = _row_tile(M)
    grid = (M // tm,)
    has_res = residual is not None
    kernel = functools.partial(_matmul_bias_kernel, activation=activation,
                               has_residual=has_res)
    in_specs = [pl.BlockSpec((tm, K), lambda i: (i, 0)),
                pl.BlockSpec((K, N), lambda i: (0, 0)),        # weight resident
                pl.BlockSpec((1, N), lambda i: (0, 0))]
    args = [x, w, bias.reshape(1, N)]
    if has_res:
        in_specs.append(pl.BlockSpec((tm, N), lambda i: (i, 0)))
        args.append(residual)
    flops = 2 * M * N * K
    bytes_accessed = (M * K * x.dtype.itemsize + K * N * w.dtype.itemsize
                      + M * N * jnp.dtype(out_dtype).itemsize
                      + (M * N * residual.dtype.itemsize if has_res else 0))
    return pl.pallas_call(
        kernel,
        out_shape=jax.ShapeDtypeStruct((M, N), out_dtype),
        grid=grid,
        in_specs=in_specs,
        out_specs=pl.BlockSpec((tm, N), lambda i: (i, 0)),
        compiler_params=pltpu.CompilerParams(
            dimension_semantics=("parallel",),
            vmem_limit_bytes=_VMEM_LIMIT),
        cost_estimate=pl.CostEstimate(
            flops=flops,
            transcendentals=M * N if activation == "gelu" else 0,
            bytes_accessed=bytes_accessed),
    )(*args)


def _mhsa_kernel(qkv_ref, o_ref, *, heads, dh, scale, t_valid):
    # qkv_ref: (Tp, 3*heads, dh) bf16 view of the fused QKV matmul output for
    # one batch element; o_ref: (Tp, heads*dh).  Single-pass exact softmax
    # (no KV tiling needed for ViT-length sequences), all heads per grid step.
    tq = o_ref.shape[0]
    tk = qkv_ref.shape[0]
    kmask = jax.lax.broadcasted_iota(jnp.int32, (tq, tk), 1) < t_valid
    neg = jnp.float32(-1e30)
    for h in range(heads):                 # heads is small; statically unrolled
        q = qkv_ref[:, h, :]
        k = qkv_ref[:, heads + h, :]
        v = qkv_ref[:, 2 * heads + h, :]
        s = jax.lax.dot_general(q, k, (((1,), (1,)), ((), ())),
                                preferred_element_type=jnp.float32)
        s = s * jnp.float32(scale)
        s = jnp.where(kmask, s, neg)       # mask padded key positions
        m = jnp.max(s, axis=-1, keepdims=True)
        p = jnp.exp(s - m)
        l = jnp.sum(p, axis=-1, keepdims=True)
        num = jnp.dot(p.astype(qkv_ref.dtype), v,
                      preferred_element_type=jnp.float32)
        o_ref[:, h * dh:(h + 1) * dh] = (num / l).astype(o_ref.dtype)


def mhsa(qkv, heads, dh, scale, t_valid, out_dtype=jnp.bfloat16):
    """qkv: (B, Tp, 3*heads, dh).  Returns (B, Tp, heads*dh)."""
    B, Tp, _, _ = qkv.shape
    D = heads * dh
    kernel = functools.partial(_mhsa_kernel, heads=heads, dh=dh, scale=scale,
                               t_valid=t_valid)
    flops = 4 * B * heads * Tp * Tp * dh
    bytes_accessed = (qkv.size * qkv.dtype.itemsize
                      + B * Tp * D * jnp.dtype(out_dtype).itemsize)
    # TODO(synk): add a KV-tiled flash path for very long token counts where the
    # per-batch (Tp, Tp) score tensors would not fit VMEM (not needed for ViT).
    return pl.pallas_call(
        kernel,
        out_shape=jax.ShapeDtypeStruct((B, Tp, D), out_dtype),
        grid=(B,),
        in_specs=[pl.BlockSpec((None, Tp, 3 * heads, dh),
                               lambda b: (b, 0, 0, 0))],
        out_specs=pl.BlockSpec((None, Tp, D), lambda b: (b, 0, 0)),
        compiler_params=pltpu.CompilerParams(
            dimension_semantics=("parallel",),
            vmem_limit_bytes=_VMEM_LIMIT),
        cost_estimate=pl.CostEstimate(flops=flops,
                                      transcendentals=B * heads * Tp * Tp,
                                      bytes_accessed=bytes_accessed),
    )(qkv)


def _layernorm_kernel(x_ref, g_ref, b_ref, o_ref, *, eps):
    x = x_ref[...].astype(jnp.float32)
    mean = jnp.mean(x, axis=-1, keepdims=True)
    var = jnp.mean(jnp.square(x - mean), axis=-1, keepdims=True)
    y = (x - mean) * jax.lax.rsqrt(var + eps)
    o_ref[...] = (y * g_ref[...] + b_ref[...]).astype(o_ref.dtype)


def layernorm(x, g, b, eps=1e-6, out_dtype=jnp.float32):
    M, D = x.shape
    tm = _row_tile(M)
    kernel = functools.partial(_layernorm_kernel, eps=eps)
    return pl.pallas_call(
        kernel,
        out_shape=jax.ShapeDtypeStruct((M, D), out_dtype),
        grid=(M // tm,),
        in_specs=[pl.BlockSpec((tm, D), lambda i: (i, 0)),
                  pl.BlockSpec((1, D), lambda i: (0, 0)),
                  pl.BlockSpec((1, D), lambda i: (0, 0))],
        out_specs=pl.BlockSpec((tm, D), lambda i: (i, 0)),
        compiler_params=pltpu.CompilerParams(
            dimension_semantics=("parallel",),
            vmem_limit_bytes=_VMEM_LIMIT),
        cost_estimate=pl.CostEstimate(
            flops=8 * M * D, transcendentals=M,
            bytes_accessed=M * D * (x.dtype.itemsize
                                    + jnp.dtype(out_dtype).itemsize)),
    )(x, g.reshape(1, D), b.reshape(1, D))


# ----------------------------- ViT encoder glue -----------------------------

def vit_encoder_forward(x, params, cfg):
    """Reproduces TimmViTEncoder.forward: returns [x, feat_i for i in indices]."""
    B, C, H, W = x.shape
    p = cfg["patch_size"]
    D = cfg["embed_dim"]
    heads = cfg["num_heads"]
    assert D % heads == 0
    Hp, Wp = H // p, W // p
    T = Hp * Wp
    Tn = T + 1
    Tp = _round_up(Tn, 8)
    Dh = D // heads
    scale = Dh ** -0.5
    Mrows = B * Tp

    # patch embedding: Conv2d(k=s=patch) == patchify + matmul
    patches = (x.reshape(B, C, Hp, p, Wp, p)
                 .transpose(0, 2, 4, 1, 3, 5)
                 .reshape(B * T, C * p * p))
    w_pe = params["patch_embed_w"].reshape(D, C * p * p).T      # (C*p*p, D) bf16
    tok = matmul_bias(patches, w_pe, params["patch_embed_b"],
                      out_dtype=jnp.float32).reshape(B, T, D)

    # prepend cls token, add positional embedding, pad token axis for tiling.
    cls = jnp.broadcast_to(params["cls_token"].astype(jnp.float32), (B, 1, D))
    tok = jnp.concatenate([cls, tok], axis=1) + params["pos_embed"]   # (B,Tn,D)
    tok = jnp.pad(tok, ((0, 0), (0, Tp - Tn), (0, 0)))
    tok = tok.reshape(Mrows, D)                 # f32 residual stream

    intermediates = []
    for blk in params["blocks"]:
        # --- attention sub-block: x = x + proj(attn(norm1(x)))  (LN fused) ---
        qkv = ln_matmul(tok, blk["ln1_g"], blk["ln1_b"],
                        blk["qkv_w"], blk["qkv_b"])                 # (Mrows, 3D)
        # free view; attention kernel indexes heads directly (no HBM transpose)
        qkv = qkv.reshape(B, Tp, 3 * heads, Dh)
        o = mhsa(qkv, heads, Dh, scale, Tn)                          # (B, Tp, D)
        o = o.reshape(Mrows, D)                                      # free view
        tok = matmul_bias(o, blk["proj_w"], blk["proj_b"], residual=tok,
                          out_dtype=jnp.float32)

        # --- MLP sub-block: x = x + fc2(gelu(fc1(norm2(x))))  (LN + res fused) ---
        h = ln_matmul(tok, blk["ln2_g"], blk["ln2_b"],
                      blk["fc1_w"], blk["fc1_b"], activation="gelu")
        tok = matmul_bias(h, blk["fc2_w"], blk["fc2_b"], residual=tok,
                          out_dtype=jnp.float32)

        intermediates.append(tok)

    # get_intermediate_layers(..., reshape=True, return_prefix_tokens=False, norm=True)
    feats = []
    for idx in cfg["indices"]:
        t = intermediates[idx]
        tn_ = layernorm(t, params["norm_g"], params["norm_b"])      # f32
        tn_ = tn_.reshape(B, Tp, D)[:, 1:Tn, :]                     # drop cls+pad
        spat = tn_.reshape(B, Hp, Wp, D).transpose(0, 3, 1, 2)      # NCHW
        # nn.UpsamplingBilinear2d(scale_factor=1) is an identity op.
        # TODO(synk): implement bilinear (align_corners=True) upsample for scale_factors != 1
        feats.append(spat)

    return [x] + feats


# ----------------------------- parameter init -----------------------------

def init_params(key, cfg):
    # TODO(synk): pretrained timm weights are not loaded; random init only.
    C = cfg["in_channels"]
    p = cfg["patch_size"]
    D = cfg["embed_dim"]
    hidden = D * cfg["mlp_ratio"]
    T = (cfg["image_size"] // p) ** 2

    def nrm(k, shape, dtype=jnp.float32):
        return (0.02 * jax.random.normal(k, shape)).astype(dtype)

    keys = jax.random.split(key, 3 + cfg["depth"])
    params = {
        # matmul weights stored in bf16 (MXU operands); norms / biases in f32
        "patch_embed_w": nrm(keys[0], (D, C, p, p), jnp.bfloat16),
        "patch_embed_b": jnp.zeros((D,), jnp.float32),
        "cls_token": nrm(keys[1], (1, 1, D)),
        "pos_embed": nrm(keys[2], (1, T + 1, D)),
        "norm_g": jnp.ones((D,), jnp.float32),
        "norm_b": jnp.zeros((D,), jnp.float32),
        "blocks": [],
    }
    for d in range(cfg["depth"]):
        bk = jax.random.split(keys[3 + d], 4)
        params["blocks"].append({
            "ln1_g": jnp.ones((D,), jnp.float32),
            "ln1_b": jnp.zeros((D,), jnp.float32),
            "qkv_w": nrm(bk[0], (D, 3 * D), jnp.bfloat16),
            "qkv_b": jnp.zeros((3 * D,), jnp.float32),
            "proj_w": nrm(bk[1], (D, D), jnp.bfloat16),
            "proj_b": jnp.zeros((D,), jnp.float32),
            "ln2_g": jnp.ones((D,), jnp.float32),
            "ln2_b": jnp.zeros((D,), jnp.float32),
            "fc1_w": nrm(bk[2], (D, hidden), jnp.bfloat16),
            "fc1_b": jnp.zeros((hidden,), jnp.float32),
            "fc2_w": nrm(bk[3], (hidden, D), jnp.bfloat16),
            "fc2_b": jnp.zeros((D,), jnp.float32),
        })
    return params


# ----------------------------- main -----------------------------

if __name__ == "__main__":
    cfg = dict(
        in_channels=4,
        image_size=16,
        patch_size=4,
        embed_dim=32,
        num_heads=4,
        depth=2,
        mlp_ratio=4,
        indices=(0, 1),   # depth=2 -> indices = range(depth)
    )

    key = jax.random.PRNGKey(0)
    pkey, xkey = jax.random.split(key)
    params = init_params(pkey, cfg)
    x = jax.random.normal(
        xkey, (2, cfg["in_channels"], cfg["image_size"], cfg["image_size"]),
        dtype=jnp.float32)

    fwd = jax.jit(lambda xx, pp: vit_encoder_forward(xx, pp, cfg))
    feats = fwd(x, params)
    feats = jax.block_until_ready(feats)

    # sanity: out_channels = [in_channels] + [embed_dim]*depth, stride = patch_size
    Hp = cfg["image_size"] // cfg["patch_size"]
    assert feats[0].shape == (2, cfg["in_channels"], 16, 16)
    for f in feats[1:]:
        assert f.shape == (2, cfg["embed_dim"], Hp, Hp)
        assert f.dtype == jnp.float32
        assert bool(jnp.all(jnp.isfinite(f)))

    print("KERNEL_OK")
</pallas_src>

<mosaic_0001>
module attributes {stable_mosaic.version = 11 : i64} {
  func.func @_matmul_bias_kernel(%arg0: i32, %arg1: memref<16x64xf32, #tpu.memory_space<vmem>>, %arg2: memref<64x32xbf16, #tpu.memory_space<vmem>>, %arg3: memref<1x32xf32, #tpu.memory_space<vmem>>, %arg4: memref<16x32xf32, #tpu.memory_space<vmem>>) attributes {dimension_semantics = [#tpu.dimension_semantics<parallel>], iteration_bounds = array<i64: 2>, scalar_prefetch = 0 : i64, scratch_operands = 0 : i64, tpu.core_type = #tpu.core_type<tc>, window_params = [{transform_indices = @transform_0, window_bounds = array<i64: 16, 64>}, {pipeline_mode = #tpu.pipeline_mode<synchronous>, transform_indices = @transform_1, window_bounds = array<i64: 64, 32>}, {pipeline_mode = #tpu.pipeline_mode<synchronous>, transform_indices = @transform_2, window_bounds = array<i64: 1, 32>}, {transform_indices = @transform_3, window_bounds = array<i64: 16, 32>}]} {
    %c0 = arith.constant 0 : index
    %c0_0 = arith.constant 0 : index
    %0 = vector.load %arg1[%c0, %c0_0] : memref<16x64xf32, #tpu.memory_space<vmem>>, vector<16x64xf32>
    %1 = arith.truncf %0 : vector<16x64xf32> to vector<16x64xbf16>
    %c0_1 = arith.constant 0 : index
    %c0_2 = arith.constant 0 : index
    %2 = vector.load %arg2[%c0_1, %c0_2] : memref<64x32xbf16, #tpu.memory_space<vmem>>, vector<64x32xbf16>
    %cst = arith.constant dense<0.000000e+00> : vector<16x32xf32>
    %3 = tpu.matmul %1, %2, %cst {dimension_numbers = #tpu.dot_dimension_numbers<[1], [0], [0], [1], [0, 0, 1, 1], [], []>} : vector<16x64xbf16>, vector<64x32xbf16>, vector<16x32xf32> -> vector<16x32xf32>
    %c0_3 = arith.constant 0 : index
    %c0_4 = arith.constant 0 : index
    %4 = vector.load %arg3[%c0_3, %c0_4] : memref<1x32xf32, #tpu.memory_space<vmem>>, vector<1x32xf32>
    %5 = vector.broadcast %4 : vector<1x32xf32> to vector<16x32xf32>
    %6 = arith.addf %3, %5 : vector<16x32xf32>
    %c0_5 = arith.constant 0 : index
    %c0_6 = arith.constant 0 : index
    %7 = vector.load %arg4[%c0_5, %c0_6] : memref<16x32xf32, #tpu.memory_space<vmem>>, vector<16x32xf32>
    tpu.vector_store %arg4[%c0_5, %c0_6], %6 {strides = array<i32>} : memref<16x32xf32, #tpu.memory_space<vmem>>, vector<16x32xf32>,
    return
  }
  func.func @transform_0(%arg0: i32) -> (i32, i32) {
    %c0_i32 = arith.constant 0 : i32
    %c0_i32_0 = arith.constant 0 : i32
    return %arg0, %c0_i32 : i32, i32
  }
  func.func @transform_1(%arg0: i32) -> (i32, i32) {
    %c0_i32 = arith.constant 0 : i32
    %c0_i32_0 = arith.constant 0 : i32
    %c0_i32_1 = arith.constant 0 : i32
    return %c0_i32, %c0_i32_0 : i32, i32
  }
  func.func @transform_2(%arg0: i32) -> (i32, i32) {
    %c0_i32 = arith.constant 0 : i32
    %c0_i32_0 = arith.constant 0 : i32
    %c0_i32_1 = arith.constant 0 : i32
    return %c0_i32, %c0_i32_0 : i32, i32
  }
  func.func @transform_3(%arg0: i32) -> (i32, i32) {
    %c0_i32 = arith.constant 0 : i32
    %c0_i32_0 = arith.constant 0 : i32
    return %arg0, %c0_i32 : i32, i32
  }
}

module attributes {stable_mosaic.version = 11 : i64} {
  func.func @_ln_matmul_kernel(%arg0: i32, %arg1: memref<24x32xf32, #tpu.memory_space<vmem>>, %arg2: memref<1x32xf32, #tpu.memory_space<vmem>>, %arg3: memref<1x32xf32, #tpu.memory_space<vmem>>, %arg4: memref<32x96xbf16, #tpu.memory_space<vmem>>, %arg5: memref<1x96xf32, #tpu.memory_space<vmem>>, %arg6: memref<24x96xbf16, #tpu.memory_space<vmem>>) attributes {dimension_semantics = [#tpu.dimension_semantics<parallel>], iteration_bounds = array<i64: 2>, scalar_prefetch = 0 : i64, scratch_operands = 0 : i64, tpu.core_type = #tpu.core_type<tc>, window_params = [{transform_indices = @transform_0, window_bounds = array<i64: 24, 32>}, {pipeline_mode = #tpu.pipeline_mode<synchronous>, transform_indices = @transform_1, window_bounds = array<i64: 1, 32>}, {pipeline_mode = #tpu.pipeline_mode<synchronous>, transform_indices = @transform_2, window_bounds = array<i64: 1, 32>}, {pipeline_mode = #tpu.pipeline_mode<synchronous>, transform_indices = @transform_3, window_bounds = array<i64: 32, 96>}, {pipeline_mode = #tpu.pipeline_mode<synchronous>, transform_indices = @transform_4, window_bounds = array<i64: 1, 96>}, {transform_indices = @transform_5, window_bounds = array<i64: 24, 96>}]} {
    %c0 = arith.constant 0 : index
    %c0_0 = arith.constant 0 : index
    %0 = vector.load %arg1[%c0, %c0_0] : memref<24x32xf32, #tpu.memory_space<vmem>>, vector<24x32xf32>
    %cst = arith.constant dense<0.000000e+00> : vector<24xf32>
    %1 = vector.multi_reduction <add>, %0, %cst [1] : vector<24x32xf32> to vector<24xf32>
    %2 = vector.shape_cast %1 : vector<24xf32> to vector<24x1xf32>
    %cst_1 = arith.constant 3.200000e+01 : f32
    %3 = vector.broadcast %cst_1 : f32 to vector<24x1xf32>
    %4 = arith.divf %2, %3 : vector<24x1xf32>
    %5 = vector.broadcast %4 : vector<24x1xf32> to vector<24x32xf32>
    %6 = arith.subf %0, %5 : vector<24x32xf32>
    %7 = arith.mulf %6, %6 : vector<24x32xf32>
    %cst_2 = arith.constant dense<0.000000e+00> : vector<24xf32>
    %8 = vector.multi_reduction <add>, %7, %cst_2 [1] : vector<24x32xf32> to vector<24xf32>
    %9 = vector.shape_cast %8 : vector<24xf32> to vector<24x1xf32>
    %cst_3 = arith.constant 3.200000e+01 : f32
    %10 = vector.broadcast %cst_3 : f32 to vector<24x1xf32>
    %11 = arith.divf %9, %10 : vector<24x1xf32>
    %12 = vector.broadcast %4 : vector<24x1xf32> to vector<24x32xf32>
    %13 = arith.subf %0, %12 : vector<24x32xf32>
    %cst_4 = arith.constant 9.99999997E-7 : f32
    %14 = vector.broadcast %cst_4 : f32 to vector<24x1xf32>
    %15 = arith.addf %11, %14 : vector<24x1xf32>
    %16 = math.rsqrt %15 : vector<24x1xf32>
    %17 = vector.broadcast %16 : vector<24x1xf32> to vector<24x32xf32>
    %18 = arith.mulf %13, %17 : vector<24x32xf32>
    %c0_5 = arith.constant 0 : index
    %c0_6 = arith.constant 0 : index
    %19 = vector.load %arg2[%c0_5, %c0_6] : memref<1x32xf32, #tpu.memory_space<vmem>>, vector<1x32xf32>
    %20 = vector.broadcast %19 : vector<1x32xf32> to vector<24x32xf32>
    %21 = arith.mulf %18, %20 : vector<24x32xf32>
    %c0_7 = arith.constant 0 : index
    %c0_8 = arith.constant 0 : index
    %22 = vector.load %arg3[%c0_7, %c0_8] : memref<1x32xf32, #tpu.memory_space<vmem>>, vector<1x32xf32>
    %23 = vector.broadcast %22 : vector<1x32xf32> to vector<24x32xf32>
    %24 = arith.addf %21, %23 : vector<24x32xf32>
    %25 = arith.truncf %24 : vector<24x32xf32> to vector<24x32xbf16>
    %c0_9 = arith.constant 0 : index
    %c0_10 = arith.constant 0 : index
    %26 = vector.load %arg4[%c0_9, %c0_10] : memref<32x96xbf16, #tpu.memory_space<vmem>>, vector<32x96xbf16>
    %cst_11 = arith.constant dense<0.000000e+00> : vector<24x96xf32>
    %27 = tpu.matmul %25, %26, %cst_11 {dimension_numbers = #tpu.dot_dimension_numbers<[1], [0], [0], [1], [0, 0, 1, 1], [], []>} : vector<24x32xbf16>, vector<32x96xbf16>, vector<24x96xf32> -> vector<24x96xf32>
    %c0_12 = arith.constant 0 : index
    %c0_13 = arith.constant 0 : index
    %28 = vector.load %arg5[%c0_12, %c0_13] : memref<1x96xf32, #tpu.memory_space<vmem>>, vector<1x96xf32>
    %29 = vector.broadcast %28 : vector<1x96xf32> to vector<24x96xf32>
    %30 = arith.addf %27, %29 : vector<24x96xf32>
    %31 = arith.truncf %30 : vector<24x96xf32> to vector<24x96xbf16>
    %c0_14 = arith.constant 0 : index
    %c0_15 = arith.constant 0 : index
    %32 = vector.load %arg6[%c0_14, %c0_15] : memref<24x96xbf16, #tpu.memory_space<vmem>>, vector<24x96xbf16>
    tpu.vector_store %arg6[%c0_14, %c0_15], %31 {strides = array<i32>} : memref<24x96xbf16, #tpu.memory_space<vmem>>, vector<24x96xbf16>,
    return
  }
  func.func @transform_0(%arg0: i32) -> (i32, i32) {
    %c0_i32 = arith.constant 0 : i32
    %c0_i32_0 = arith.constant 0 : i32
    return %arg0, %c0_i32 : i32, i32
  }
  func.func @transform_1(%arg0: i32) -> (i32, i32) {
    %c0_i32 = arith.constant 0 : i32
    %c0_i32_0 = arith.constant 0 : i32
    %c0_i32_1 = arith.constant 0 : i32
    return %c0_i32, %c0_i32_0 : i32, i32
  }
  func.func @transform_2(%arg0: i32) -> (i32, i32) {
    %c0_i32 = arith.constant 0 : i32
    %c0_i32_0 = arith.constant 0 : i32
    %c0_i32_1 = arith.constant 0 : i32
    return %c0_i32, %c0_i32_0 : i32, i32
  }
  func.func @transform_3(%arg0: i32) -> (i32, i32) {
    %c0_i32 = arith.constant 0 : i32
    %c0_i32_0 = arith.constant 0 : i32
    %c0_i32_1 = arith.constant 0 : i32
    return %c0_i32, %c0_i32_0 : i32, i32
  }
  func.func @transform_4(%arg0: i32) -> (i32, i32) {
    %c0_i32 = arith.constant 0 : i32
    %c0_i32_0 = arith.constant 0 : i32
    %c0_i32_1 = arith.constant 0 : i32
    return %c0_i32, %c0_i32_0 : i32, i32
  }
  func.func @transform_5(%arg0: i32) -> (i32, i32) {
    %c0_i32 = arith.constant 0 : i32
    %c0_i32_0 = arith.constant 0 : i32
    return %arg0, %c0_i32 : i32, i32
  }
}

module attributes {stable_mosaic.version = 11 : i64} {
  func.func @_mhsa_kernel(%arg0: i32, %arg1: memref<1x24x12x8xbf16, #tpu.memory_space<vmem>>, %arg2: memref<1x24x32xbf16, #tpu.memory_space<vmem>>) attributes {dimension_semantics = [#tpu.dimension_semantics<parallel>], iteration_bounds = array<i64: 2>, scalar_prefetch = 0 : i64, scratch_operands = 0 : i64, tpu.core_type = #tpu.core_type<tc>, window_params = [{transform_indices = @transform_0, window_bounds = array<i64: 1, 24, 12, 8>}, {transform_indices = @transform_1, window_bounds = array<i64: 1, 24, 32>}]} {
    %0 = tpu.iota {dimensions = array<i32: 1>} : vector<24x24xi32>
    %c17_i32 = arith.constant 17 : i32
    %1 = vector.broadcast %c17_i32 : i32 to vector<24x24xi32>
    %2 = arith.cmpi slt, %0, %1 : vector<24x24xi32>
    %c0 = arith.constant 0 : index
    %c0_0 = arith.constant 0 : index
    %c0_1 = arith.constant 0 : index
    %c0_2 = arith.constant 0 : index
    %3 = vector.load %arg1[%c0, %c0_0, %c0_1, %c0_2] : memref<1x24x12x8xbf16, #tpu.memory_space<vmem>>, vector<1x24x1x8xbf16>
    %4 = vector.shape_cast %3 : vector<1x24x1x8xbf16> to vector<24x8xbf16>
    %c0_3 = arith.constant 0 : index
    %c0_4 = arith.constant 0 : index
    %c4 = arith.constant 4 : index
    %c0_5 = arith.constant 0 : index
    %5 = vector.load %arg1[%c0_3, %c0_4, %c4, %c0_5] : memref<1x24x12x8xbf16, #tpu.memory_space<vmem>>, vector<1x24x1x8xbf16>
    %6 = vector.shape_cast %5 : vector<1x24x1x8xbf16> to vector<24x8xbf16>
    %c0_6 = arith.constant 0 : index
    %c0_7 = arith.constant 0 : index
    %c8 = arith.constant 8 : index
    %c0_8 = arith.constant 0 : index
    %7 = vector.load %arg1[%c0_6, %c0_7, %c8, %c0_8] : memref<1x24x12x8xbf16, #tpu.memory_space<vmem>>, vector<1x24x1x8xbf16>
    %8 = vector.shape_cast %7 : vector<1x24x1x8xbf16> to vector<24x8xbf16>
    %cst = arith.constant dense<0.000000e+00> : vector<24x24xf32>
    %9 = tpu.matmul %4, %6, %cst {dimension_numbers = #tpu.dot_dimension_numbers<[1], [1], [0], [0], [0, 0, 1, 0], [], []>} : vector<24x8xbf16>, vector<24x8xbf16>, vector<24x24xf32> -> vector<24x24xf32>
    %cst_9 = arith.constant 0.353553385 : f32
    %10 = vector.broadcast %cst_9 : f32 to vector<24x24xf32>
    %11 = arith.mulf %9, %10 : vector<24x24xf32>
    %cst_10 = arith.constant -1.000000e+30 : f32
    %12 = vector.broadcast %cst_10 : f32 to vector<24x24xf32>
    %13 = arith.select %2, %11, %12 : vector<24x24xi1>, vector<24x24xf32>
    %cst_11 = arith.constant dense<0xFF800000> : vector<24xf32>
    %14 = vector.multi_reduction <maximumf>, %13, %cst_11 [1] : vector<24x24xf32> to vector<24xf32>
    %15 = vector.shape_cast %14 : vector<24xf32> to vector<24x1xf32>
    %16 = vector.broadcast %15 : vector<24x1xf32> to vector<24x24xf32>
    %17 = arith.subf %13, %16 : vector<24x24xf32>
    %18 = math.exp %17 : vector<24x24xf32>
    %cst_12 = arith.constant dense<0.000000e+00> : vector<24xf32>
    %19 = vector.multi_reduction <add>, %18, %cst_12 [1] : vector<24x24xf32> to vector<24xf32>
    %20 = vector.shape_cast %19 : vector<24xf32> to vector<24x1xf32>
    %21 = arith.truncf %18 : vector<24x24xf32> to vector<24x24xbf16>
    %cst_13 = arith.constant dense<0.000000e+00> : vector<24x8xf32>
    %22 = tpu.matmul %21, %8, %cst_13 {dimension_numbers = #tpu.dot_dimension_numbers<[1], [0], [0], [1], [0, 0, 1, 1], [], []>} : vector<24x24xbf16>, vector<24x8xbf16>, vector<24x8xf32> -> vector<24x8xf32>
    %23 = vector.broadcast %20 : vector<24x1xf32> to vector<24x8xf32>
    %24 = arith.divf %22, %23 : vector<24x8xf32>
    %25 = arith.truncf %24 : vector<24x8xf32> to vector<24x8xbf16>
    %c0_14 = arith.constant 0 : index
    %c0_15 = arith.constant 0 : index
    %c0_16 = arith.constant 0 : index
    %26 = vector.load %arg2[%c0_14, %c0_15, %c0_16] : memref<1x24x32xbf16, #tpu.memory_space<vmem>>, vector<1x24x8xbf16>
    %27 = vector.shape_cast %26 : vector<1x24x8xbf16> to vector<24x8xbf16>
    %28 = vector.shape_cast %25 : vector<24x8xbf16> to vector<1x24x8xbf16>
    tpu.vector_store %arg2[%c0_14, %c0_15, %c0_16], %28 {strides = array<i32>} : memref<1x24x32xbf16, #tpu.memory_space<vmem>>, vector<1x24x8xbf16>,
    %c0_17 = arith.constant 0 : index
    %c0_18 = arith.constant 0 : index
    %c1 = arith.constant 1 : index
    %c0_19 = arith.constant 0 : index
    %29 = vector.load %arg1[%c0_17, %c0_18, %c1, %c0_19] : memref<1x24x12x8xbf16, #tpu.memory_space<vmem>>, vector<1x24x1x8xbf16>
    %30 = vector.shape_cast %29 : vector<1x24x1x8xbf16> to vector<24x8xbf16>
    %c0_20 = arith.constant 0 : index
    %c0_21 = arith.constant 0 : index
    %c5 = arith.constant 5 : index
    %c0_22 = arith.constant 0 : index
    %31 = vector.load %arg1[%c0_20, %c0_21, %c5, %c0_22] : memref<1x24x12x8xbf16, #tpu.memory_space<vmem>>, vector<1x24x1x8xbf16>
    %32 = vector.shape_cast %31 : vector<1x24x1x8xbf16> to vector<24x8xbf16>
    %c0_23 = arith.constant 0 : index
    %c0_24 = arith.constant 0 : index
    %c9 = arith.constant 9 : index
    %c0_25 = arith.constant 0 : index
    %33 = vector.load %arg1[%c0_23, %c0_24, %c9, %c0_25] : memref<1x24x12x8xbf16, #tpu.memory_space<vmem>>, vector<1x24x1x8xbf16>
    %34 = vector.shape_cast %33 : vector<1x24x1x8xbf16> to vector<24x8xbf16>
    %cst_26 = arith.constant dense<0.000000e+00> : vector<24x24xf32>
    %35 = tpu.matmul %30, %32, %cst_26 {dimension_numbers = #tpu.dot_dimension_numbers<[1], [1], [0], [0], [0, 0, 1, 0], [], []>} : vector<24x8xbf16>, vector<24x8xbf16>, vector<24x24xf32> -> vector<24x24xf32>
    %cst_27 = arith.constant 0.353553385 : f32
    %36 = vector.broadcast %cst_27 : f32 to vector<24x24xf32>
    %37 = arith.mulf %35, %36 : vector<24x24xf32>
    %cst_28 = arith.constant -1.000000e+30 : f32
    %38 = vector.broadcast %cst_28 : f32 to vector<24x24xf32>
    %39 = arith.select %2, %37, %38 : vector<24x24xi1>, vector<24x24xf32>
    %cst_29 = arith.constant dense<0xFF800000> : vector<24xf32>
    %40 = vector.multi_reduction <maximumf>, %39, %cst_29 [1] : vector<24x24xf32> to vector<24xf32>
    %41 = vector.shape_cast %40 : vector<24xf32> to vector<24x1xf32>
    %42 = vector.broadcast %41 : vector<24x1xf32> to vector<24x24xf32>
    %43 = arith.subf %39, %42 : vector<24x24xf32>
    %44 = math.exp %43 : vector<24x24xf32>
    %cst_30 = arith.constant dense<0.000000e+00> : vector<24xf32>
    %45 = vector.multi_reduction <add>, %44, %cst_30 [1] : vector<24x24xf32> to vector<24xf32>
    %46 = vector.shape_cast %45 : vector<24xf32> to vector<24x1xf32>
    %47 = arith.truncf %44 : vector<24x24xf32> to vector<24x24xbf16>
    %cst_31 = arith.constant dense<0.000000e+00> : vector<24x8xf32>
    %48 = tpu.matmul %47, %34, %cst_31 {dimension_numbers = #tpu.dot_dimension_numbers<[1], [0], [0], [1], [0, 0, 1, 1], [], []>} : vector<24x24xbf16>, vector<24x8xbf16>, vector<24x8xf32> -> vector<24x8xf32>
    %49 = vector.broadcast %46 : vector<24x1xf32> to vector<24x8xf32>
    %50 = arith.divf %48, %49 : vector<24x8xf32>
    %51 = arith.truncf %50 : vector<24x8xf32> to vector<24x8xbf16>
    %c0_32 = arith.constant 0 : index
    %c0_33 = arith.constant 0 : index
    %c8_34 = arith.constant 8 : index
    %52 = vector.load %arg2[%c0_32, %c0_33, %c8_34] : memref<1x24x32xbf16, #tpu.memory_space<vmem>>, vector<1x24x8xbf16>
    %53 = vector.shape_cast %52 : vector<1x24x8xbf16> to vector<24x8xbf16>
    %54 = vector.shape_cast %51 : vector<24x8xbf16> to vector<1x24x8xbf16>
    tpu.vector_store %arg2[%c0_32, %c0_33, %c8_34], %54 {strides = array<i32>} : memref<1x24x32xbf16, #tpu.memory_space<vmem>>, vector<1x24x8xbf16>,
    %c0_35 = arith.constant 0 : index
    %c0_36 = arith.constant 0 : index
    %c2 = arith.constant 2 : index
    %c0_37 = arith.constant 0 : index
    %55 = vector.load %arg1[%c0_35, %c0_36, %c2, %c0_37] : memref<1x24x12x8xbf16, #tpu.memory_space<vmem>>, vector<1x24x1x8xbf16>
    %56 = vector.shape_cast %55 : vector<1x24x1x8xbf16> to vector<24x8xbf16>
    %c0_38 = arith.constant 0 : index
    %c0_39 = arith.constant 0 : index
    %c6 = arith.constant 6 : index
    %c0_40 = arith.constant 0 : index
    %57 = vector.load %arg1[%c0_38, %c0_39, %c6, %c0_40] : memref<1x24x12x8xbf16, #tpu.memory_space<vmem>>, vector<1x24x1x8xbf16>
    %58 = vector.shape_cast %57 : vector<1x24x1x8xbf16> to vector<24x8xbf16>
    %c0_41 = arith.constant 0 : index
    %c0_42 = arith.constant 0 : index
    %c10 = arith.constant 10 : index
    %c0_43 = arith.constant 0 : index
    %59 = vector.load %arg1[%c0_41, %c0_42, %c10, %c0_43] : memref<1x24x12x8xbf16, #tpu.memory_space<vmem>>, vector<1x24x1x8xbf16>
    %60 = vector.shape_cast %59 : vector<1x24x1x8xbf16> to vector<24x8xbf16>
    %cst_44 = arith.constant dense<0.000000e+00> : vector<24x24xf32>
    %61 = tpu.matmul %56, %58, %cst_44 {dimension_numbers = #tpu.dot_dimension_numbers<[1], [1], [0], [0], [0, 0, 1, 0], [], []>} : vector<24x8xbf16>, vector<24x8xbf16>, vector<24x24xf32> -> vector<24x24xf32>
    %cst_45 = arith.constant 0.353553385 : f32
    %62 = vector.broadcast %cst_45 : f32 to vector<24x24xf32>
    %63 = arith.mulf %61, %62 : vector<24x24xf32>
    %cst_46 = arith.constant -1.000000e+30 : f32
    %64 = vector.broadcast %cst_46 : f32 to vector<24x24xf32>
    %65 = arith.select %2, %63, %64 : vector<24x24xi1>, vector<24x24xf32>
    %cst_47 = arith.constant dense<0xFF800000> : vector<24xf32>
    %66 = vector.multi_reduction <maximumf>, %65, %cst_47 [1] : vector<24x24xf32> to vector<24xf32>
    %67 = vector.shape_cast %66 : vector<24xf32> to vector<24x1xf32>
    %68 = vector.broadcast %67 : vector<24x1xf32> to vector<24x24xf32>
    %69 = arith.subf %65, %68 : vector<24x24xf32>
    %70 = math.exp %69 : vector<24x24xf32>
    %cst_48 = arith.constant dense<0.000000e+00> : vector<24xf32>
    %71 = vector.multi_reduction <add>, %70, %cst_48 [1] : vector<24x24xf32> to vector<24xf32>
    %72 = vector.shape_cast %71 : vector<24xf32> to vector<24x1xf32>
    %73 = arith.truncf %70 : vector<24x24xf32> to vector<24x24xbf16>
    %cst_49 = arith.constant dense<0.000000e+00> : vector<24x8xf32>
    %74 = tpu.matmul %73, %60, %cst_49 {dimension_numbers = #tpu.dot_dimension_numbers<[1], [0], [0], [1], [0, 0, 1, 1], [], []>} : vector<24x24xbf16>, vector<24x8xbf16>, vector<24x8xf32> -> vector<24x8xf32>
    %75 = vector.broadcast %72 : vector<24x1xf32> to vector<24x8xf32>
    %76 = arith.divf %74, %75 : vector<24x8xf32>
    %77 = arith.truncf %76 : vector<24x8xf32> to vector<24x8xbf16>
    %c0_50 = arith.constant 0 : index
    %c0_51 = arith.constant 0 : index
    %c16 = arith.constant 16 : index
    %78 = vector.load %arg2[%c0_50, %c0_51, %c16] : memref<1x24x32xbf16, #tpu.memory_space<vmem>>, vector<1x24x8xbf16>
    %79 = vector.shape_cast %78 : vector<1x24x8xbf16> to vector<24x8xbf16>
    %80 = vector.shape_cast %77 : vector<24x8xbf16> to vector<1x24x8xbf16>
    tpu.vector_store %arg2[%c0_50, %c0_51, %c16], %80 {strides = array<i32>} : memref<1x24x32xbf16, #tpu.memory_space<vmem>>, vector<1x24x8xbf16>,
    %c0_52 = arith.constant 0 : index
    %c0_53 = arith.constant 0 : index
    %c3 = arith.constant 3 : index
    %c0_54 = arith.constant 0 : index
    %81 = vector.load %arg1[%c0_52, %c0_53, %c3, %c0_54] : memref<1x24x12x8xbf16, #tpu.memory_space<vmem>>, vector<1x24x1x8xbf16>
    %82 = vector.shape_cast %81 : vector<1x24x1x8xbf16> to vector<24x8xbf16>
    %c0_55 = arith.constant 0 : index
    %c0_56 = arith.constant 0 : index
    %c7 = arith.constant 7 : index
    %c0_57 = arith.constant 0 : index
    %83 = vector.load %arg1[%c0_55, %c0_56, %c7, %c0_57] : memref<1x24x12x8xbf16, #tpu.memory_space<vmem>>, vector<1x24x1x8xbf16>
    %84 = vector.shape_cast %83 : vector<1x24x1x8xbf16> to vector<24x8xbf16>
    %c0_58 = arith.constant 0 : index
    %c0_59 = arith.constant 0 : index
    %c11 = arith.constant 11 : index
    %c0_60 = arith.constant 0 : index
    %85 = vector.load %arg1[%c0_58, %c0_59, %c11, %c0_60] : memref<1x24x12x8xbf16, #tpu.memory_space<vmem>>, vector<1x24x1x8xbf16>
    %86 = vector.shape_cast %85 : vector<1x24x1x8xbf16> to vector<24x8xbf16>
    %cst_61 = arith.constant dense<0.000000e+00> : vector<24x24xf32>
    %87 = tpu.matmul %82, %84, %cst_61 {dimension_numbers = #tpu.dot_dimension_numbers<[1], [1], [0], [0], [0, 0, 1, 0], [], []>} : vector<24x8xbf16>, vector<24x8xbf16>, vector<24x24xf32> -> vector<24x24xf32>
    %cst_62 = arith.constant 0.353553385 : f32
    %88 = vector.broadcast %cst_62 : f32 to vector<24x24xf32>
    %89 = arith.mulf %87, %88 : vector<24x24xf32>
    %cst_63 = arith.constant -1.000000e+30 : f32
    %90 = vector.broadcast %cst_63 : f32 to vector<24x24xf32>
    %91 = arith.select %2, %89, %90 : vector<24x24xi1>, vector<24x24xf32>
    %cst_64 = arith.constant dense<0xFF800000> : vector<24xf32>
    %92 = vector.multi_reduction <maximumf>, %91, %cst_64 [1] : vector<24x24xf32> to vector<24xf32>
    %93 = vector.shape_cast %92 : vector<24xf32> to vector<24x1xf32>
    %94 = vector.broadcast %93 : vector<24x1xf32> to vector<24x24xf32>
    %95 = arith.subf %91, %94 : vector<24x24xf32>
    %96 = math.exp %95 : vector<24x24xf32>
    %cst_65 = arith.constant dense<0.000000e+00> : vector<24xf32>
    %97 = vector.multi_reduction <add>, %96, %cst_65 [1] : vector<24x24xf32> to vector<24xf32>
    %98 = vector.shape_cast %97 : vector<24xf32> to vector<24x1xf32>
    %99 = arith.truncf %96 : vector<24x24xf32> to vector<24x24xbf16>
    %cst_66 = arith.constant dense<0.000000e+00> : vector<24x8xf32>
    %100 = tpu.matmul %99, %86, %cst_66 {dimension_numbers = #tpu.dot_dimension_numbers<[1], [0], [0], [1], [0, 0, 1, 1], [], []>} : vector<24x24xbf16>, vector<24x8xbf16>, vector<24x8xf32> -> vector<24x8xf32>
    %101 = vector.broadcast %98 : vector<24x1xf32> to vector<24x8xf32>
    %102 = arith.divf %100, %101 : vector<24x8xf32>
    %103 = arith.truncf %102 : vector<24x8xf32> to vector<24x8xbf16>
    %c0_67 = arith.constant 0 : index
    %c0_68 = arith.constant 0 : index
    %c24 = arith.constant 24 : index
    %104 = vector.load %arg2[%c0_67, %c0_68, %c24] : memref<1x24x32xbf16, #tpu.memory_space<vmem>>, vector<1x24x8xbf16>
    %105 = vector.shape_cast %104 : vector<1x24x8xbf16> to vector<24x8xbf16>
    %106 = vector.shape_cast %103 : vector<24x8xbf16> to vector<1x24x8xbf16>
    tpu.vector_store %arg2[%c0_67, %c0_68, %c24], %106 {strides = array<i32>} : memref<1x24x32xbf16, #tpu.memory_space<vmem>>, vector<1x24x8xbf16>,
    return
  }
  func.func @transform_0(%arg0: i32) -> (i32, i32, i32, i32) {
    %c0_i32 = arith.constant 0 : i32
    %c0_i32_0 = arith.constant 0 : i32
    %c0_i32_1 = arith.constant 0 : i32
    %c0_i32_2 = arith.constant 0 : i32
    return %arg0, %c0_i32, %c0_i32_0, %c0_i32_1 : i32, i32, i32, i32
  }
  func.func @transform_1(%arg0: i32) -> (i32, i32, i32) {
    %c0_i32 = arith.constant 0 : i32
    %c0_i32_0 = arith.constant 0 : i32
    %c0_i32_1 = arith.constant 0 : i32
    return %arg0, %c0_i32, %c0_i32_0 : i32, i32, i32
  }
}

module attributes {stable_mosaic.version = 11 : i64} {
  func.func @_matmul_bias_kernel(%arg0: i32, %arg1: memref<24x32xbf16, #tpu.memory_space<vmem>>, %arg2: memref<32x32xbf16, #tpu.memory_space<vmem>>, %arg3: memref<1x32xf32, #tpu.memory_space<vmem>>, %arg4: memref<24x32xf32, #tpu.memory_space<vmem>>, %arg5: memref<24x32xf32, #tpu.memory_space<vmem>>) attributes {dimension_semantics = [#tpu.dimension_semantics<parallel>], iteration_bounds = array<i64: 2>, scalar_prefetch = 0 : i64, scratch_operands = 0 : i64, tpu.core_type = #tpu.core_type<tc>, window_params = [{transform_indices = @transform_0, window_bounds = array<i64: 24, 32>}, {pipeline_mode = #tpu.pipeline_mode<synchronous>, transform_indices = @transform_1, window_bounds = array<i64: 32, 32>}, {pipeline_mode = #tpu.pipeline_mode<synchronous>, transform_indices = @transform_2, window_bounds = array<i64: 1, 32>}, {transform_indices = @transform_3, window_bounds = array<i64: 24, 32>}, {transform_indices = @transform_4, window_bounds = array<i64: 24, 32>}]} {
    %c0 = arith.constant 0 : index
    %c0_0 = arith.constant 0 : index
    %0 = vector.load %arg1[%c0, %c0_0] : memref<24x32xbf16, #tpu.memory_space<vmem>>, vector<24x32xbf16>
    %c0_1 = arith.constant 0 : index
    %c0_2 = arith.constant 0 : index
    %1 = vector.load %arg2[%c0_1, %c0_2] : memref<32x32xbf16, #tpu.memory_space<vmem>>, vector<32x32xbf16>
    %cst = arith.constant dense<0.000000e+00> : vector<24x32xf32>
    %2 = tpu.matmul %0, %1, %cst {dimension_numbers = #tpu.dot_dimension_numbers<[1], [0], [0], [1], [0, 0, 1, 1], [], []>} : vector<24x32xbf16>, vector<32x32xbf16>, vector<24x32xf32> -> vector<24x32xf32>
    %c0_3 = arith.constant 0 : index
    %c0_4 = arith.constant 0 : index
    %3 = vector.load %arg3[%c0_3, %c0_4] : memref<1x32xf32, #tpu.memory_space<vmem>>, vector<1x32xf32>
    %4 = vector.broadcast %3 : vector<1x32xf32> to vector<24x32xf32>
    %5 = arith.addf %2, %4 : vector<24x32xf32>
    %c0_5 = arith.constant 0 : index
    %c0_6 = arith.constant 0 : index
    %6 = vector.load %arg4[%c0_5, %c0_6] : memref<24x32xf32, #tpu.memory_space<vmem>>, vector<24x32xf32>
    %7 = arith.addf %5, %6 : vector<24x32xf32>
    %c0_7 = arith.constant 0 : index
    %c0_8 = arith.constant 0 : index
    %8 = vector.load %arg5[%c0_7, %c0_8] : memref<24x32xf32, #tpu.memory_space<vmem>>, vector<24x32xf32>
    tpu.vector_store %arg5[%c0_7, %c0_8], %7 {strides = array<i32>} : memref<24x32xf32, #tpu.memory_space<vmem>>, vector<24x32xf32>,
    return
  }
  func.func @transform_0(%arg0: i32) -> (i32, i32) {
    %c0_i32 = arith.constant 0 : i32
    %c0_i32_0 = arith.constant 0 : i32
    return %arg0, %c0_i32 : i32, i32
  }
  func.func @transform_1(%arg0: i32) -> (i32, i32) {
    %c0_i32 = arith.constant 0 : i32
    %c0_i32_0 = arith.constant 0 : i32
    %c0_i32_1 = arith.constant 0 : i32
    return %c0_i32, %c0_i32_0 : i32, i32
  }
  func.func @transform_2(%arg0: i32) -> (i32, i32) {
    %c0_i32 = arith.constant 0 : i32
    %c0_i32_0 = arith.constant 0 : i32
    %c0_i32_1 = arith.constant 0 : i32
    return %c0_i32, %c0_i32_0 : i32, i32
  }
  func.func @transform_3(%arg0: i32) -> (i32, i32) {
    %c0_i32 = arith.constant 0 : i32
    %c0_i32_0 = arith.constant 0 : i32
    return %arg0, %c0_i32 : i32, i32
  }
  func.func @transform_4(%arg0: i32) -> (i32, i32) {
    %c0_i32 = arith.constant 0 : i32
    %c0_i32_0 = arith.constant 0 : i32
    return %arg0, %c0_i32 : i32, i32
  }
}

module attributes {stable_mosaic.version = 11 : i64} {
  func.func @_ln_matmul_kernel(%arg0: i32, %arg1: memref<24x32xf32, #tpu.memory_space<vmem>>, %arg2: memref<1x32xf32, #tpu.memory_space<vmem>>, %arg3: memref<1x32xf32, #tpu.memory_space<vmem>>, %arg4: memref<32x128xbf16, #tpu.memory_space<vmem>>, %arg5: memref<1x128xf32, #tpu.memory_space<vmem>>, %arg6: memref<24x128xbf16, #tpu.memory_space<vmem>>) attributes {dimension_semantics = [#tpu.dimension_semantics<parallel>], iteration_bounds = array<i64: 2>, scalar_prefetch = 0 : i64, scratch_operands = 0 : i64, tpu.core_type = #tpu.core_type<tc>, window_params = [{transform_indices = @transform_0, window_bounds = array<i64: 24, 32>}, {pipeline_mode = #tpu.pipeline_mode<synchronous>, transform_indices = @transform_1, window_bounds = array<i64: 1, 32>}, {pipeline_mode = #tpu.pipeline_mode<synchronous>, transform_indices = @transform_2, window_bounds = array<i64: 1, 32>}, {pipeline_mode = #tpu.pipeline_mode<synchronous>, transform_indices = @transform_3, window_bounds = array<i64: 32, 128>}, {pipeline_mode = #tpu.pipeline_mode<synchronous>, transform_indices = @transform_4, window_bounds = array<i64: 1, 128>}, {transform_indices = @transform_5, window_bounds = array<i64: 24, 128>}]} {
    %c0 = arith.constant 0 : index
    %c0_0 = arith.constant 0 : index
    %0 = vector.load %arg1[%c0, %c0_0] : memref<24x32xf32, #tpu.memory_space<vmem>>, vector<24x32xf32>
    %cst = arith.constant dense<0.000000e+00> : vector<24xf32>
    %1 = vector.multi_reduction <add>, %0, %cst [1] : vector<24x32xf32> to vector<24xf32>
    %2 = vector.shape_cast %1 : vector<24xf32> to vector<24x1xf32>
    %cst_1 = arith.constant 3.200000e+01 : f32
    %3 = vector.broadcast %cst_1 : f32 to vector<24x1xf32>
    %4 = arith.divf %2, %3 : vector<24x1xf32>
    %5 = vector.broadcast %4 : vector<24x1xf32> to vector<24x32xf32>
    %6 = arith.subf %0, %5 : vector<24x32xf32>
    %7 = arith.mulf %6, %6 : vector<24x32xf32>
    %cst_2 = arith.constant dense<0.000000e+00> : vector<24xf32>
    %8 = vector.multi_reduction <add>, %7, %cst_2 [1] : vector<24x32xf32> to vector<24xf32>
    %9 = vector.shape_cast %8 : vector<24xf32> to vector<24x1xf32>
    %cst_3 = arith.constant 3.200000e+01 : f32
    %10 = vector.broadcast %cst_3 : f32 to vector<24x1xf32>
    %11 = arith.divf %9, %10 : vector<24x1xf32>
    %12 = vector.broadcast %4 : vector<24x1xf32> to vector<24x32xf32>
    %13 = arith.subf %0, %12 : vector<24x32xf32>
    %cst_4 = arith.constant 9.99999997E-7 : f32
    %14 = vector.broadcast %cst_4 : f32 to vector<24x1xf32>
    %15 = arith.addf %11, %14 : vector<24x1xf32>
    %16 = math.rsqrt %15 : vector<24x1xf32>
    %17 = vector.broadcast %16 : vector<24x1xf32> to vector<24x32xf32>
    %18 = arith.mulf %13, %17 : vector<24x32xf32>
    %c0_5 = arith.constant 0 : index
    %c0_6 = arith.constant 0 : index
    %19 = vector.load %arg2[%c0_5, %c0_6] : memref<1x32xf32, #tpu.memory_space<vmem>>, vector<1x32xf32>
    %20 = vector.broadcast %19 : vector<1x32xf32> to vector<24x32xf32>
    %21 = arith.mulf %18, %20 : vector<24x32xf32>
    %c0_7 = arith.constant 0 : index
    %c0_8 = arith.constant 0 : index
    %22 = vector.load %arg3[%c0_7, %c0_8] : memref<1x32xf32, #tpu.memory_space<vmem>>, vector<1x32xf32>
    %23 = vector.broadcast %22 : vector<1x32xf32> to vector<24x32xf32>
    %24 = arith.addf %21, %23 : vector<24x32xf32>
    %25 = arith.truncf %24 : vector<24x32xf32> to vector<24x32xbf16>
    %c0_9 = arith.constant 0 : index
    %c0_10 = arith.constant 0 : index
    %26 = vector.load %arg4[%c0_9, %c0_10] : memref<32x128xbf16, #tpu.memory_space<vmem>>, vector<32x128xbf16>
    %cst_11 = arith.constant dense<0.000000e+00> : vector<24x128xf32>
    %27 = tpu.matmul %25, %26, %cst_11 {dimension_numbers = #tpu.dot_dimension_numbers<[1], [0], [0], [1], [0, 0, 1, 1], [], []>} : vector<24x32xbf16>, vector<32x128xbf16>, vector<24x128xf32> -> vector<24x128xf32>
    %c0_12 = arith.constant 0 : index
    %c0_13 = arith.constant 0 : index
    %28 = vector.load %arg5[%c0_12, %c0_13] : memref<1x128xf32, #tpu.memory_space<vmem>>, vector<1x128xf32>
    %29 = vector.broadcast %28 : vector<1x128xf32> to vector<24x128xf32>
    %30 = arith.addf %27, %29 : vector<24x128xf32>
    %cst_14 = arith.constant 5.000000e-01 : f32
    %31 = vector.broadcast %cst_14 : f32 to vector<24x128xf32>
    %32 = arith.mulf %31, %30 : vector<24x128xf32>
    %cst_15 = arith.constant 0.707106769 : f32
    %33 = vector.broadcast %cst_15 : f32 to vector<24x128xf32>
    %34 = arith.mulf %30, %33 : vector<24x128xf32>
    %35 = math.erf %34 : vector<24x128xf32>
    %cst_16 = arith.constant 1.000000e+00 : f32
    %36 = vector.broadcast %cst_16 : f32 to vector<24x128xf32>
    %37 = arith.addf %36, %35 : vector<24x128xf32>
    %38 = arith.mulf %32, %37 : vector<24x128xf32>
    %39 = arith.truncf %38 : vector<24x128xf32> to vector<24x128xbf16>
    %c0_17 = arith.constant 0 : index
    %c0_18 = arith.constant 0 : index
    %40 = vector.load %arg6[%c0_17, %c0_18] : memref<24x128xbf16, #tpu.memory_space<vmem>>, vector<24x128xbf16>
    tpu.vector_store %arg6[%c0_17, %c0_18], %39 {strides = array<i32>} : memref<24x128xbf16, #tpu.memory_space<vmem>>, vector<24x128xbf16>,
    return
  }
  func.func @transform_0(%arg0: i32) -> (i32, i32) {
    %c0_i32 = arith.constant 0 : i32
    %c0_i32_0 = arith.constant 0 : i32
    return %arg0, %c0_i32 : i32, i32
  }
  func.func @transform_1(%arg0: i32) -> (i32, i32) {
    %c0_i32 = arith.constant 0 : i32
    %c0_i32_0 = arith.constant 0 : i32
    %c0_i32_1 = arith.constant 0 : i32
    return %c0_i32, %c0_i32_0 : i32, i32
  }
  func.func @transform_2(%arg0: i32) -> (i32, i32) {
    %c0_i32 = arith.constant 0 : i32
    %c0_i32_0 = arith.constant 0 : i32
    %c0_i32_1 = arith.constant 0 : i32
    return %c0_i32, %c0_i32_0 : i32, i32
  }
  func.func @transform_3(%arg0: i32) -> (i32, i32) {
    %c0_i32 = arith.constant 0 : i32
    %c0_i32_0 = arith.constant 0 : i32
    %c0_i32_1 = arith.constant 0 : i32
    return %c0_i32, %c0_i32_0 : i32, i32
  }
  func.func @transform_4(%arg0: i32) -> (i32, i32) {
    %c0_i32 = arith.constant 0 : i32
    %c0_i32_0 = arith.constant 0 : i32
    %c0_i32_1 = arith.constant 0 : i32
    return %c0_i32, %c0_i32_0 : i32, i32
  }
  func.func @transform_5(%arg0: i32) -> (i32, i32) {
    %c0_i32 = arith.constant 0 : i32
    %c0_i32_0 = arith.constant 0 : i32
    return %arg0, %c0_i32 : i32, i32
  }
}

module attributes {stable_mosaic.version = 11 : i64} {
  func.func @_layernorm_kernel(%arg0: i32, %arg1: memref<24x32xf32, #tpu.memory_space<vmem>>, %arg2: memref<1x32xf32, #tpu.memory_space<vmem>>, %arg3: memref<1x32xf32, #tpu.memory_space<vmem>>, %arg4: memref<24x32xf32, #tpu.memory_space<vmem>>) attributes {dimension_semantics = [#tpu.dimension_semantics<parallel>], iteration_bounds = array<i64: 2>, scalar_prefetch = 0 : i64, scratch_operands = 0 : i64, tpu.core_type = #tpu.core_type<tc>, window_params = [{transform_indices = @transform_0, window_bounds = array<i64: 24, 32>}, {pipeline_mode = #tpu.pipeline_mode<synchronous>, transform_indices = @transform_1, window_bounds = array<i64: 1, 32>}, {pipeline_mode = #tpu.pipeline_mode<synchronous>, transform_indices = @transform_2, window_bounds = array<i64: 1, 32>}, {transform_indices = @transform_3, window_bounds = array<i64: 24, 32>}]} {
    %c0 = arith.constant 0 : index
    %c0_0 = arith.constant 0 : index
    %0 = vector.load %arg1[%c0, %c0_0] : memref<24x32xf32, #tpu.memory_space<vmem>>, vector<24x32xf32>
    %cst = arith.constant dense<0.000000e+00> : vector<24xf32>
    %1 = vector.multi_reduction <add>, %0, %cst [1] : vector<24x32xf32> to vector<24xf32>
    %2 = vector.shape_cast %1 : vector<24xf32> to vector<24x1xf32>
    %cst_1 = arith.constant 3.200000e+01 : f32
    %3 = vector.broadcast %cst_1 : f32 to vector<24x1xf32>
    %4 = arith.divf %2, %3 : vector<24x1xf32>
    %5 = vector.broadcast %4 : vector<24x1xf32> to vector<24x32xf32>
    %6 = arith.subf %0, %5 : vector<24x32xf32>
    %7 = arith.mulf %6, %6 : vector<24x32xf32>
    %cst_2 = arith.constant dense<0.000000e+00> : vector<24xf32>
    %8 = vector.multi_reduction <add>, %7, %cst_2 [1] : vector<24x32xf32> to vector<24xf32>
    %9 = vector.shape_cast %8 : vector<24xf32> to vector<24x1xf32>
    %cst_3 = arith.constant 3.200000e+01 : f32
    %10 = vector.broadcast %cst_3 : f32 to vector<24x1xf32>
    %11 = arith.divf %9, %10 : vector<24x1xf32>
    %12 = vector.broadcast %4 : vector<24x1xf32> to vector<24x32xf32>
    %13 = arith.subf %0, %12 : vector<24x32xf32>
    %cst_4 = arith.constant 9.99999997E-7 : f32
    %14 = vector.broadcast %cst_4 : f32 to vector<24x1xf32>
    %15 = arith.addf %11, %14 : vector<24x1xf32>
    %16 = math.rsqrt %15 : vector<24x1xf32>
    %17 = vector.broadcast %16 : vector<24x1xf32> to vector<24x32xf32>
    %18 = arith.mulf %13, %17 : vector<24x32xf32>
    %c0_5 = arith.constant 0 : index
    %c0_6 = arith.constant 0 : index
    %19 = vector.load %arg2[%c0_5, %c0_6] : memref<1x32xf32, #tpu.memory_space<vmem>>, vector<1x32xf32>
    %20 = vector.broadcast %19 : vector<1x32xf32> to vector<24x32xf32>
    %21 = arith.mulf %18, %20 : vector<24x32xf32>
    %c0_7 = arith.constant 0 : index
    %c0_8 = arith.constant 0 : index
    %22 = vector.load %arg3[%c0_7, %c0_8] : memref<1x32xf32, #tpu.memory_space<vmem>>, vector<1x32xf32>
    %23 = vector.broadcast %22 : vector<1x32xf32> to vector<24x32xf32>
    %24 = arith.addf %21, %23 : vector<24x32xf32>
    %c0_9 = arith.constant 0 : index
    %c0_10 = arith.constant 0 : index
    %25 = vector.load %arg4[%c0_9, %c0_10] : memref<24x32xf32, #tpu.memory_space<vmem>>, vector<24x32xf32>
    tpu.vector_store %arg4[%c0_9, %c0_10], %24 {strides = array<i32>} : memref<24x32xf32, #tpu.memory_space<vmem>>, vector<24x32xf32>,
    return
  }
  func.func @transform_0(%arg0: i32) -> (i32, i32) {
    %c0_i32 = arith.constant 0 : i32
    %c0_i32_0 = arith.constant 0 : i32
    return %arg0, %c0_i32 : i32, i32
  }
  func.func @transform_1(%arg0: i32) -> (i32, i32) {
    %c0_i32 = arith.constant 0 : i32
    %c0_i32_0 = arith.constant 0 : i32
    %c0_i32_1 = arith.constant 0 : i32
    return %c0_i32, %c0_i32_0 : i32, i32
  }
  func.func @transform_2(%arg0: i32) -> (i32, i32) {
    %c0_i32 = arith.constant 0 : i32
    %c0_i32_0 = arith.constant 0 : i32
    %c0_i32_1 = arith.constant 0 : i32
    return %c0_i32, %c0_i32_0 : i32, i32
  }
  func.func @transform_3(%arg0: i32) -> (i32, i32) {
    %c0_i32 = arith.constant 0 : i32
    %c0_i32_0 = arith.constant 0 : i32
    return %arg0, %c0_i32 : i32, i32
  }
}

module attributes {stable_mosaic.version = 11 : i64} {
  func.func @_matmul_bias_kernel(%arg0: i32, %arg1: memref<24x128xbf16, #tpu.memory_space<vmem>>, %arg2: memref<128x32xbf16, #tpu.memory_space<vmem>>, %arg3: memref<1x32xf32, #tpu.memory_space<vmem>>, %arg4: memref<24x32xf32, #tpu.memory_space<vmem>>, %arg5: memref<24x32xf32, #tpu.memory_space<vmem>>) attributes {dimension_semantics = [#tpu.dimension_semantics<parallel>], iteration_bounds = array<i64: 2>, scalar_prefetch = 0 : i64, scratch_operands = 0 : i64, tpu.core_type = #tpu.core_type<tc>, window_params = [{transform_indices = @transform_0, window_bounds = array<i64: 24, 128>}, {pipeline_mode = #tpu.pipeline_mode<synchronous>, transform_indices = @transform_1, window_bounds = array<i64: 128, 32>}, {pipeline_mode = #tpu.pipeline_mode<synchronous>, transform_indices = @transform_2, window_bounds = array<i64: 1, 32>}, {transform_indices = @transform_3, window_bounds = array<i64: 24, 32>}, {transform_indices = @transform_4, window_bounds = array<i64: 24, 32>}]} {
    %c0 = arith.constant 0 : index
    %c0_0 = arith.constant 0 : index
    %0 = vector.load %arg1[%c0, %c0_0] : memref<24x128xbf16, #tpu.memory_space<vmem>>, vector<24x128xbf16>
    %c0_1 = arith.constant 0 : index
    %c0_2 = arith.constant 0 : index
    %1 = vector.load %arg2[%c0_1, %c0_2] : memref<128x32xbf16, #tpu.memory_space<vmem>>, vector<128x32xbf16>
    %cst = arith.constant dense<0.000000e+00> : vector<24x32xf32>
    %2 = tpu.matmul %0, %1, %cst {dimension_numbers = #tpu.dot_dimension_numbers<[1], [0], [0], [1], [0, 0, 1, 1], [], []>} : vector<24x128xbf16>, vector<128x32xbf16>, vector<24x32xf32> -> vector<24x32xf32>
    %c0_3 = arith.constant 0 : index
    %c0_4 = arith.constant 0 : index
    %3 = vector.load %arg3[%c0_3, %c0_4] : memref<1x32xf32, #tpu.memory_space<vmem>>, vector<1x32xf32>
    %4 = vector.broadcast %3 : vector<1x32xf32> to vector<24x32xf32>
    %5 = arith.addf %2, %4 : vector<24x32xf32>
    %c0_5 = arith.constant 0 : index
    %c0_6 = arith.constant 0 : index
    %6 = vector.load %arg4[%c0_5, %c0_6] : memref<24x32xf32, #tpu.memory_space<vmem>>, vector<24x32xf32>
    %7 = arith.addf %5, %6 : vector<24x32xf32>
    %c0_7 = arith.constant 0 : index
    %c0_8 = arith.constant 0 : index
    %8 = vector.load %arg5[%c0_7, %c0_8] : memref<24x32xf32, #tpu.memory_space<vmem>>, vector<24x32xf32>
    tpu.vector_store %arg5[%c0_7, %c0_8], %7 {strides = array<i32>} : memref<24x32xf32, #tpu.memory_space<vmem>>, vector<24x32xf32>,
    return
  }
  func.func @transform_0(%arg0: i32) -> (i32, i32) {
    %c0_i32 = arith.constant 0 : i32
    %c0_i32_0 = arith.constant 0 : i32
    return %arg0, %c0_i32 : i32, i32
  }
  func.func @transform_1(%arg0: i32) -> (i32, i32) {
    %c0_i32 = arith.constant 0 : i32
    %c0_i32_0 = arith.constant 0 : i32
    %c0_i32_1 = arith.constant 0 : i32
    return %c0_i32, %c0_i32_0 : i32, i32
  }
  func.func @transform_2(%arg0: i32) -> (i32, i32) {
    %c0_i32 = arith.constant 0 : i32
    %c0_i32_0 = arith.constant 0 : i32
    %c0_i32_1 = arith.constant 0 : i32
    return %c0_i32, %c0_i32_0 : i32, i32
  }
  func.func @transform_3(%arg0: i32) -> (i32, i32) {
    %c0_i32 = arith.constant 0 : i32
    %c0_i32_0 = arith.constant 0 : i32
    return %arg0, %c0_i32 : i32, i32
  }
  func.func @transform_4(%arg0: i32) -> (i32, i32) {
    %c0_i32 = arith.constant 0 : i32
    %c0_i32_0 = arith.constant 0 : i32
    return %arg0, %c0_i32 : i32, i32
  }
}

</mosaic_0001>

<bundles_post_ra>
// kernel: _lambda_.13
= control target key start
LH: loop header
LB: loop body
LE: loop exit
PB: predicated region body
PF: predicated region fallthrough
CT: control target
= control target key end

     0   :  { %s399_s12 = smov 0   ;;  %s431_s0 = inlined_call_operand.vmem [shape: f32[32,64], index: 0, kind: input, shape index: {}]   ;;  %s432_s1 = inlined_call_operand.vmem [shape: bf16[64,32], index: 1, kind: input, shape index: {}]   ;;  %s433_s2 = inlined_call_operand.vmem [shape: f32[1,32], index: 2, kind: input, shape index: {}]   ;;  %s434_s3 = inlined_call_operand.vmem [shape: f32[32,32], index: 3, kind: output, shape index: {}]  }
   0x1 LB: > { %s321_s13 = sadd.s32 4294967295, %s375_s12   ;;  %p325_p0 = scmp.ge.s32.totalorder %s375_s12, 1  ;;  %s375_s12 = sphi %s399_s12, %s13_s12  }
   0x2   : > { %p138_p1 = scmp.lt.s32.totalorder %s375_s12, 3 }
   0x4   : > { %p139_p2 = pnand %p325_p0, %p138_p1 }
   0x5   : > { %v365_v0 = vld [vmem:[%s432_s1] sm:$0xff] (!%p139_p2)   ;;  %v377_v1 = vmov (!%p139_p2), 0.0   ;;  %v366_v2 = vld [vmem:[%s432_s1 + $0x8] sm:$0xff] (!%p139_p2)   ;;  %vm378_vm0 = vmmov (!%p139_p2), 0   ;;  %s326_s18 = sshll.u32 (!%p139_p2), %s321_s13, 1  ;;  %v367_v3 = vld [vmem:[%s432_s1 + $0x10] sm:$0xff] (!%p139_p2)  }
   0x6   : > { %142 = sbr.rel (%p139_p2) target bundleno = 239 (0xef), region = 32  ;;  %343 = vmatprep.subr.bf16.mxu0 (!%p139_p2), %v377_v1  ;;  %351 = vmatprep.mubr.msk.bf16.mxu0 (!%p139_p2), %vm378_vm0, %v377_v1  ;;  %p163_p3 = scmp.lt.s32.totalorder (!%p139_p2), %s326_s18, 3  ;;  %v368_v4 = vld [vmem:[%s432_s1 + $0x18] sm:$0xff] (!%p139_p2)   ;;  %vm217_vm1 = vcmask (!%p139_p2), 523264   ;;  %v330_v8 = vld [vmem:[%s433_s2] ss:$0 sm:$0xff] (!%p139_p2) }
   0x7   : > { %344 = vmatpush3.bf16.msra.mxu0 (!%p139_p2), %v365_v0  ;;  %vm262_vm2 = vcmask (!%p139_p2), 261120  }
   0x8   : > { %345 = vmatprep.subr.bf16.mxu0 (!%p139_p2), %v377_v1 }
   0xb   : > { %346 = vmatpush3.bf16.msra.mxu0 (!%p139_p2), %v366_v2 }
   0xc   : > { %347 = vmatprep.subr.bf16.mxu0 (!%p139_p2), %v377_v1 }
   0xd   : > { %s436_s18 = smov (!%p163_p3, %s326_s18), 3 }
   0xe   : > { %s327_s21 = sshll.u32 %s436_s18, 3 }
   0xf   : > { %s166_s24 = scalar_lea.vmem %s431_s0, %s327_s21  ;;  %348 = vmatpush3.bf16.msra.mxu0 %v367_v3  ;;  %s172_s4 = scalar_lea.vmem %s434_s3, %s327_s21 }
  0x10   : > { %v175_v5 = vld [vmem:[%s166_s24] sm:$0xff]  ;;  %v176_v6 = vld [vmem:[%s166_s24 + $0x8] sm:$0xff]  ;;  %349 = vmatprep.subr.bf16.mxu0 %v377_v1 }
  0x11   : > { %v177_v7 = vpack.c.bf16 %v176_v6, %v175_v5 }
  0x13   : > { %350 = vmatpush3.bf16.msra.mxu0 %v368_v4 }
  0x16   : > { %352 = vmatmul.mubr.msk.bf16.vlgmr.msra.gmra.mrb[0].mxu0 %vm217_vm1, %v177_v7 }
  0xe9   : > { %v255_v9 = vpop.f32.mrb[0].mxu0 }
  0xea   : > { %v256_v10 = vadd.f32 %v330_v8, %v255_v9  ;;  %v353_v11 = vpop.f32.mrb[1].mxu0 }
  0xeb   : > { %v258_v12 = vpop.f32.mrb[2].mxu0 }
  0xec   : > { %263 = vst.msk [vmem:[%s172_s4] sm:$0xff] %vm262_vm2, %v256_v10  ;;  %v259_v13 = vadd.f32 %v330_v8, %v258_v12  ;;  %v354_v14 = vpop.f32.mrb[3].mxu0 }
  0xee   : > { %264 = vst.msk [vmem:[%s172_s4 + $0x8] sm:$0xff] %vm262_vm2, %v259_v13 }
  0xef PF: > { %s13_s12 = sadd.s32 1, %s375_s12  }
  0xf0   : > { %p10_p4 = scmp.ge.s32.totalorder %s13_s12, 4  }
  0xf2   :  { %12 = sbr.rel (!%p10_p4) target bundleno = 1 (0x1), region = 62 }

// kernel: _lambda_.14
= control target key start
LH: loop header
LB: loop body
LE: loop exit
PB: predicated region body
PF: predicated region fallthrough
CT: control target
= control target key end

     0   :  { %s533_s18 = smov 0   ;;  %s577_s0 = inlined_call_operand.vmem [shape: f32[48,32], index: 0, kind: input, shape index: {}]   ;;  %s578_s1 = inlined_call_operand.vmem [shape: f32[1,32], index: 1, kind: input, shape index: {}]   ;;  %s579_s2 = inlined_call_operand.vmem [shape: f32[1,32], index: 2, kind: input, shape index: {}]   ;;  %s580_s3 = inlined_call_operand.vmem [shape: bf16[32,96], index: 3, kind: input, shape index: {}]   ;;  %s581_s4 = inlined_call_operand.vmem [shape: f32[1,96], index: 4, kind: input, shape index: {}]   ;;  %s582_s5 = inlined_call_operand.vmem [shape: bf16[48,96], index: 5, kind: output, shape index: {}]  }
   0x1 LB: > { %s445_s19 = sadd.s32 4294967295, %s501_s18   ;;  %p449_p0 = scmp.ge.s32.totalorder %s501_s18, 1  ;;  %s501_s18 = sphi %s533_s18, %s15_s18  }
   0x2   : > { %p188_p1 = scmp.lt.s32.totalorder %s501_s18, 3 }
   0x4   : > { %p189_p2 = pnand %p449_p0, %p188_p1 }
   0x5   : > { %s216_s20 = smul.u32 (!%p189_p2), 3, %s445_s19  ;;  %vm232_vm0 = vcmask (!%p189_p2), 261120   ;;  %v487_v21 = vld [vmem:[%s580_s3] sm:$0xff] (!%p189_p2)   ;;  %v488_v22 = vld [vmem:[%s580_s3 + $0x8] sm:$0xff] (!%p189_p2)   ;;  %vm385_vm1 = vcmask (!%p189_p2), 781312  }
   0x6   : > { %192 = sbr.rel (%p189_p2) target bundleno = 558 (0x22e), region = 40  ;;  %471 = vmatprep.subr.bf16.mxu0 (!%p189_p2), %v487_v21  ;;  %v452_v34 = vld [vmem:[%s578_s1] ss:$0 sm:$0xff] (!%p189_p2) }
   0x7   : > { %p217_p3 = scmp.lt.s32.totalorder (!%p189_p2), %s216_s20, 5  ;;  %472 = vmatpush3.bf16.msra.mxu0 (!%p189_p2), %v487_v21  ;;  %v453_v40 = vld [vmem:[%s579_s2] ss:$0 sm:$0xff] (!%p189_p2) }
   0x8   : > { %473 = vmatprep.subr.bf16.mxu0 (!%p189_p2), %v488_v22  ;;  %v454_v48 = vld [vmem:[%s581_s4] ss:$0 sm:$0xff] (!%p189_p2) }
   0xb   : > { %474 = vmatpush3.bf16.msra.mxu0 (!%p189_p2), %v488_v22 }
   0xd   : > { %s584_s20 = smov (!%p217_p3, %s216_s20), 5 }
   0xe   : > { %s450_s21 = sshll.u32 %s584_s20, 3  ;;  %s451_s10 = sshll.u32 %s584_s20, 2 }
   0xf   : > { %s220_s24 = scalar_lea.vmem %s577_s0, %s450_s21  ;;  %s226_s13 = scalar_lea.vmem %s582_s5, %s451_s10 }
  0x10   : > { %v229_v0 = vld [vmem:[%s220_s24] sm:$0xff]  ;;  %v231_v1 = vld [vmem:[%s220_s24 + $0x10] sm:$0xff]  ;;  %v230_v2 = vld [vmem:[%s220_s24 + $0x8] sm:$0xff] }
  0x11   : > { %v233_v3 = vsel %vm232_vm0, %v229_v0, 0.0  ;;  %v239_v4 = vsel %vm232_vm0, %v231_v1, 0.0  ;;  %v236_v5 = vsel %vm232_vm0, %v230_v2, 0.0 }
  0x12   : > { %234 = vadd.xlane.f32.xlu0 %v233_v3  ;;  %240 = vadd.xlane.f32.xlu1 %v239_v4 }
  0x16   : > { %237 = vadd.xlane.f32.xlu0 %v236_v5 }
  0x9f   : > { %v235_v6 = vpop.xlane.xlu0 %234  ;;  %v241_v7 = vpop.xlane.xlu1 %240 }
  0xa0   : > { %v243_v8 = vmul.f32 0.03125, %v235_v6  ;;  %v245_v9 = vmul.f32 0.03125, %v241_v7 }
  0xa2   : > { %v246_v10 = vsub.f32 %v229_v0, %v243_v8  ;;  %v248_v11 = vsub.f32 %v231_v1, %v245_v9 }
  0xa3   : > { %v238_v12 = vpop.xlane.xlu0 %237 }
  0xa4   : > { %v244_v13 = vmul.f32 0.03125, %v238_v12  ;;  %v249_v14 = vmul.f32 %v246_v10, %v246_v10  ;;  %v251_v15 = vmul.f32 %v248_v11, %v248_v11 }
  0xa6   : > { %v247_v16 = vsub.f32 %v230_v2, %v244_v13  ;;  %v252_v17 = vsel %vm232_vm0, %v249_v14, 0.0  ;;  %v258_v18 = vsel %vm232_vm0, %v251_v15, 0.0 }
  0xa7   : > { %253 = vadd.xlane.f32.xlu1 %v252_v17 }
  0xa8   : > { %v250_v19 = vmul.f32 %v247_v16, %v247_v16 }
  0xaa   : > { %v255_v20 = vsel %vm232_vm0, %v250_v19, 0.0 }
  0xab   : > { %259 = vadd.xlane.f32.xlu1 %v258_v18  ;;  %256 = vadd.xlane.f32.xlu0 %v255_v20 }
 0x134   : > { %v254_v23 = vpop.xlane.xlu1 %253 }
 0x135   : > { %v261_v24 = vmul.f32 0.03125, %v254_v23 }
 0x137   : > { %v264_v25 = vadd.f32 1e-06, %v261_v24 }
 0x138   : > { %v260_v26 = vpop.xlane.xlu1 %259  ;;  %v257_v27 = vpop.xlane.xlu0 %256 }
 0x139   : > { %489 = vrsqrt.f32 %v264_v25  ;;  %v263_v28 = vmul.f32 0.03125, %v260_v26  ;;  %v262_v29 = vmul.f32 0.03125, %v257_v27 }
 0x13b   : > { %v266_v30 = vadd.f32 1e-06, %v263_v28  ;;  %v265_v31 = vadd.f32 1e-06, %v262_v29 }
 0x13d   : > { %491 = vrsqrt.f32 %v266_v30 }
 0x13e   : > { %493 = vrsqrt.f32 %v265_v31 }
 0x143   : > { %v490_v32 = vpop.eup %489 }
 0x144   : > { %v270_v33 = vmul.f32 %v490_v32, %v246_v10 }
 0x146   : > { %v280_v39 = vmul.f32 %v452_v34, %v270_v33 }
 0x147   : > { %v492_v35 = vpop.eup %491 }
 0x148   : > { %v494_v36 = vpop.eup %493  ;;  %v272_v37 = vmul.f32 %v492_v35, %v248_v11  ;;  %v290_v44 = vadd.f32 %v453_v40, %v280_v39 }
 0x149   : > { %v271_v38 = vmul.f32 %v494_v36, %v247_v16 }
 0x14a   : > { %v282_v41 = vmul.f32 %v452_v34, %v272_v37 }
 0x14b   : > { %v281_v42 = vmul.f32 %v452_v34, %v271_v38 }
 0x14c   : > { %v292_v43 = vadd.f32 %v453_v40, %v282_v41 }
 0x14d   : > { %v291_v45 = vadd.f32 %v453_v40, %v281_v42 }
 0x14e   : > { %v294_v46 = vpack.c.bf16 %v292_v43, %v292_v43 }
 0x14f   : > { %v293_v47 = vpack.c.bf16 %v291_v45, %v290_v44 }
 0x151   : > { %475 = vmatprep.mubr.msk.bf16.mxu0 %vm232_vm0, %v293_v47 }
 0x152   : > { %476 = vmatmul.mubr.msk.bf16.vlgmr.msra.gmra.mrb[0].mxu0 %vm232_vm0, %v294_v46 }
 0x225   : > { %v477_v49 = vpop.f32.mrb[0].mxu0 }
 0x226   : > { %v367_v50 = vadd.f32 %v477_v49, %v454_v48  ;;  %v358_v51 = vpop.f32.mrb[1].mxu0 }
 0x227   : > { %v359_v52 = vadd.f32 %v454_v48, %v358_v51  ;;  %v478_v53 = vpop.f32.mrb[2].mxu0 }
 0x228   : > { %v466_v54 = vpack.c.bf16 %v367_v50, %v367_v50  ;;  %v361_v55 = vpop.f32.mrb[3].mxu0 }
 0x229   : > { %v464_v56 = vpack.c.bf16 %v359_v52, %v359_v52  ;;  %v362_v57 = vadd.f32 %v454_v48, %v361_v55 }
 0x22a   : > { %388 = vst.msk [vmem:[%s226_s13 + $0x8] sm:$0xf] %vm385_vm1, %v466_v54 }
 0x22b   : > { %386 = vst.msk [vmem:[%s226_s13] sm:$0xf] %vm385_vm1, %v464_v56  ;;  %v465_v58 = vpack.c.bf16 %v362_v57, %v362_v57 }
 0x22d   : > { %387 = vst.msk [vmem:[%s226_s13 + $0x4] sm:$0xf] %vm385_vm1, %v465_v58 }
 0x22e PF: > { %s15_s18 = sadd.s32 1, %s501_s18  }
 0x22f   : > { %p12_p4 = scmp.ge.s32.totalorder %s15_s18, 4  }
 0x231   :  { %14 = sbr.rel (!%p12_p4) target bundleno = 1 (0x1), region = 70 }

// kernel: _lambda_.16
= control target key start
LH: loop header
LB: loop body
LE: loop exit
PB: predicated region body
PF: predicated region fallthrough
CT: control target
= control target key end

     0   :  { %s464_s15 = smov 0   ;;  %s498_s0 = inlined_call_operand.vmem [shape: bf16[48,32], index: 0, kind: input, shape index: {}]   ;;  %s499_s1 = inlined_call_operand.vmem [shape: bf16[32,32], index: 1, kind: input, shape index: {}]   ;;  %s500_s2 = inlined_call_operand.vmem [shape: f32[1,32], index: 2, kind: input, shape index: {}]   ;;  %s501_s3 = inlined_call_operand.vmem [shape: f32[48,32], index: 3, kind: input, shape index: {}]   ;;  %s502_s4 = inlined_call_operand.vmem [shape: f32[48,32], index: 4, kind: output, shape index: {}]  }
   0x1 LB: > { %s390_s16 = sadd.s32 4294967295, %s437_s15   ;;  %p394_p0 = scmp.ge.s32.totalorder %s437_s15, 1  ;;  %s437_s15 = sphi %s464_s15, %s14_s15  }
   0x2   : > { %p174_p1 = scmp.lt.s32.totalorder %s437_s15, 3 }
   0x4   : > { %p175_p2 = pnand %p394_p0, %p174_p1 }
   0x5   : > { %v427_v0 = vld [vmem:[%s499_s1] sm:$0xff] (!%p175_p2)   ;;  %s205_s19 = smul.u32 (!%p175_p2), 3, %s390_s16  ;;  %v428_v1 = vld [vmem:[%s499_s1 + $0x8] sm:$0xff] (!%p175_p2)   ;;  %vm258_vm0 = vcmask (!%p175_p2), 261120  }
   0x6   : > { %178 = sbr.rel (%p175_p2) target bundleno = 238 (0xee), region = 36  ;;  %411 = vmatprep.subr.bf16.mxu0 (!%p175_p2), %v427_v0  ;;  %v398_v4 = vld [vmem:[%s500_s2] ss:$0 sm:$0xff] (!%p175_p2) }
   0x7   : > { %p206_p3 = scmp.lt.s32.totalorder (!%p175_p2), %s205_s19, 5  ;;  %412 = vmatpush3.bf16.msra.mxu0 (!%p175_p2), %v427_v0 }
   0x8   : > { %413 = vmatprep.subr.bf16.mxu0 (!%p175_p2), %v428_v1 }
   0xb   : > { %414 = vmatpush3.bf16.msra.mxu0 (!%p175_p2), %v428_v1 }
   0xd   : > { %s504_s19 = smov (!%p206_p3, %s205_s19), 5 }
   0xe   : > { %s395_s22 = sshll.u32 %s504_s19, 2  ;;  %s396_s26 = sshll.u32 %s504_s19, 3 }
   0xf   : > { %s209_s25 = scalar_lea.vmem %s498_s0, %s395_s22  ;;  %s215_s29 = scalar_lea.vmem %s501_s3, %s396_s26 }
  0x10   : > { %v429_v2 = vld [vmem:[%s209_s25] sm:$0xff]   ;;  %v430_v3 = vld [vmem:[%s209_s25 + $0x8] ss:$0 sps:$4 sm:$0xff]   ;;  %v315_v6 = vld [vmem:[%s215_s29 + $0x10] sm:$0xff]  ;;  %s221_s8 = scalar_lea.vmem %s502_s4, %s396_s26 }
  0x11   : > { %415 = vmatprep.mubr.msk.bf16.mxu0 %vm258_vm0, %v429_v2  ;;  %v313_v9 = vld [vmem:[%s215_s29] sm:$0xff]  ;;  %v314_v14 = vld [vmem:[%s215_s29 + $0x8] sm:$0xff] }
  0x12   : > { %416 = vmatmul.mubr.msk.bf16.vlgmr.msra.gmra.mrb[0].mxu0 %vm258_vm0, %v430_v3 }
  0xe5   : > { %v417_v5 = vpop.f32.mrb[0].mxu0 }
  0xe6   : > { %v308_v7 = vadd.f32 %v417_v5, %v398_v4  ;;  %v299_v8 = vpop.f32.mrb[1].mxu0 }
  0xe7   : > { %v300_v10 = vadd.f32 %v398_v4, %v299_v8  ;;  %v418_v11 = vpop.f32.mrb[2].mxu0 }
  0xe8   : > { %v318_v12 = vadd.f32 %v315_v6, %v308_v7  ;;  %v302_v13 = vpop.f32.mrb[3].mxu0 }
  0xe9   : > { %v316_v15 = vadd.f32 %v313_v9, %v300_v10  ;;  %v303_v16 = vadd.f32 %v398_v4, %v302_v13 }
  0xea   : > { %321 = vst.msk [vmem:[%s221_s8 + $0x10] sm:$0xff] %vm258_vm0, %v318_v12 }
  0xeb   : > { %319 = vst.msk [vmem:[%s221_s8] sm:$0xff] %vm258_vm0, %v316_v15  ;;  %v317_v17 = vadd.f32 %v314_v14, %v303_v16 }
  0xed   : > { %320 = vst.msk [vmem:[%s221_s8 + $0x8] sm:$0xff] %vm258_vm0, %v317_v17 }
  0xee PF: > { %s14_s15 = sadd.s32 1, %s437_s15  }
  0xef   : > { %p11_p4 = scmp.ge.s32.totalorder %s14_s15, 4  }
  0xf1   :  { %13 = sbr.rel (!%p11_p4) target bundleno = 1 (0x1), region = 69 }

// kernel: _lambda_.17
= control target key start
LH: loop header
LB: loop body
LE: loop exit
PB: predicated region body
PF: predicated region fallthrough
CT: control target
= control target key end

     0   :  { %s558_s18 = smov 0   ;;  %s602_s0 = inlined_call_operand.vmem [shape: f32[48,32], index: 0, kind: input, shape index: {}]   ;;  %s603_s1 = inlined_call_operand.vmem [shape: f32[1,32], index: 1, kind: input, shape index: {}]   ;;  %s604_s2 = inlined_call_operand.vmem [shape: f32[1,32], index: 2, kind: input, shape index: {}]   ;;  %s605_s3 = inlined_call_operand.vmem [shape: bf16[32,128], index: 3, kind: input, shape index: {}]   ;;  %s606_s4 = inlined_call_operand.vmem [shape: f32[1,128], index: 4, kind: input, shape index: {}]   ;;  %s607_s5 = inlined_call_operand.vmem [shape: bf16[48,128], index: 5, kind: output, shape index: {}]  }
   0x1 LB: > { %s459_s19 = sadd.s32 4294967295, %s526_s18   ;;  %p463_p0 = scmp.ge.s32.totalorder %s526_s18, 1  ;;  %s526_s18 = sphi %s558_s18, %s15_s18  }
   0x2   : > { %p188_p1 = scmp.lt.s32.totalorder %s526_s18, 3 }
   0x4   : > { %p189_p2 = pnand %p463_p0, %p188_p1 }
   0x5   : > { %s216_s20 = smul.u32 (!%p189_p2), 3, %s459_s19  ;;  %vm232_vm0 = vcmask (!%p189_p2), 261120   ;;  %v506_v21 = vld [vmem:[%s605_s3] sm:$0xff] (!%p189_p2)   ;;  %v507_v22 = vld [vmem:[%s605_s3 + $0x8] sm:$0xff] (!%p189_p2)  }
   0x6   : > { %192 = sbr.rel (%p189_p2) target bundleno = 575 (0x23f), region = 40  ;;  %490 = vmatprep.subr.bf16.mxu0 (!%p189_p2), %v506_v21  ;;  %v466_v34 = vld [vmem:[%s603_s1] ss:$0 sm:$0xff] (!%p189_p2) }
   0x7   : > { %p217_p3 = scmp.lt.s32.totalorder (!%p189_p2), %s216_s20, 5  ;;  %491 = vmatpush3.bf16.msra.mxu0 (!%p189_p2), %v506_v21  ;;  %v467_v40 = vld [vmem:[%s604_s2] ss:$0 sm:$0xff] (!%p189_p2) }
   0x8   : > { %492 = vmatprep.subr.bf16.mxu0 (!%p189_p2), %v507_v22  ;;  %v468_v48 = vld [vmem:[%s606_s4] ss:$0 sm:$0xff] (!%p189_p2) }
   0xb   : > { %493 = vmatpush3.bf16.msra.mxu0 (!%p189_p2), %v507_v22 }
   0xd   : > { %s609_s20 = smov (!%p217_p3, %s216_s20), 5 }
   0xe   : > { %s464_s21 = sshll.u32 %s609_s20, 3  ;;  %s465_s10 = sshll.u32 %s609_s20, 2 }
   0xf   : > { %s220_s24 = scalar_lea.vmem %s602_s0, %s464_s21  ;;  %s226_s13 = scalar_lea.vmem %s607_s5, %s465_s10 }
  0x10   : > { %v229_v0 = vld [vmem:[%s220_s24] sm:$0xff]  ;;  %v231_v1 = vld [vmem:[%s220_s24 + $0x10] sm:$0xff]  ;;  %v230_v2 = vld [vmem:[%s220_s24 + $0x8] sm:$0xff] }
  0x11   : > { %v233_v3 = vsel %vm232_vm0, %v229_v0, 0.0  ;;  %v239_v4 = vsel %vm232_vm0, %v231_v1, 0.0  ;;  %v236_v5 = vsel %vm232_vm0, %v230_v2, 0.0 }
  0x12   : > { %234 = vadd.xlane.f32.xlu0 %v233_v3  ;;  %240 = vadd.xlane.f32.xlu1 %v239_v4 }
  0x16   : > { %237 = vadd.xlane.f32.xlu0 %v236_v5 }
  0x9f   : > { %v235_v6 = vpop.xlane.xlu0 %234  ;;  %v241_v7 = vpop.xlane.xlu1 %240 }
  0xa0   : > { %v243_v8 = vmul.f32 0.03125, %v235_v6  ;;  %v245_v9 = vmul.f32 0.03125, %v241_v7 }
  0xa2   : > { %v246_v10 = vsub.f32 %v229_v0, %v243_v8  ;;  %v248_v11 = vsub.f32 %v231_v1, %v245_v9 }
  0xa3   : > { %v238_v12 = vpop.xlane.xlu0 %237 }
  0xa4   : > { %v244_v13 = vmul.f32 0.03125, %v238_v12  ;;  %v249_v14 = vmul.f32 %v246_v10, %v246_v10  ;;  %v251_v15 = vmul.f32 %v248_v11, %v248_v11 }
  0xa6   : > { %v247_v16 = vsub.f32 %v230_v2, %v244_v13  ;;  %v252_v17 = vsel %vm232_vm0, %v249_v14, 0.0  ;;  %v258_v18 = vsel %vm232_vm0, %v251_v15, 0.0 }
  0xa7   : > { %253 = vadd.xlane.f32.xlu1 %v252_v17 }
  0xa8   : > { %v250_v19 = vmul.f32 %v247_v16, %v247_v16 }
  0xaa   : > { %v255_v20 = vsel %vm232_vm0, %v250_v19, 0.0 }
  0xab   : > { %259 = vadd.xlane.f32.xlu1 %v258_v18  ;;  %256 = vadd.xlane.f32.xlu0 %v255_v20 }
 0x134   : > { %v254_v23 = vpop.xlane.xlu1 %253 }
 0x135   : > { %v261_v24 = vmul.f32 0.03125, %v254_v23 }
 0x137   : > { %v264_v25 = vadd.f32 1e-06, %v261_v24 }
 0x138   : > { %v260_v26 = vpop.xlane.xlu1 %259  ;;  %v257_v27 = vpop.xlane.xlu0 %256 }
 0x139   : > { %508 = vrsqrt.f32 %v264_v25  ;;  %v263_v28 = vmul.f32 0.03125, %v260_v26  ;;  %v262_v29 = vmul.f32 0.03125, %v257_v27 }
 0x13b   : > { %v266_v30 = vadd.f32 1e-06, %v263_v28  ;;  %v265_v31 = vadd.f32 1e-06, %v262_v29 }
 0x13d   : > { %510 = vrsqrt.f32 %v266_v30 }
 0x13e   : > { %512 = vrsqrt.f32 %v265_v31 }
 0x143   : > { %v509_v32 = vpop.eup %508 }
 0x144   : > { %v270_v33 = vmul.f32 %v509_v32, %v246_v10 }
 0x146   : > { %v280_v39 = vmul.f32 %v466_v34, %v270_v33 }
 0x147   : > { %v511_v35 = vpop.eup %510 }
 0x148   : > { %v513_v36 = vpop.eup %512  ;;  %v272_v37 = vmul.f32 %v511_v35, %v248_v11  ;;  %v290_v44 = vadd.f32 %v467_v40, %v280_v39 }
 0x149   : > { %v271_v38 = vmul.f32 %v513_v36, %v247_v16 }
 0x14a   : > { %v282_v41 = vmul.f32 %v466_v34, %v272_v37 }
 0x14b   : > { %v281_v42 = vmul.f32 %v466_v34, %v271_v38 }
 0x14c   : > { %v292_v43 = vadd.f32 %v467_v40, %v282_v41 }
 0x14d   : > { %v291_v45 = vadd.f32 %v467_v40, %v281_v42 }
 0x14e   : > { %v294_v46 = vpack.c.bf16 %v292_v43, %v292_v43 }
 0x14f   : > { %v293_v47 = vpack.c.bf16 %v291_v45, %v290_v44 }
 0x151   : > { %494 = vmatprep.mubr.msk.bf16.mxu0 %vm232_vm0, %v293_v47 }
 0x152   : > { %495 = vmatmul.mubr.msk.bf16.vlgmr.msra.gmra.mrb[0].mxu0 %vm232_vm0, %v294_v46 }
 0x225   : > { %v496_v49 = vpop.f32.mrb[0].mxu0 }
 0x226   : > { %v367_v50 = vadd.f32 %v496_v49, %v468_v48  ;;  %v358_v51 = vpop.f32.mrb[1].mxu0 }
 0x227   : > { %v359_v52 = vadd.f32 %v468_v48, %v358_v51  ;;  %v497_v53 = vpop.f32.mrb[2].mxu0 }
 0x228   : > { %v377_v54 = vmul.f32 0.70710677, %v367_v50  ;;  %v361_v55 = vpop.f32.mrb[3].mxu0  ;;  %v374_v61 = vmul.f32 0.5, %v367_v50 }
 0x229   : > { %v375_v56 = vmul.f32 0.70710677, %v359_v52  ;;  %v362_v57 = vadd.f32 %v468_v48, %v361_v55  ;;  %v372_v2 = vmul.f32 0.5, %v359_v52 }
 0x22a   : > { %514 = verf.f32 %v377_v54 }
 0x22b   : > { %516 = verf.f32 %v375_v56  ;;  %v376_v58 = vmul.f32 0.70710677, %v362_v57  ;;  %v373_v3 = vmul.f32 0.5, %v362_v57 }
 0x22d   : > { %518 = verf.f32 %v376_v58 }
 0x234   : > { %v515_v59 = vpop.eup %514 }
 0x235   : > { %v517_v60 = vpop.eup %516  ;;  %v383_v62 = vadd.f32 1.0, %v515_v59 }
 0x236   : > { %v381_v63 = vadd.f32 1.0, %v517_v60 }
 0x237   : > { %v519_v0 = vpop.eup %518  ;;  %v386_v1 = vmul.f32 %v383_v62, %v374_v61 }
 0x238   : > { %v382_v4 = vadd.f32 1.0, %v519_v0  ;;  %v384_v6 = vmul.f32 %v381_v63, %v372_v2 }
 0x239   : > { %v480_v5 = vpack.c.bf16 %v386_v1, %v386_v1 }
 0x23a   : > { %v385_v7 = vmul.f32 %v382_v4, %v373_v3 }
 0x23b   : > { %402 = vst [vmem:[%s226_s13 + $0x8] sm:$0xf] %v480_v5 }
 0x23c   : > { %v484_v8 = vpack.c.bf16 %v385_v7, %v384_v6 }
 0x23e   : > { %485 = vst [vmem:[%s226_s13] sm:$0xff] %v484_v8  }
 0x23f PF: > { %s15_s18 = sadd.s32 1, %s526_s18  }
 0x240   : > { %p12_p4 = scmp.ge.s32.totalorder %s15_s18, 4  }
 0x242   :  { %14 = sbr.rel (!%p12_p4) target bundleno = 1 (0x1), region = 70 }

// kernel: _lambda_.25
= control target key start
LH: loop header
LB: loop body
LE: loop exit
PB: predicated region body
PF: predicated region fallthrough
CT: control target
= control target key end

     0   :  { %s350_s12 = smov 0   ;;  %s389_s0 = inlined_call_operand.vmem [shape: f32[48,32], index: 0, kind: input, shape index: {}]   ;;  %s390_s1 = inlined_call_operand.vmem [shape: f32[1,32], index: 1, kind: input, shape index: {}]   ;;  %s391_s2 = inlined_call_operand.vmem [shape: f32[1,32], index: 2, kind: input, shape index: {}]   ;;  %s392_s3 = inlined_call_operand.vmem [shape: f32[48,32], index: 3, kind: output, shape index: {}]  }
   0x1 LB: > { %s297_s13 = sadd.s32 4294967295, %s328_s12   ;;  %p301_p0 = scmp.ge.s32.totalorder %s328_s12, 1  ;;  %s328_s12 = sphi %s350_s12, %s13_s12  }
   0x2   : > { %p138_p1 = scmp.lt.s32.totalorder %s328_s12, 3 }
   0x4   : > { %p139_p2 = pnand %p301_p0, %p138_p1 }
   0x5   : > { %s162_s14 = smul.u32 (!%p139_p2), 3, %s297_s13  ;;  %vm177_vm0 = vcmask (!%p139_p2), 261120   ;;  %v304_v31 = vld [vmem:[%s390_s1] ss:$0 sm:$0xff] (!%p139_p2) }
   0x6   : > { %142 = sbr.rel (%p139_p2) target bundleno = 336 (0x150), region = 32  ;;  %v305_v33 = vld [vmem:[%s391_s2] ss:$0 sm:$0xff] (!%p139_p2) }
   0x7   : > { %p163_p3 = scmp.lt.s32.totalorder (!%p139_p2), %s162_s14, 5 }
   0xd   : > { %s394_s14 = smov (!%p163_p3, %s162_s14), 5 }
   0xe   : > { %s302_s15 = sshll.u32 %s394_s14, 3 }
   0xf   : > { %s166_s18 = scalar_lea.vmem %s389_s0, %s302_s15  ;;  %s172_s25 = scalar_lea.vmem %s392_s3, %s302_s15 }
  0x10   : > { %v174_v0 = vld [vmem:[%s166_s18] sm:$0xff]  ;;  %v176_v1 = vld [vmem:[%s166_s18 + $0x10] sm:$0xff]  ;;  %v175_v2 = vld [vmem:[%s166_s18 + $0x8] sm:$0xff] }
  0x11   : > { %v178_v3 = vsel %vm177_vm0, %v174_v0, 0.0  ;;  %v184_v4 = vsel %vm177_vm0, %v176_v1, 0.0  ;;  %v181_v5 = vsel %vm177_vm0, %v175_v2, 0.0 }
  0x12   : > { %179 = vadd.xlane.f32.xlu0 %v178_v3  ;;  %185 = vadd.xlane.f32.xlu1 %v184_v4 }
  0x16   : > { %182 = vadd.xlane.f32.xlu0 %v181_v5 }
  0x9f   : > { %v180_v6 = vpop.xlane.xlu0 %179  ;;  %v186_v7 = vpop.xlane.xlu1 %185 }
  0xa0   : > { %v188_v8 = vmul.f32 0.03125, %v180_v6  ;;  %v190_v9 = vmul.f32 0.03125, %v186_v7 }
  0xa2   : > { %v191_v10 = vsub.f32 %v174_v0, %v188_v8  ;;  %v193_v11 = vsub.f32 %v176_v1, %v190_v9 }
  0xa3   : > { %v183_v12 = vpop.xlane.xlu0 %182 }
  0xa4   : > { %v189_v13 = vmul.f32 0.03125, %v183_v12  ;;  %v194_v14 = vmul.f32 %v191_v10, %v191_v10  ;;  %v196_v15 = vmul.f32 %v193_v11, %v193_v11 }
  0xa6   : > { %v192_v16 = vsub.f32 %v175_v2, %v189_v13  ;;  %v197_v17 = vsel %vm177_vm0, %v194_v14, 0.0  ;;  %v203_v18 = vsel %vm177_vm0, %v196_v15, 0.0 }
  0xa7   : > { %198 = vadd.xlane.f32.xlu1 %v197_v17 }
  0xa8   : > { %v195_v19 = vmul.f32 %v192_v16, %v192_v16 }
  0xaa   : > { %v200_v20 = vsel %vm177_vm0, %v195_v19, 0.0 }
  0xab   : > { %204 = vadd.xlane.f32.xlu1 %v203_v18  ;;  %201 = vadd.xlane.f32.xlu0 %v200_v20 }
 0x134   : > { %v199_v21 = vpop.xlane.xlu1 %198 }
 0x135   : > { %v206_v22 = vmul.f32 0.03125, %v199_v21 }
 0x137   : > { %v209_v23 = vadd.f32 1e-06, %v206_v22 }
 0x138   : > { %v205_v24 = vpop.xlane.xlu1 %204  ;;  %v202_v25 = vpop.xlane.xlu0 %201 }
 0x139   : > { %316 = vrsqrt.f32 %v209_v23  ;;  %v208_v26 = vmul.f32 0.03125, %v205_v24  ;;  %v207_v27 = vmul.f32 0.03125, %v202_v25 }
 0x13b   : > { %v211_v28 = vadd.f32 1e-06, %v208_v26  ;;  %v210_v29 = vadd.f32 1e-06, %v207_v27 }
 0x13d   : > { %318 = vrsqrt.f32 %v211_v28 }
 0x13e   : > { %320 = vrsqrt.f32 %v210_v29 }
 0x143   : > { %v317_v30 = vpop.eup %316 }
 0x144   : > { %v215_v32 = vmul.f32 %v317_v30, %v191_v10 }
 0x146   : > { %v225_v34 = vmul.f32 %v304_v31, %v215_v32 }
 0x147   : > { %v319_v35 = vpop.eup %318 }
 0x148   : > { %v321_v36 = vpop.eup %320  ;;  %v235_v37 = vadd.f32 %v305_v33, %v225_v34  ;;  %v217_v38 = vmul.f32 %v319_v35, %v193_v11 }
 0x149   : > { %v216_v39 = vmul.f32 %v321_v36, %v192_v16 }
 0x14a   : > { %238 = vst.msk [vmem:[%s172_s25] sm:$0xff] %vm177_vm0, %v235_v37  ;;  %v227_v40 = vmul.f32 %v304_v31, %v217_v38 }
 0x14b   : > { %v226_v41 = vmul.f32 %v304_v31, %v216_v39 }
 0x14c   : > { %v237_v42 = vadd.f32 %v305_v33, %v227_v40 }
 0x14d   : > { %v236_v43 = vadd.f32 %v305_v33, %v226_v41 }
 0x14e   : > { %240 = vst.msk [vmem:[%s172_s25 + $0x10] sm:$0xff] %vm177_vm0, %v237_v42 }
 0x14f   : > { %239 = vst.msk [vmem:[%s172_s25 + $0x8] sm:$0xff] %vm177_vm0, %v236_v43 }
 0x150 PF: > { %s13_s12 = sadd.s32 1, %s328_s12  }
 0x151   : > { %p10_p4 = scmp.ge.s32.totalorder %s13_s12, 4  }
 0x153   :  { %12 = sbr.rel (!%p10_p4) target bundleno = 1 (0x1), region = 62 }

// kernel: _lambda_.18
= control target key start
LH: loop header
LB: loop body
LE: loop exit
PB: predicated region body
PF: predicated region fallthrough
CT: control target
= control target key end

     0   :  { %s536_s15 = smov 0   ;;  %s587_s0 = inlined_call_operand.vmem [shape: bf16[48,128], index: 0, kind: input, shape index: {}]   ;;  %s588_s1 = inlined_call_operand.vmem [shape: bf16[128,32], index: 1, kind: input, shape index: {}]   ;;  %s589_s2 = inlined_call_operand.vmem [shape: f32[1,32], index: 2, kind: input, shape index: {}]   ;;  %s590_s3 = inlined_call_operand.vmem [shape: f32[48,32], index: 3, kind: input, shape index: {}]   ;;  %s591_s4 = inlined_call_operand.vmem [shape: f32[48,32], index: 4, kind: output, shape index: {}]  }
   0x1 LB: > { %s434_s16 = sadd.s32 4294967295, %s509_s15   ;;  %p438_p0 = scmp.ge.s32.totalorder %s509_s15, 1  ;;  %s509_s15 = sphi %s536_s15, %s14_s15  }
   0x2   : > { %p174_p1 = scmp.lt.s32.totalorder %s509_s15, 3 }
   0x4   : > { %p175_p2 = pnand %p438_p0, %p174_p1 }
   0x5   : > { %v493_v0 = vld [vmem:[%s588_s1] sm:$0xff] (!%p175_p2)   ;;  %s205_s19 = smul.u32 (!%p175_p2), 3, %s434_s16  ;;  %v494_v1 = vld [vmem:[%s588_s1 + $0x8] sm:$0xff] (!%p175_p2)   ;;  %v495_v2 = vld [vmem:[%s588_s1 + $0x10] sm:$0xff] (!%p175_p2)   ;;  %vm362_vm0 = vcmask (!%p175_p2), 261120  }
   0x6   : > { %178 = sbr.rel (%p175_p2) target bundleno = 258 (0x102), region = 36  ;;  %465 = vmatprep.subr.bf16.mxu0 (!%p175_p2), %v493_v0  ;;  %v496_v3 = vld [vmem:[%s588_s1 + $0x18] sm:$0xff] (!%p175_p2)   ;;  %v497_v5 = vld [vmem:[%s588_s1 + $0x20] sm:$0xff] (!%p175_p2)   ;;  %v498_v6 = vld [vmem:[%s588_s1 + $0x28] sm:$0xff] (!%p175_p2)  }
   0x7   : > { %p206_p3 = scmp.lt.s32.totalorder (!%p175_p2), %s205_s19, 5  ;;  %466 = vmatpush3.bf16.msra.mxu0 (!%p175_p2), %v493_v0  ;;  %v499_v7 = vld [vmem:[%s588_s1 + $0x30] sm:$0xff] (!%p175_p2)   ;;  %v500_v8 = vld [vmem:[%s588_s1 + $0x38] sm:$0xff] (!%p175_p2)   ;;  %v442_v10 = vld [vmem:[%s589_s2] ss:$0 sm:$0xff] (!%p175_p2) }
   0x8   : > { %467 = vmatprep.subr.bf16.mxu0 (!%p175_p2), %v494_v1 }
   0xb   : > { %468 = vmatpush3.bf16.msra.mxu0 (!%p175_p2), %v494_v1 }
   0xc   : > { %469 = vmatprep.subr.bf16.mxu0 (!%p175_p2), %v495_v2 }
   0xd   : > { %s593_s19 = smov (!%p206_p3, %s205_s19), 5 }
   0xe   : > { %s439_s24 = sshll.u32 %s593_s19, 2  ;;  %s440_s12 = sshll.u32 %s593_s19, 3 }
   0xf   : > { %s209_s29 = scalar_lea.vmem %s587_s0, %s439_s24  ;;  %470 = vmatpush3.bf16.msra.mxu0 %v495_v2  ;;  %s215_s16 = scalar_lea.vmem %s590_s3, %s440_s12 }
  0x10   : > { %v501_v4 = vld [vmem:[%s209_s29] sm:$0xff]   ;;  %471 = vmatprep.subr.bf16.mxu0 %v496_v3  ;;  %v502_v9 = vld [vmem:[%s209_s29 + $0x8] ss:$0 sps:$4 sm:$0xff]   ;;  %v358_v12 = vld [vmem:[%s215_s16 + $0x10] sm:$0xff]  ;;  %s221_s22 = scalar_lea.vmem %s591_s4, %s440_s12 }
  0x11   : > { %481 = vmatprep.mubr.bf16.mxu0 %v501_v4  ;;  %v356_v15 = vld [vmem:[%s215_s16] sm:$0xff]  ;;  %v357_v20 = vld [vmem:[%s215_s16 + $0x8] sm:$0xff] }
  0x13   : > { %472 = vmatpush3.bf16.msra.mxu0 %v496_v3 }
  0x14   : > { %473 = vmatprep.subr.bf16.mxu0 %v497_v5 }
  0x17   : > { %474 = vmatpush3.bf16.msra.mxu0 %v497_v5 }
  0x18   : > { %475 = vmatprep.subr.bf16.mxu0 %v498_v6 }
  0x1b   : > { %476 = vmatpush3.bf16.msra.mxu0 %v498_v6 }
  0x1c   : > { %477 = vmatprep.subr.bf16.mxu0 %v499_v7 }
  0x1f   : > { %478 = vmatpush3.bf16.msra.mxu0 %v499_v7 }
  0x20   : > { %479 = vmatprep.subr.bf16.mxu0 %v500_v8 }
  0x23   : > { %480 = vmatpush3.bf16.msra.mxu0 %v500_v8 }
  0x26   : > { %482 = vmatmul.mubr.bf16.vlgmr.msra.gmra.mrb[0].mxu0 %v502_v9 }
  0xf9   : > { %v483_v11 = vpop.f32.mrb[0].mxu0 }
  0xfa   : > { %v351_v13 = vadd.f32 %v483_v11, %v442_v10  ;;  %v342_v14 = vpop.f32.mrb[1].mxu0 }
  0xfb   : > { %v343_v16 = vadd.f32 %v442_v10, %v342_v14  ;;  %v484_v17 = vpop.f32.mrb[2].mxu0 }
  0xfc   : > { %v361_v18 = vadd.f32 %v358_v12, %v351_v13  ;;  %v345_v19 = vpop.f32.mrb[3].mxu0 }
  0xfd   : > { %v359_v21 = vadd.f32 %v356_v15, %v343_v16  ;;  %v346_v22 = vadd.f32 %v442_v10, %v345_v19 }
  0xfe   : > { %365 = vst.msk [vmem:[%s221_s22 + $0x10] sm:$0xff] %vm362_vm0, %v361_v18 }
  0xff   : > { %363 = vst.msk [vmem:[%s221_s22] sm:$0xff] %vm362_vm0, %v359_v21  ;;  %v360_v23 = vadd.f32 %v357_v20, %v346_v22 }
 0x101   : > { %364 = vst.msk [vmem:[%s221_s22 + $0x8] sm:$0xff] %vm362_vm0, %v360_v23 }
 0x102 PF: > { %s14_s15 = sadd.s32 1, %s509_s15  }
 0x103   : > { %p11_p4 = scmp.ge.s32.totalorder %s14_s15, 4  }
 0x105   :  { %13 = sbr.rel (!%p11_p4) target bundleno = 1 (0x1), region = 69 }

// kernel: _lambda_.15
= control target key start
LH: loop header
LB: loop body
LE: loop exit
PB: predicated region body
PF: predicated region fallthrough
CT: control target
= control target key end

     0   :  { %s3691_s6 = smov 0   ;;  %s4487_s0 = inlined_call_operand.vmem [shape: bf16[2,24,12,8], index: 0, kind: input, shape index: {}]   ;;  %s4488_s1 = inlined_call_operand.vmem [shape: bf16[2,24,32], index: 1, kind: output, shape index: {}]  }
   0x1 LB: > { %s2876_s7 = sadd.s32 4294967295, %s3676_s6   ;;  %p2880_p0 = scmp.ge.s32.totalorder %s3676_s6, 1  ;;  %s3676_s6 = sphi %s3691_s6, %s11_s6  }
   0x2   : > { %p87_p1 = scmp.lt.s32.totalorder %s3676_s6, 3 }
   0x4   : > { %p88_p2 = pnand %p2880_p0, %p87_p1 }
   0x5   : > { %p107_p3 = scmp.lt.s32.totalorder (!%p88_p2), %s2876_s7, 1  ;;  %vm290_vm0 = vcmask (!%p88_p2), 1041409   ;;  %vm293_vm1 = vcmask (!%p88_p2), 1042434   ;;  %vm296_vm2 = vcmask (!%p88_p2), 1043459   ;;  %vm299_vm3 = vcmask (!%p88_p2), 1044484   ;;  %s3678_s12 = smov (!%p88_p2), 8  }
   0x6   : > { %91 = sbr.rel (%p88_p2) target bundleno = 1968 (0x7b0), region = 24  ;;  %vm302_vm4 = vcmask (!%p88_p2), 1045509   ;;  %vm305_vm5 = vcmask (!%p88_p2), 1046534   ;;  %vm308_vm6 = vcmask (!%p88_p2), 1047559   ;;  %vm480_vm7 = vcmask (!%p88_p2), 64512   ;;  %s3679_s13 = smov (!%p88_p2), 16  }
   0x7   : > { %vm547_vm9 = vcmask (!%p88_p2), 195584   ;;  %vm724_vm10 = vcmask (!%p88_p2), 1043456   ;;  %vm795_vm11 = vcmask (!%p88_p2), 60416   ;;  %vm1469_vm12 = vcmask (!%p88_p2), 126016   ;;  %s3680_s18 = smov (!%p88_p2), 24  }
   0x8   : > { %vm2143_vm13 = vcmask (!%p88_p2), 191616   ;;  %vm2817_vm14 = vcmask (!%p88_p2), 257216  }
   0xd   : > { %s4490_s7 = smov (!%p107_p3, %s2876_s7), 1 }
   0xe   : > { %s3321_s8 = smul.u32 192, %s4490_s7 }
   0xf   : > { %s3322_s14 = smul.u32 12, %s4490_s7 }
  0x10   : > { %s3705_s11 = scalar_lea.vmem %s4487_s0, %s3321_s8 }
  0x11   : > { %v3334_v0 = vld [vmem:[%s3705_s11] ss:$0 sps:$4 sm:$0x44]   ;;  %v3335_v1 = vld [vmem:[%s3705_s11 + $0x8] ss:$0 sps:$4 sm:$0x44]   ;;  %s4462_s17 = scalar_lea.vmem %s4488_s1, %s3322_s14 }
  0x12   : > { %v3336_v2 = vld [vmem:[%s3705_s11 + $0x10] ss:$0 sps:$4 sm:$0x44]   ;;  %v3337_v3 = vld [vmem:[%s3705_s11 + $0x18] ss:$0 sps:$4 sm:$0x44]   ;;  %v412_v9 = vunpack.c.l.b16 %v3334_v0  ;;  %v413_v10 = vunpack.c.l.b16 %v3335_v1 }
  0x13   : > { %v3338_v4 = vld [vmem:[%s3705_s11 + $0x20] ss:$0 sps:$4 sm:$0x44]   ;;  %v3339_v5 = vld [vmem:[%s3705_s11 + $0x28] ss:$0 sps:$4 sm:$0x44]   ;;  %v414_v13 = vunpack.c.l.b16 %v3336_v2  ;;  %v415_v14 = vunpack.c.l.b16 %v3337_v3 }
  0x14   : > { %v3340_v6 = vld [vmem:[%s3705_s11 + $0x30] ss:$0 sps:$4 sm:$0x44]   ;;  %v3341_v7 = vld [vmem:[%s3705_s11 + $0x38] ss:$0 sps:$4 sm:$0x44]   ;;  %v416_v17 = vunpack.c.l.b16 %v3338_v4  ;;  %v417_v18 = vunpack.c.l.b16 %v3339_v5 }
  0x15   : > { %v3342_v8 = vld [vmem:[%s3705_s11 + $0x40] ss:$0 sps:$4 sm:$0x44]   ;;  %v3343_v11 = vld [vmem:[%s3705_s11 + $0x48] ss:$0 sps:$4 sm:$0x44]   ;;  %v418_v19 = vunpack.c.l.b16 %v3340_v6  ;;  %v419_v22 = vunpack.c.l.b16 %v3341_v7 }
  0x16   : > { %v3344_v12 = vld [vmem:[%s3705_s11 + $0x50] ss:$0 sps:$4 sm:$0x44]   ;;  %v3345_v15 = vld [vmem:[%s3705_s11 + $0x58] ss:$0 sps:$4 sm:$0x44]   ;;  %v420_v23 = vunpack.c.l.b16 %v3342_v8  ;;  %v421_v24 = vunpack.c.l.b16 %v3343_v11 }
  0x17   : > { %v3346_v16 = vld [vmem:[%s3705_s11 + $0x60] ss:$0 sps:$4 sm:$0x44]   ;;  %v3347_v20 = vld [vmem:[%s3705_s11 + $0x68] ss:$0 sps:$4 sm:$0x44]   ;;  %v422_v25 = vunpack.c.l.b16 %v3344_v12  ;;  %v423_v27 = vunpack.c.l.b16 %v3345_v15 }
  0x18   : > { %v3348_v21 = vld [vmem:[%s3705_s11 + $0x70] ss:$0 sps:$4 sm:$0x44]   ;;  %v3349_v26 = vld [vmem:[%s3705_s11 + $0x78] ss:$0 sps:$4 sm:$0x44]   ;;  %v424_v28 = vunpack.c.l.b16 %v3346_v16  ;;  %v425_v31 = vunpack.c.l.b16 %v3347_v20 }
  0x19   : > { %v436_v29 = vrot.slane %v412_v9, 4  ;;  %v437_v30 = vrot.slane %v413_v10, 3  ;;  %v426_v32 = vunpack.c.l.b16 %v3348_v21  ;;  %v439_v33 = vrot.slane %v414_v13, 2  ;;  %v3350_v53 = vld [vmem:[%s3705_s11 + $0x80] ss:$0 sps:$4 sm:$0x44]  }
  0x1a   : > { %v441_v34 = vrot.slane %v415_v14, 1  ;;  %v427_v35 = vunpack.c.l.b16 %v3349_v26  ;;  %v444_v37 = vrot.slane %v417_v18, 7  ;;  %v446_v38 = vrot.slane %v418_v19, 6  ;;  %v3351_v54 = vld [vmem:[%s3705_s11 + $0x88] ss:$0 sps:$4 sm:$0x44]  }
  0x1b   : > { %v438_v36 = vsel %vm290_vm0, %v437_v30, %v436_v29  ;;  %v448_v40 = vrot.slane %v419_v22, 5  ;;  %v450_v41 = vrot.slane %v420_v23, 4  ;;  %v451_v42 = vrot.slane %v421_v24, 3  ;;  %v3352_v57 = vld [vmem:[%s3705_s11 + $0x90] ss:$0 sps:$4 sm:$0x44]  }
  0x1c   : > { %v440_v39 = vsel %vm293_vm1, %v439_v33, %v438_v36  ;;  %v453_v44 = vrot.slane %v422_v25, 2  ;;  %v455_v45 = vrot.slane %v423_v27, 1  ;;  %v458_v46 = vrot.slane %v425_v31, 7  ;;  %v3353_v58 = vld [vmem:[%s3705_s11 + $0x98] ss:$0 sps:$4 sm:$0x44]  }
  0x1d   : > { %v442_v43 = vsel %vm296_vm2, %v441_v34, %v440_v39  ;;  %v452_v48 = vsel %vm290_vm0, %v451_v42, %v450_v41  ;;  %v460_v49 = vrot.slane %v426_v32, 6  ;;  %v462_v50 = vrot.slane %v427_v35, 5  ;;  %v3354_v60 = vld [vmem:[%s3705_s11 + $0xa0] ss:$0 sps:$4 sm:$0x44]  }
  0x1e   : > { %v443_v47 = vsel %vm299_vm3, %v416_v17, %v442_v43  ;;  %v454_v52 = vsel %vm293_vm1, %v453_v44, %v452_v48  ;;  %v3355_v61 = vld [vmem:[%s3705_s11 + $0xa8] ss:$0 sps:$4 sm:$0x44]   ;;  %v428_v62 = vunpack.c.l.b16 %v3350_v53  ;;  %v429_v63 = vunpack.c.l.b16 %v3351_v54  ;;  %v3356_v2 = vld [vmem:[%s3705_s11 + $0xb0] ss:$0 sps:$4 sm:$0x44]  }
  0x1f   : > { %v445_v51 = vsel %vm302_vm4, %v444_v37, %v443_v47  ;;  %v456_v56 = vsel %vm296_vm2, %v455_v45, %v454_v52  ;;  %v3357_v3 = vld [vmem:[%s3705_s11 + $0xb8] ss:$0 sps:$4 sm:$0x44]   ;;  %v430_v4 = vunpack.c.l.b16 %v3352_v57  ;;  %v431_v5 = vunpack.c.l.b16 %v3353_v58  ;;  %v3358_v26 = vld [vmem:[%s3705_s11] ss:$0 sps:$4 sm:$0x11]  }
  0x20   : > { %v447_v55 = vsel %vm305_vm5, %v446_v38, %v445_v51  ;;  %v457_v59 = vsel %vm299_vm3, %v424_v28, %v456_v56  ;;  %v433_v7 = vunpack.c.l.b16 %v3355_v61  ;;  %v464_v8 = vrot.slane %v428_v62, 4  ;;  %v3359_v28 = vld [vmem:[%s3705_s11 + $0x8] ss:$0 sps:$4 sm:$0x11]  }
  0x21   : > { %v449_v0 = vsel %vm308_vm6, %v448_v40, %v447_v55  ;;  %v459_v1 = vsel %vm302_vm4, %v458_v46, %v457_v59  ;;  %v434_v10 = vunpack.c.l.b16 %v3356_v2  ;;  %v435_v11 = vunpack.c.l.b16 %v3357_v3  ;;  %v3360_v29 = vld [vmem:[%s3705_s11 + $0x10] ss:$0 sps:$4 sm:$0x11]   ;;  %v3361_v31 = vld [vmem:[%s3705_s11 + $0x18] ss:$0 sps:$4 sm:$0x11]  }
  0x22   : > { %v461_v6 = vsel %vm305_vm5, %v460_v49, %v459_v1  ;;  %v465_v12 = vrot.slane %v429_v63, 3  ;;  %v432_v14 = vunpack.c.l.b16 %v3354_v60  ;;  %v467_v15 = vrot.slane %v430_v4, 2  ;;  %v3362_v32 = vld [vmem:[%s3705_s11 + $0x20] ss:$0 sps:$4 sm:$0x11]  }
  0x23   : > { %v463_v9 = vsel %vm308_vm6, %v462_v50, %v461_v6  ;;  %v469_v16 = vrot.slane %v431_v5, 1  ;;  %v472_v18 = vrot.slane %v433_v7, 7  ;;  %v474_v19 = vrot.slane %v434_v10, 6  ;;  %v3363_v34 = vld [vmem:[%s3705_s11 + $0x28] ss:$0 sps:$4 sm:$0x11]  }
  0x24   : > { %v478_v13 = vpack.c.b16 %v463_v9, %v449_v0  ;;  %v466_v17 = vsel %vm290_vm0, %v465_v12, %v464_v8  ;;  %v476_v22 = vrot.slane %v435_v11, 5  ;;  %v3364_v35 = vld [vmem:[%s3705_s11 + $0x30] ss:$0 sps:$4 sm:$0x11]   ;;  %v266_v36 = vunpack.c.l.b16 %v3359_v28 }
  0x25   : > { %v468_v21 = vsel %vm293_vm1, %v467_v15, %v466_v17  ;;  %v3365_v37 = vld [vmem:[%s3705_s11 + $0x38] ss:$0 sps:$4 sm:$0x11]   ;;  %v3366_v38 = vld [vmem:[%s3705_s11 + $0x40] ss:$0 sps:$4 sm:$0x11]   ;;  %v265_v39 = vunpack.c.l.b16 %v3358_v26  ;;  %v267_v42 = vunpack.c.l.b16 %v3360_v29  ;;  %v268_v43 = vunpack.c.l.b16 %v3361_v31 }
  0x26   : > { %3309 = vmatprep.subr.msk.bf16.mxu0 %vm480_vm7, %v478_v13  ;;  %v488_v20 = vsel %vm480_vm7, %v478_v13, 0  ;;  %v470_v23 = vsel %vm296_vm2, %v469_v16, %v468_v21  ;;  %v3367_v41 = vld [vmem:[%s3705_s11 + $0x48] ss:$0 sps:$4 sm:$0x11]   ;;  %v289_v44 = vrot.slane %v266_v36, 7  ;;  %v269_v47 = vunpack.c.l.b16 %v3362_v32 }
  0x27   : > { %3246 = vmatpush3.bf16.xpose.msra.mxu0 %v488_v20  ;;  %v471_v24 = vsel %vm299_vm3, %v432_v14, %v470_v23  ;;  %v3368_v45 = vld [vmem:[%s3705_s11 + $0x50] ss:$0 sps:$4 sm:$0x11]   ;;  %v3369_v46 = vld [vmem:[%s3705_s11 + $0x58] ss:$0 sps:$4 sm:$0x11]   ;;  %v270_v48 = vunpack.c.l.b16 %v3363_v34  ;;  %v271_v51 = vunpack.c.l.b16 %v3364_v35  ;;  %v272_v52 = vunpack.c.l.b16 %v3365_v37 }
  0x28   : > { %v473_v25 = vsel %vm302_vm4, %v472_v18, %v471_v24  ;;  %v3370_v49 = vld [vmem:[%s3705_s11 + $0x60] ss:$0 sps:$4 sm:$0x11]   ;;  %v3371_v50 = vld [vmem:[%s3705_s11 + $0x68] ss:$0 sps:$4 sm:$0x11]   ;;  %v274_v53 = vunpack.c.l.b16 %v3367_v41  ;;  %v273_v56 = vunpack.c.l.b16 %v3366_v38  ;;  %v275_v57 = vunpack.c.l.b16 %v3368_v45 }
  0x29   : > { %v475_v27 = vsel %vm305_vm5, %v474_v19, %v473_v25  ;;  %v3372_v54 = vld [vmem:[%s3705_s11 + $0x70] ss:$0 sps:$4 sm:$0x11]   ;;  %v3373_v55 = vld [vmem:[%s3705_s11 + $0x78] ss:$0 sps:$4 sm:$0x11]   ;;  %v276_v58 = vunpack.c.l.b16 %v3369_v46  ;;  %v291_v59 = vsel %vm290_vm0, %v289_v44, %v265_v39  ;;  %v277_v60 = vunpack.c.l.b16 %v3370_v49 }
  0x2a   : > { %v477_v30 = vsel %vm308_vm6, %v476_v22, %v475_v27  ;;  %v278_v61 = vunpack.c.l.b16 %v3371_v50  ;;  %v292_v62 = vrot.slane %v267_v42, 6  ;;  %v295_v63 = vrot.slane %v268_v43, 5  ;;  %v3374_v19 = vld [vmem:[%s3705_s11 + $0x80] ss:$0 sps:$4 sm:$0x11]  }
  0x2b   : > { %v479_v33 = vpack.c.b16 %v477_v30, %v477_v30  ;;  %v279_v0 = vunpack.c.l.b16 %v3372_v54  ;;  %v280_v1 = vunpack.c.l.b16 %v3373_v55  ;;  %v298_v2 = vrot.slane %v269_v47, 4  ;;  %v3375_v22 = vld [vmem:[%s3705_s11 + $0x88] ss:$0 sps:$4 sm:$0x11]  }
  0x2c   : > { %v301_v3 = vrot.slane %v270_v48, 3  ;;  %v294_v4 = vsel %vm293_vm1, %v292_v62, %v291_v59  ;;  %v304_v5 = vrot.slane %v271_v51, 2  ;;  %v307_v6 = vrot.slane %v272_v52, 1  ;;  %v3376_v23 = vld [vmem:[%s3705_s11 + $0x90] ss:$0 sps:$4 sm:$0x11]  }
  0x2d   : > { %3310 = vmatprep.subr.msk.bf16.mxu0 %vm480_vm7, %v479_v33  ;;  %v491_v40 = vsel %vm480_vm7, %v479_v33, 0  ;;  %v310_v7 = vrot.slane %v274_v53, 7  ;;  %v297_v8 = vsel %vm296_vm2, %v295_v63, %v294_v4  ;;  %v312_v9 = vrot.slane %v275_v57, 6  ;;  %v3377_v26 = vld [vmem:[%s3705_s11 + $0x98] ss:$0 sps:$4 sm:$0x11]  }
  0x2e   : > { %v314_v10 = vrot.slane %v276_v58, 5  ;;  %v316_v11 = vrot.slane %v277_v60, 4  ;;  %v300_v12 = vsel %vm299_vm3, %v298_v2, %v297_v8  ;;  %v318_v14 = vrot.slane %v278_v61, 3  ;;  %v3378_v27 = vld [vmem:[%s3705_s11 + $0xa0] ss:$0 sps:$4 sm:$0x11]  }
  0x2f   : > { %3248 = vmatpush3.bf16.xpose.msra.mxu0 %v491_v40  ;;  %v311_v13 = vsel %vm290_vm0, %v310_v7, %v273_v56  ;;  %v320_v15 = vrot.slane %v279_v0, 2  ;;  %v303_v16 = vsel %vm302_vm4, %v301_v3, %v300_v12  ;;  %v322_v18 = vrot.slane %v280_v1, 1  ;;  %v3379_v29 = vld [vmem:[%s3705_s11 + $0xa8] ss:$0 sps:$4 sm:$0x11]  }
  0x30   : > { %v313_v17 = vsel %vm293_vm1, %v312_v9, %v311_v13  ;;  %v306_v20 = vsel %vm305_vm5, %v304_v5, %v303_v16  ;;  %v3380_v30 = vld [vmem:[%s3705_s11 + $0xb0] ss:$0 sps:$4 sm:$0x11]   ;;  %v281_v31 = vunpack.c.l.b16 %v3374_v19  ;;  %v282_v32 = vunpack.c.l.b16 %v3375_v22  ;;  %v3381_v35 = vld [vmem:[%s3705_s11 + $0xb8] ss:$0 sps:$4 sm:$0x11]  }
  0x31   : > { %v315_v21 = vsel %vm296_vm2, %v314_v10, %v313_v17  ;;  %v309_v24 = vsel %vm308_vm6, %v307_v6, %v306_v20  ;;  %v283_v33 = vunpack.c.l.b16 %v3376_v23  ;;  %v284_v36 = vunpack.c.l.b16 %v3377_v26  ;;  %v3383_v9 = vld [vmem:[%s3705_s11 + $0xc] ss:$0 sps:$4 sm:$0x11]   ;;  %v3392_v12 = vld [vmem:[%s3705_s11 + $0x54] ss:$0 sps:$4 sm:$0x11]  }
  0x32   : > { %v317_v25 = vsel %vm299_vm3, %v316_v11, %v315_v21  ;;  %v285_v37 = vunpack.c.l.b16 %v3378_v27  ;;  %v286_v39 = vunpack.c.l.b16 %v3379_v29  ;;  %v287_v40 = vunpack.c.l.b16 %v3380_v30  ;;  %v3391_v10 = vld [vmem:[%s3705_s11 + $0x4c] ss:$0 sps:$4 sm:$0x11]   ;;  %v3384_v11 = vld [vmem:[%s3705_s11 + $0x14] ss:$0 sps:$4 sm:$0x11]  }
  0x33   : > { %v319_v28 = vsel %vm302_vm4, %v318_v14, %v317_v25  ;;  %v324_v41 = vrot.slane %v282_v32, 7  ;;  %v288_v43 = vunpack.c.l.b16 %v3381_v35  ;;  %v326_v44 = vrot.slane %v283_v33, 6  ;;  %v3382_v13 = vld [vmem:[%s3705_s11 + $0x4] ss:$0 sps:$4 sm:$0x11]  }
  0x34   : > { %v321_v34 = vsel %vm305_vm5, %v320_v15, %v319_v28  ;;  %v328_v45 = vrot.slane %v284_v36, 5  ;;  %v330_v47 = vrot.slane %v285_v37, 4  ;;  %v332_v48 = vrot.slane %v286_v39, 3  ;;  %v3385_v14 = vld [vmem:[%s3705_s11 + $0x1c] ss:$0 sps:$4 sm:$0x11]  }
  0x35   : > { %v323_v38 = vsel %vm308_vm6, %v322_v18, %v321_v34  ;;  %v325_v46 = vsel %vm290_vm0, %v324_v41, %v281_v31  ;;  %v334_v50 = vrot.slane %v287_v40, 2  ;;  %v336_v51 = vrot.slane %v288_v43, 1  ;;  %v3386_v15 = vld [vmem:[%s3705_s11 + $0x24] ss:$0 sps:$4 sm:$0x11]  }
  0x36   : > { %v338_v42 = vpack.c.b16 %v323_v38, %v309_v24  ;;  %v327_v49 = vsel %vm293_vm1, %v326_v44, %v325_v46  ;;  %v118_v58 = vlaneseq  ;;  %v3390_v16 = vld [vmem:[%s3705_s11 + $0x44] ss:$0 sps:$4 sm:$0x11]   ;;  %v3387_v17 = vld [vmem:[%s3705_s11 + $0x2c] ss:$0 sps:$4 sm:$0x11]   ;;  %v650_v19 = vunpack.c.l.b16 %v3383_v9 }
  0x37   : > { %v329_v52 = vsel %vm296_vm2, %v328_v45, %v327_v49  ;;  %v3393_v18 = vld [vmem:[%s3705_s11 + $0x5c] ss:$0 sps:$4 sm:$0x11]   ;;  %v651_v20 = vunpack.c.l.b16 %v3384_v11  ;;  %v3388_v21 = vld [vmem:[%s3705_s11 + $0x34] ss:$0 sps:$4 sm:$0x11]   ;;  %v652_v23 = vunpack.c.l.b16 %v3385_v14  ;;  %v653_v24 = vunpack.c.l.b16 %v3386_v15 }
  0x38   : > { %3249 = vmatprep.mubr.msk.bf16.mxu0 %vm480_vm7, %v338_v42  ;;  %v331_v53 = vsel %vm299_vm3, %v330_v47, %v329_v52  ;;  %v3803_v59 = vand.u32 127, %v118_v58  ;;  %v3394_v22 = vld [vmem:[%s3705_s11 + $0x64] ss:$0 sps:$4 sm:$0x11]   ;;  %v649_v27 = vunpack.c.l.b16 %v3382_v13  ;;  %v654_v28 = vunpack.c.l.b16 %v3387_v17 }
  0x39   : > { %v333_v54 = vsel %vm302_vm4, %v332_v48, %v331_v53  ;;  %v3389_v25 = vld [vmem:[%s3705_s11 + $0x3c] ss:$0 sps:$4 sm:$0x11]   ;;  %v3395_v26 = vld [vmem:[%s3705_s11 + $0x6c] ss:$0 sps:$4 sm:$0x11]   ;;  %v658_v29 = vunpack.c.l.b16 %v3391_v10  ;;  %v659_v30 = vunpack.c.l.b16 %v3392_v12  ;;  %v655_v33 = vunpack.c.l.b16 %v3388_v21 }
  0x3a   : > { %v335_v55 = vsel %vm305_vm5, %v334_v50, %v333_v54  ;;  %vm120_vm8 = vcmp.lt.s32.totalorder %v3803_v59, 17  ;;  %v3396_v31 = vld [vmem:[%s3705_s11 + $0x74] ss:$0 sps:$4 sm:$0x11]   ;;  %v657_v34 = vunpack.c.l.b16 %v3390_v16  ;;  %v660_v35 = vunpack.c.l.b16 %v3393_v18 }
  0x3b   : > { %v337_v56 = vsel %vm308_vm6, %v336_v51, %v335_v55  ;;  %v3397_v32 = vld [vmem:[%s3705_s11 + $0x7c] ss:$0 sps:$4 sm:$0x11]   ;;  %v661_v36 = vunpack.c.l.b16 %v3394_v22  ;;  %v656_v37 = vunpack.c.l.b16 %v3389_v25  ;;  %v662_v38 = vunpack.c.l.b16 %v3395_v26  ;;  %v3398_v41 = vld [vmem:[%s3705_s11 + $0x84] ss:$0 sps:$4 sm:$0x11]  }
  0x3c   : > { %v339_v57 = vpack.c.b16 %v337_v56, %v337_v56  ;;  %v673_v39 = vrot.slane %v650_v19, 7  ;;  %v675_v40 = vrot.slane %v651_v20, 6  ;;  %v663_v42 = vunpack.c.l.b16 %v3396_v31  ;;  %v3399_v46 = vld [vmem:[%s3705_s11 + $0x8c] ss:$0 sps:$4 sm:$0x11]  }
  0x3d   : > { %v664_v43 = vunpack.c.l.b16 %v3397_v32  ;;  %v677_v44 = vrot.slane %v652_v23, 5  ;;  %v679_v45 = vrot.slane %v653_v24, 4  ;;  %v681_v48 = vrot.slane %v654_v28, 3  ;;  %v3400_v51 = vld [vmem:[%s3705_s11 + $0x94] ss:$0 sps:$4 sm:$0x11]  }
  0x3e   : > { %3250 = vmatmul.mubr.msk.bf16.vlgmr.msra.gmra.mrb[0].mxu0 %vm480_vm7, %v339_v57  ;;  %v674_v47 = vsel %vm290_vm0, %v673_v39, %v649_v27  ;;  %v683_v49 = vrot.slane %v655_v33, 2  ;;  %v685_v50 = vrot.slane %v656_v37, 1  ;;  %v687_v53 = vrot.slane %v658_v29, 7  ;;  %v3401_v56 = vld [vmem:[%s3705_s11 + $0x9c] ss:$0 sps:$4 sm:$0x11]  }
  0x3f   : > { %v676_v52 = vsel %vm293_vm1, %v675_v40, %v674_v47  ;;  %v689_v54 = vrot.slane %v659_v30, 6  ;;  %v691_v55 = vrot.slane %v660_v35, 5  ;;  %v693_v58 = vrot.slane %v661_v36, 4  ;;  %v3404_v9 = vld [vmem:[%s3705_s11 + $0xb4] ss:$0 sps:$4 sm:$0x11]  }
  0x40   : > { %v678_v57 = vsel %vm296_vm2, %v677_v44, %v676_v52  ;;  %v3405_v10 = vld [vmem:[%s3705_s11 + $0xbc] ss:$0 sps:$4 sm:$0x11]   ;;  %v666_v11 = vunpack.c.l.b16 %v3399_v46  ;;  %v667_v12 = vunpack.c.l.b16 %v3400_v51  ;;  %v668_v15 = vunpack.c.l.b16 %v3401_v56  ;;  %v3406_v17 = vld [vmem:[%s3705_s11] ss:$0 sps:$4 sm:$0x44]  }
  0x41   : > { %v671_v21 = vunpack.c.l.b16 %v3404_v9  ;;  %v3407_v22 = vld [vmem:[%s3705_s11 + $0x8] ss:$0 sps:$4 sm:$0x44]   ;;  %v3408_v23 = vld [vmem:[%s3705_s11 + $0x10] ss:$0 sps:$4 sm:$0x44]   ;;  %v672_v26 = vunpack.c.l.b16 %v3405_v10  ;;  %v1083_v46 = vunpack.c.l.b16 %v3406_v17 }
  0x42   : > { %v3409_v24 = vld [vmem:[%s3705_s11 + $0x18] ss:$0 sps:$4 sm:$0x44]   ;;  %v701_v27 = vrot.slane %v666_v11, 7  ;;  %v703_v28 = vrot.slane %v667_v12, 6  ;;  %v705_v31 = vrot.slane %v668_v15, 5  ;;  %v1085_v51 = vunpack.c.l.b16 %v3408_v23 }
  0x43   : > { %v3410_v29 = vld [vmem:[%s3705_s11 + $0x20] ss:$0 sps:$4 sm:$0x44]   ;;  %v3412_v33 = vld [vmem:[%s3705_s11 + $0x30] ss:$0 sps:$4 sm:$0x44]   ;;  %v1086_v52 = vunpack.c.l.b16 %v3409_v24 }
  0x44   : > { %v711_v37 = vrot.slane %v671_v21, 2  ;;  %v3414_v44 = vld [vmem:[%s3705_s11 + $0x40] ss:$0 sps:$4 sm:$0x44]  }
  0x45   : > { %v3419_v12 = vld [vmem:[%s3705_s11 + $0x68] ss:$0 sps:$4 sm:$0x44]   ;;  %v1112_v15 = vrot.slane %v1086_v52, 2 }
  0x46   : > { %v3431_v52 = vld [vmem:[%s3705_s11 + $0x8] ss:$0 sps:$4 sm:$0x11]  }
 0x111   : > { %v3251_v60 = vpop.f32.mrb[0].mxu0 }
 0x112   : > { %v543_v61 = vmul.f32 0.35355338, %v3251_v60  ;;  %v527_v62 = vpop.f32.mrb[1].mxu0  ;;  %v695_v60 = vrot.slane %v662_v38, 3 }
 0x113   : > { %v541_v63 = vmul.f32 0.35355338, %v527_v62  ;;  %v3252_v0 = vpop.f32.mrb[2].mxu0  ;;  %v3402_v62 = vld [vmem:[%s3705_s11 + $0xa4] ss:$0 sps:$4 sm:$0x11]  }
 0x114   : > { %v530_v1 = vpop.f32.mrb[3].mxu0  ;;  %v3808_v2 = vsel %vm120_vm8, %v543_v61, -1e+30  ;;  %v697_v61 = vrot.slane %v663_v42, 2  ;;  %v688_v0 = vsel %vm290_vm0, %v687_v53, %v657_v34  ;;  %v669_v16 = vunpack.c.l.b16 %v3402_v62 }
 0x115   : > { %v542_v3 = vmul.f32 0.35355338, %v530_v1  ;;  %v554_v4 = vsel %vm547_vm9, %v3808_v2, -inf  ;;  %v3814_v5 = vsel %vm120_vm8, %v541_v63, -1e+30  ;;  %v680_v63 = vsel %vm299_vm3, %v679_v45, %v678_v57 }
 0x116   : > { %555 = vmax.xlane.f32.xlu1 %v554_v4  ;;  %v548_v6 = vsel %vm547_vm9, %v3814_v5, -inf  ;;  %v699_v1 = vrot.slane %v664_v43, 1  ;;  %v665_v4 = vunpack.c.l.b16 %v3398_v41  ;;  %v707_v32 = vrot.slane %v669_v16, 4  ;;  %v3411_v38 = vld [vmem:[%s3705_s11 + $0x28] ss:$0 sps:$4 sm:$0x44]  }
 0x117   : > { %549 = vmax.xlane.f32.xlu0 %v548_v6  ;;  %v3820_v7 = vsel %vm120_vm8, %v542_v3, -1e+30  ;;  %v3403_v3 = vld [vmem:[%s3705_s11 + $0xac] ss:$0 sps:$4 sm:$0x11]   ;;  %v682_v6 = vsel %vm302_vm4, %v681_v48, %v680_v63  ;;  %v713_v41 = vrot.slane %v672_v26, 1  ;;  %v1088_v56 = vunpack.c.l.b16 %v3411_v38 }
 0x118   : > { %v551_v8 = vsel %vm547_vm9, %v3820_v7, -inf  ;;  %v684_v13 = vsel %vm305_vm5, %v683_v49, %v682_v6  ;;  %v670_v20 = vunpack.c.l.b16 %v3403_v3  ;;  %v702_v35 = vsel %vm290_vm0, %v701_v27, %v665_v4  ;;  %v3413_v42 = vld [vmem:[%s3705_s11 + $0x38] ss:$0 sps:$4 sm:$0x44]  }
 0x119   : > { %v686_v18 = vsel %vm308_vm6, %v685_v50, %v684_v13  ;;  %v704_v40 = vsel %vm293_vm1, %v703_v28, %v702_v35  ;;  %v3415_v45 = vld [vmem:[%s3705_s11 + $0x48] ss:$0 sps:$4 sm:$0x44]   ;;  %v3416_v48 = vld [vmem:[%s3705_s11 + $0x50] ss:$0 sps:$4 sm:$0x44]   ;;  %v1084_v50 = vunpack.c.l.b16 %v3407_v22  ;;  %v1089_v57 = vunpack.c.l.b16 %v3412_v33 }
 0x11a   : > { %v709_v36 = vrot.slane %v670_v20, 3  ;;  %v706_v43 = vsel %vm296_vm2, %v705_v31, %v704_v40  ;;  %v3417_v49 = vld [vmem:[%s3705_s11 + $0x58] ss:$0 sps:$4 sm:$0x44]   ;;  %v1090_v62 = vunpack.c.l.b16 %v3413_v42  ;;  %v1091_v63 = vunpack.c.l.b16 %v3414_v44 }
 0x11b   : > { %552 = vmax.xlane.f32.xlu0 %v551_v8  ;;  %v690_v8 = vsel %vm293_vm1, %v689_v54, %v688_v0  ;;  %v708_v47 = vsel %vm299_vm3, %v707_v32, %v706_v43  ;;  %v3418_v54 = vld [vmem:[%s3705_s11 + $0x60] ss:$0 sps:$4 sm:$0x44]   ;;  %v1092_v0 = vunpack.c.l.b16 %v3415_v45  ;;  %v1093_v3 = vunpack.c.l.b16 %v3416_v48  ;;  %v3423_v44 = vld [vmem:[%s3705_s11 + $0x88] ss:$0 sps:$4 sm:$0x44]  }
 0x11c   : > { %v692_v14 = vsel %vm296_vm2, %v691_v55, %v690_v8  ;;  %v710_v53 = vsel %vm302_vm4, %v709_v36, %v708_v47  ;;  %v1087_v55 = vunpack.c.l.b16 %v3410_v29  ;;  %v1094_v4 = vunpack.c.l.b16 %v3417_v49  ;;  %v3422_v43 = vld [vmem:[%s3705_s11 + $0x80] ss:$0 sps:$4 sm:$0x44]   ;;  %v3424_v47 = vld [vmem:[%s3705_s11 + $0x90] ss:$0 sps:$4 sm:$0x44]  }
 0x11d   : > { %v694_v19 = vsel %vm299_vm3, %v693_v58, %v692_v14  ;;  %v712_v58 = vsel %vm305_vm5, %v711_v37, %v710_v53  ;;  %v1107_v6 = vrot.slane %v1083_v46, 5  ;;  %v1095_v9 = vunpack.c.l.b16 %v3418_v54  ;;  %v3430_v45 = vld [vmem:[%s3705_s11] ss:$0 sps:$4 sm:$0x11]  }
 0x11e   : > { %v696_v25 = vsel %vm302_vm4, %v695_v60, %v694_v19  ;;  %v3420_v60 = vld [vmem:[%s3705_s11 + $0x70] ss:$0 sps:$4 sm:$0x44]   ;;  %v1108_v11 = vrot.slane %v1084_v50, 4  ;;  %v1110_v14 = vrot.slane %v1085_v51, 3  ;;  %v1114_v16 = vrot.slane %v1087_v55, 1 }
 0x11f   : > { %v698_v30 = vsel %vm305_vm5, %v697_v61, %v696_v25  ;;  %v3421_v61 = vld [vmem:[%s3705_s11 + $0x78] ss:$0 sps:$4 sm:$0x44]   ;;  %v1097_v10 = vunpack.c.l.b16 %v3420_v60  ;;  %v1117_v19 = vrot.slane %v1089_v57, 7  ;;  %v1121_v20 = vrot.slane %v1091_v63, 5 }
 0x120   : > { %v700_v34 = vsel %vm308_vm6, %v699_v1, %v698_v30  ;;  %v714_v1 = vsel %vm308_vm6, %v713_v41, %v712_v58  ;;  %v1098_v13 = vunpack.c.l.b16 %v3421_v61  ;;  %v1122_v22 = vrot.slane %v1092_v0, 4  ;;  %v3438_v46 = vld [vmem:[%s3705_s11 + $0x40] ss:$0 sps:$4 sm:$0x11]  }
 0x121   : > { %v715_v39 = vpack.c.b16 %v700_v34, %v686_v18  ;;  %v716_v8 = vpack.c.b16 %v714_v1, %v714_v1  ;;  %v1109_v18 = vsel %vm290_vm0, %v1108_v11, %v1107_v6  ;;  %v1124_v23 = vrot.slane %v1093_v3, 3  ;;  %v3432_v50 = vld [vmem:[%s3705_s11 + $0x10] ss:$0 sps:$4 sm:$0x11]  }
 0x122   : > { %v1111_v21 = vsel %vm293_vm1, %v1110_v14, %v1109_v18  ;;  %v1126_v24 = vrot.slane %v1094_v4, 2  ;;  %v1128_v26 = vrot.slane %v1095_v9, 1  ;;  %v1096_v27 = vunpack.c.l.b16 %v3419_v12  ;;  %v3440_v51 = vld [vmem:[%s3705_s11 + $0x50] ss:$0 sps:$4 sm:$0x11]  }
 0x123   : > { %3253 = vmatprep.subr.bf16.mxu1 %v715_v39  ;;  %v726_v17 = vsel %vm724_vm10, %v716_v8, 0  ;;  %v1113_v25 = vsel %vm296_vm2, %v1112_v15, %v1111_v21  ;;  %v1119_v29 = vrot.slane %v1090_v62, 6  ;;  %v1123_v30 = vsel %vm290_vm0, %v1122_v22, %v1121_v20  ;;  %v3439_v53 = vld [vmem:[%s3705_s11 + $0x48] ss:$0 sps:$4 sm:$0x11]  }
 0x124   : > { %3254 = vmatpush3.bf16.msra.mxu1 %v715_v39  ;;  %v1115_v28 = vsel %vm299_vm3, %v1114_v16, %v1113_v25  ;;  %v1125_v32 = vsel %vm293_vm1, %v1124_v23, %v1123_v30  ;;  %v1131_v33 = vrot.slane %v1097_v10, 7  ;;  %v1133_v36 = vrot.slane %v1098_v13, 6  ;;  %v3433_v58 = vld [vmem:[%s3705_s11 + $0x18] ss:$0 sps:$4 sm:$0x11]  }
 0x125   : > { %3311 = vmatprep.subr.msk.bf16.mxu1 %vm724_vm10, %v716_v8  ;;  %v1116_v31 = vsel %vm302_vm4, %v1088_v56, %v1115_v28  ;;  %v1127_v35 = vsel %vm296_vm2, %v1126_v24, %v1125_v32  ;;  %v1099_v48 = vunpack.c.l.b16 %v3422_v43  ;;  %v1100_v49 = vunpack.c.l.b16 %v3423_v44  ;;  %v3425_v56 = vld [vmem:[%s3705_s11 + $0x98] ss:$0 sps:$4 sm:$0x44]   ;;  %v3426_v1 = vld [vmem:[%s3705_s11 + $0xa0] ss:$0 sps:$4 sm:$0x44]  }
 0x126   : > { %v1118_v34 = vsel %vm305_vm5, %v1117_v19, %v1116_v31  ;;  %v1129_v37 = vsel %vm299_vm3, %v1128_v26, %v1127_v35  ;;  %v943_v54 = vunpack.c.l.b16 %v3430_v45  ;;  %v951_v55 = vunpack.c.l.b16 %v3438_v46  ;;  %v3441_v60 = vld [vmem:[%s3705_s11 + $0x58] ss:$0 sps:$4 sm:$0x11]   ;;  %v3434_v9 = vld [vmem:[%s3705_s11 + $0x20] ss:$0 sps:$4 sm:$0x11]  }
 0x127   : > { %v1120_v38 = vsel %vm308_vm6, %v1119_v29, %v1118_v34  ;;  %v1130_v39 = vsel %vm302_vm4, %v1096_v27, %v1129_v37  ;;  %v1101_v57 = vunpack.c.l.b16 %v3424_v47  ;;  %v1135_v61 = vrot.slane %v1099_v48, 5  ;;  %v3442_v10 = vld [vmem:[%s3705_s11 + $0x60] ss:$0 sps:$4 sm:$0x11]  }
 0x128   : > { %3256 = vmatpush3.bf16.msra.mxu1 %v726_v17  ;;  %v1132_v40 = vsel %vm305_vm5, %v1131_v33, %v1130_v39  ;;  %v1136_v62 = vrot.slane %v1100_v49, 4  ;;  %v945_v63 = vunpack.c.l.b16 %v3432_v50  ;;  %v953_v0 = vunpack.c.l.b16 %v3440_v51  ;;  %v3921_v11 = vld [vmem:[%s3705_s11 + $0xa8] ss:$0 sps:$4 sm:$0x44]  }
 0x129   : > { %v1134_v41 = vsel %vm308_vm6, %v1133_v36, %v1132_v40  ;;  %v944_v3 = vunpack.c.l.b16 %v3431_v52  ;;  %v952_v4 = vunpack.c.l.b16 %v3439_v53  ;;  %v967_v6 = vrot.slane %v943_v54, 1  ;;  %v3924_v15 = vld [vmem:[%s3705_s11 + $0xb0] ss:$0 sps:$4 sm:$0x44]  }
 0x12a   : > { %v3901_v42 = vpack.c.b16 %v1134_v41, %v1120_v38  ;;  %v981_v8 = vrot.slane %v951_v55, 1  ;;  %v1102_v12 = vunpack.c.l.b16 %v3425_v56  ;;  %v946_v13 = vunpack.c.l.b16 %v3433_v58  ;;  %v3435_v21 = vld [vmem:[%s3705_s11 + $0x28] ss:$0 sps:$4 sm:$0x11]  }
 0x12b   : > { %v954_v14 = vunpack.c.l.b16 %v3441_v60  ;;  %v1138_v16 = vrot.slane %v1101_v57, 3  ;;  %v969_v17 = vrot.slane %v945_v63, 7  ;;  %v983_v18 = vrot.slane %v953_v0, 7  ;;  %v3443_v22 = vld [vmem:[%s3705_s11 + $0x68] ss:$0 sps:$4 sm:$0x11]  }
 0x12c   : > { %3312 = vmatprep.subr.msk.bf16.mxu1 %vm480_vm7, %v3901_v42  ;;  %v1137_v20 = vsel %vm290_vm0, %v1136_v62, %v1135_v61  ;;  %v968_v23 = vsel %vm290_vm0, %v944_v3, %v967_v6  ;;  %v982_v24 = vsel %vm290_vm0, %v952_v4, %v981_v8  ;;  %v3429_v27 = vld [vmem:[%s3705_s11 + $0xb8] ss:$0 sps:$4 sm:$0x44]   ;;  %v1103_v28 = vunpack.c.l.b16 %v3426_v1  ;;  %v3436_v33 = vld [vmem:[%s3705_s11 + $0x30] ss:$0 sps:$4 sm:$0x11]  }
 0x12d   : > { %v947_v29 = vunpack.c.l.b16 %v3434_v9  ;;  %v955_v30 = vunpack.c.l.b16 %v3442_v10  ;;  %v1140_v32 = vrot.slane %v1102_v12, 2  ;;  %v971_v34 = vrot.slane %v946_v13, 6  ;;  %v3444_v38 = vld [vmem:[%s3705_s11 + $0x70] ss:$0 sps:$4 sm:$0x11]  }
 0x12e   : > { %v985_v35 = vrot.slane %v954_v14, 6  ;;  %v1104_v36 = vunpack.c.l.b16 %v3921_v11  ;;  %v1139_v37 = vsel %vm293_vm1, %v1138_v16, %v1137_v20  ;;  %v984_v39 = vsel %vm293_vm1, %v983_v18, %v982_v24  ;;  %v3446_v40 = vld [vmem:[%s3705_s11 + $0x80] ss:$0 sps:$4 sm:$0x11]  }
 0x12f   : > { %v1105_v43 = vunpack.c.l.b16 %v3924_v15  ;;  %v948_v44 = vunpack.c.l.b16 %v3435_v21  ;;  %v956_v45 = vunpack.c.l.b16 %v3443_v22  ;;  %v1142_v48 = vrot.slane %v1103_v28, 1  ;;  %v3445_v53 = vld [vmem:[%s3705_s11 + $0x78] ss:$0 sps:$4 sm:$0x11]  }
 0x130   : > { %v973_v49 = vrot.slane %v947_v29, 5  ;;  %v987_v50 = vrot.slane %v955_v30, 5  ;;  %v1141_v52 = vsel %vm296_vm2, %v1140_v32, %v1139_v37  ;;  %v986_v55 = vsel %vm296_vm2, %v985_v35, %v984_v39  ;;  %v3448_v56 = vld [vmem:[%s3705_s11 + $0x90] ss:$0 sps:$4 sm:$0x11]  }
 0x131   : > { %v1106_v57 = vunpack.c.l.b16 %v3429_v27  ;;  %v949_v58 = vunpack.c.l.b16 %v3436_v33  ;;  %v957_v60 = vunpack.c.l.b16 %v3444_v38  ;;  %v3447_v61 = vld [vmem:[%s3705_s11 + $0x88] ss:$0 sps:$4 sm:$0x11]   ;;  %v959_v62 = vunpack.c.l.b16 %v3446_v40  ;;  %v3449_v6 = vld [vmem:[%s3705_s11 + $0x98] ss:$0 sps:$4 sm:$0x11]  }
 0x132   : > { %v975_v0 = vrot.slane %v948_v44, 4  ;;  %v989_v1 = vrot.slane %v956_v45, 4  ;;  %v988_v4 = vsel %vm299_vm3, %v987_v50, %v986_v55  ;;  %v958_v9 = vunpack.c.l.b16 %v3445_v53  ;;  %v3450_v18 = vld [vmem:[%s3705_s11 + $0xa0] ss:$0 sps:$4 sm:$0x11]  }
 0x133   : > { %v961_v10 = vunpack.c.l.b16 %v3448_v56  ;;  %v977_v11 = vrot.slane %v949_v58, 3  ;;  %v991_v12 = vrot.slane %v957_v60, 3  ;;  %v960_v13 = vunpack.c.l.b16 %v3447_v61  ;;  %v3451_v27 = vld [vmem:[%s3705_s11 + $0xa8] ss:$0 sps:$4 sm:$0x11]  }
 0x134   : > { %v995_v14 = vrot.slane %v959_v62, 1  ;;  %v1145_v15 = vrot.slane %v1105_v43, 7  ;;  %v962_v20 = vunpack.c.l.b16 %v3449_v6  ;;  %v993_v22 = vrot.slane %v958_v9, 2  ;;  %v3452_v35 = vld [vmem:[%s3705_s11 + $0xb0] ss:$0 sps:$4 sm:$0x11]  }
 0x135   : > { %v1147_v24 = vrot.slane %v1106_v57, 6  ;;  %v963_v30 = vunpack.c.l.b16 %v3450_v18  ;;  %v3455_v18 = vld [vmem:[%s3705_s11 + $0xc] ss:$0 sps:$4 sm:$0x11]  }
 0x136   : > { %v996_v28 = vsel %vm290_vm0, %v960_v13, %v995_v14  ;;  %v3454_v14 = vld [vmem:[%s3705_s11 + $0x4] ss:$0 sps:$4 sm:$0x11]  }
 0x137   : > { %v1001_v40 = vrot.slane %v963_v30, 5  ;;  %v3461_v30 = vld [vmem:[%s3705_s11 + $0x3c] ss:$0 sps:$4 sm:$0x11]  }
 0x1a3   : > { %v556_v19 = vpop.xlane.xlu1 %555 }
 0x1a4   : > { %v559_v25 = vsub.f32 %v3808_v2, %v556_v19  ;;  %v550_v26 = vpop.xlane.xlu0 %549  ;;  %v970_v2 = vsel %vm293_vm1, %v969_v17, %v968_v23  ;;  %v990_v17 = vsel %vm302_vm4, %v989_v1, %v988_v4  ;;  %v997_v23 = vrot.slane %v961_v10, 7 }
 0x1a5   : > { %v557_v31 = vsub.f32 %v3814_v5, %v550_v26  ;;  %v3437_v5 = vld [vmem:[%s3705_s11 + $0x38] ss:$0 sps:$4 sm:$0x11]   ;;  %v972_v54 = vsel %vm296_vm2, %v971_v34, %v970_v2  ;;  %v992_v26 = vsel %vm305_vm5, %v991_v12, %v990_v17  ;;  %v964_v2 = vunpack.c.l.b16 %v3451_v27  ;;  %v3464_v17 = vld [vmem:[%s3705_s11 + $0x54] ss:$0 sps:$4 sm:$0x11]  }
 0x1a6   : > { %v564_v41 = vmul.f32 1.442695, %v559_v25  ;;  %v974_v3 = vsel %vm299_vm3, %v973_v49, %v972_v54  ;;  %v950_v8 = vunpack.c.l.b16 %v3437_v5  ;;  %v994_v34 = vsel %vm308_vm6, %v993_v22, %v992_v26  ;;  %v3453_v5 = vld [vmem:[%s3705_s11 + $0xb8] ss:$0 sps:$4 sm:$0x11]  }
 0x1a7   : > { %v560_v46 = vmul.f32 1.442695, %v557_v31  ;;  %v976_v16 = vsel %vm302_vm4, %v975_v0, %v974_v3  ;;  %v999_v31 = vrot.slane %v962_v20, 6  ;;  %v1003_v49 = vrot.slane %v964_v2, 4 }
 0x1a8   : > { %v553_v47 = vpop.xlane.xlu0 %552  ;;  %3622 = vpow2.f32 %v564_v41  ;;  %v979_v21 = vrot.slane %v950_v8, 2  ;;  %v978_v25 = vsel %vm305_vm5, %v977_v11, %v976_v16  ;;  %v3456_v16 = vld [vmem:[%s3705_s11 + $0x14] ss:$0 sps:$4 sm:$0x11]  }
 0x1a9   : > { %v558_v51 = vsub.f32 %v3820_v7, %v553_v47  ;;  %3624 = vpow2.f32 %v560_v46  ;;  %v1143_v7 = vsel %vm299_vm3, %v1142_v48, %v1141_v52  ;;  %v1158_v46 = vsel %vm480_vm7, %v3901_v42, 0  ;;  %v3458_v20 = vld [vmem:[%s3705_s11 + $0x24] ss:$0 sps:$4 sm:$0x11]  }
 0x1aa   : > { %v1144_v19 = vsel %vm302_vm4, %v1104_v36, %v1143_v7  ;;  %v980_v33 = vsel %vm308_vm6, %v979_v21, %v978_v25  ;;  %v998_v36 = vsel %vm293_vm1, %v997_v23, %v996_v28  ;;  %v965_v48 = vunpack.c.l.b16 %v3452_v35  ;;  %v3463_v21 = vld [vmem:[%s3705_s11 + $0x4c] ss:$0 sps:$4 sm:$0x11]   ;;  %v3465_v23 = vld [vmem:[%s3705_s11 + $0x5c] ss:$0 sps:$4 sm:$0x11]  }
 0x1ab   : > { %v562_v63 = vmul.f32 1.442695, %v558_v51  ;;  %v1146_v29 = vsel %vm305_vm5, %v1145_v15, %v1144_v19  ;;  %v1009_v43 = vpack.c.b16 %v994_v34, %v980_v33  ;;  %v1000_v44 = vsel %vm296_vm2, %v999_v31, %v998_v36  ;;  %v3462_v15 = vld [vmem:[%s3705_s11 + $0x44] ss:$0 sps:$4 sm:$0x11]  }
 0x1ac   : > { %v1148_v38 = vsel %vm308_vm6, %v1147_v24, %v1146_v29  ;;  %v1002_v50 = vsel %vm299_vm3, %v1001_v40, %v1000_v44  ;;  %v966_v51 = vunpack.c.l.b16 %v3453_v5  ;;  %v1005_v52 = vrot.slane %v965_v48, 3  ;;  %v3457_v19 = vld [vmem:[%s3705_s11 + $0x1c] ss:$0 sps:$4 sm:$0x11]  }
 0x1ad   : > { %3626 = vpow2.f32 %v562_v63  ;;  %v1150_v47 = vpack.c.b16 %v1148_v38, %v1148_v38  ;;  %v1004_v53 = vsel %vm302_vm4, %v1003_v49, %v1002_v50  ;;  %v3459_v22 = vld [vmem:[%s3705_s11 + $0x2c] ss:$0 sps:$4 sm:$0x11]   ;;  %v1318_v24 = vunpack.c.l.b16 %v3454_v14  ;;  %v3460_v26 = vld [vmem:[%s3705_s11 + $0x34] ss:$0 sps:$4 sm:$0x11]  }
 0x1ae   : > { %v1007_v54 = vrot.slane %v966_v51, 2  ;;  %v1006_v55 = vsel %vm305_vm5, %v1005_v52, %v1004_v53  ;;  %v1320_v25 = vunpack.c.l.b16 %v3456_v16  ;;  %v3466_v27 = vld [vmem:[%s3705_s11 + $0x64] ss:$0 sps:$4 sm:$0x11]   ;;  %v1321_v28 = vunpack.c.l.b16 %v3457_v19 }
 0x1af   : > { %v1161_v42 = vsel %vm480_vm7, %v1150_v47, 0  ;;  %v1322_v29 = vunpack.c.l.b16 %v3458_v20  ;;  %v3467_v31 = vld [vmem:[%s3705_s11 + $0x6c] ss:$0 sps:$4 sm:$0x11]   ;;  %v1319_v33 = vunpack.c.l.b16 %v3455_v18  ;;  %v1323_v34 = vunpack.c.l.b16 %v3459_v22 }
 0x1b0   : > { %v1008_v56 = vsel %vm308_vm6, %v1007_v54, %v1006_v55  ;;  %v1326_v35 = vunpack.c.l.b16 %v3462_v15  ;;  %v1328_v36 = vunpack.c.l.b16 %v3464_v17  ;;  %v3468_v38 = vld [vmem:[%s3705_s11 + $0x74] ss:$0 sps:$4 sm:$0x11]   ;;  %v3469_v2 = vld [vmem:[%s3705_s11 + $0x7c] ss:$0 sps:$4 sm:$0x11]   ;;  %v1324_v40 = vunpack.c.l.b16 %v3460_v26 }
 0x1b1   : > { %v1010_v57 = vpack.c.b16 %v1008_v56, %v1008_v56  ;;  %v1330_v5 = vunpack.c.l.b16 %v3466_v27  ;;  %v1325_v44 = vunpack.c.l.b16 %v3461_v30  ;;  %v3470_v48 = vld [vmem:[%s3705_s11 + $0x84] ss:$0 sps:$4 sm:$0x11]   ;;  %v1332_v49 = vunpack.c.l.b16 %v3468_v38  ;;  %v3471_v53 = vld [vmem:[%s3705_s11 + $0x8c] ss:$0 sps:$4 sm:$0x11]  }
 0x1b2   : > { %v3963_v32 = vpop.eup %3622  ;;  %v1333_v50 = vunpack.c.l.b16 %v3469_v2  ;;  %v1346_v51 = vrot.slane %v1321_v28, 6  ;;  %v1348_v52 = vrot.slane %v1322_v29, 5  ;;  %v1352_v55 = vrot.slane %v1324_v40, 3  ;;  %v3475_v16 = vld [vmem:[%s3705_s11 + $0xac] ss:$0 sps:$4 sm:$0x11]  }
 0x1b3   : > { %v3969_v37 = vpop.eup %3624  ;;  %v576_v45 = vpack.c.bf16 %v3963_v32, %v3963_v32  ;;  %v1354_v56 = vrot.slane %v1325_v44, 2  ;;  %v1334_v17 = vunpack.c.l.b16 %v3470_v48  ;;  %v3476_v20 = vld [vmem:[%s3705_s11 + $0xb4] ss:$0 sps:$4 sm:$0x11]   ;;  %v1335_v22 = vunpack.c.l.b16 %v3471_v53 }
 0x1b4   : > { %v1368_v15 = vrot.slane %v1333_v50, 2  ;;  %v3478_v28 = vld [vmem:[%s3705_s11] ss:$0 sps:$4 sm:$0x88]  }
 0x1b5   : > { %v3479_v29 = vld [vmem:[%s3705_s11 + $0x8] ss:$0 sps:$4 sm:$0x88]   ;;  %v1370_v40 = vrot.slane %v1334_v17, 1 }
 0x1b7   : > { %v3972_v39 = vpop.eup %3626 }
 0x1b8   : > { %v575_v41 = vpack.c.bf16 %v3972_v39, %v3969_v37 }
 0x1ba   : > { %3257 = vmatprep.mubr.msk.bf16.mxu1 %vm547_vm9, %v575_v41  ;;  %v1327_v41 = vunpack.c.l.b16 %v3463_v21  ;;  %v3477_v21 = vld [vmem:[%s3705_s11 + $0xbc] ss:$0 sps:$4 sm:$0x11]  }
 0x1bb   : > { %3258 = vmatmul.mubr.msk.bf16.vlgmr.msra.gmra.mrb[0].mxu1 %vm547_vm9, %v576_v45  ;;  %v1331_v45 = vunpack.c.l.b16 %v3467_v31  ;;  %v1341_v2 = vunpack.c.l.b16 %v3477_v21 }
 0x1bc   : > { %3262 = vmatpush3.bf16.xpose.msra.mxu1 %v1158_v46  ;;  %3265 = vmatprep.mubr.msk.bf16.mxu1 %vm480_vm7, %v1009_v43  ;;  %v1329_v43 = vunpack.c.l.b16 %v3465_v23  ;;  %v1342_v46 = vrot.slane %v1318_v24, 1 }
 0x1bd   : > { %3313 = vmatprep.subr.msk.bf16.mxu1 %vm480_vm7, %v1150_v47  ;;  %v1344_v47 = vrot.slane %v1320_v25, 7 }
 0x1be   : > { %v1343_v54 = vsel %vm290_vm0, %v1319_v33, %v1342_v46  ;;  %v1339_v33 = vunpack.c.l.b16 %v3475_v16 }
 0x1c0   : > { %v1378_v46 = vrot.slane %v1339_v33, 4 }
 0x1c4   : > { %3264 = vmatpush3.bf16.xpose.msra.mxu1 %v1161_v42  ;;  %v1350_v42 = vrot.slane %v1323_v34, 4  ;;  %v1340_v34 = vunpack.c.l.b16 %v3476_v20 }
 0x1c6   : > { %v1380_v50 = vrot.slane %v1340_v34, 3 }
 0x1cb   : > { %3266 = vmatmul.mubr.msk.bf16.vlgmr.msra.gmra.mrb[4].mxu1 %vm480_vm7, %v1010_v57  ;;  %v3472_v57 = vld [vmem:[%s3705_s11 + $0x94] ss:$0 sps:$4 sm:$0x11]  }
 0x1cc   : > { %v1336_v23 = vunpack.c.l.b16 %v3472_v57 }
 0x28e   : > { %v3992_v58 = vpop.f32.mrb[0].mxu1 }
 0x28f   : > { %v3994_v60 = vpop.f32.mrb[1].mxu1 }
 0x290   : > { %v3260_v61 = vpop.f32.mrb[2].mxu1 }
 0x291   : > { %v3996_v62 = vpop.f32.mrb[3].mxu1  ;;  %v1345_v61 = vsel %vm293_vm1, %v1344_v47, %v1343_v54  ;;  %v3483_v47 = vld [vmem:[%s3705_s11 + $0x28] ss:$0 sps:$4 sm:$0x88]  }
 0x29e   : > { %v3267_v63 = vpop.f32.mrb[4].mxu1 }
 0x29f   : > { %v1197_v0 = vpop.f32.mrb[5].mxu1  ;;  %v1213_v1 = vmul.f32 0.35355338, %v3267_v63  ;;  %v1356_v63 = vrot.slane %v1326_v35, 1 }
 0x2a0   : > { %v1211_v7 = vmul.f32 0.35355338, %v1197_v0  ;;  %v3268_v3 = vpop.f32.mrb[6].mxu1  ;;  %v1358_v0 = vrot.slane %v1328_v36, 7 }
 0x2a1   : > { %v1200_v4 = vpop.f32.mrb[7].mxu1  ;;  %v4010_v11 = vsel %vm120_vm8, %v1213_v1, -1e+30  ;;  %v1360_v1 = vrot.slane %v1329_v43, 6  ;;  %v1347_v3 = vsel %vm296_vm2, %v1346_v51, %v1345_v61  ;;  %v1357_v14 = vsel %vm290_vm0, %v1327_v41, %v1356_v63 }
 0x2a2   : > { %v1212_v6 = vmul.f32 0.35355338, %v1200_v4  ;;  %v4000_v8 = vsel %vm120_vm8, %v1211_v7, -1e+30  ;;  %v1223_v13 = vsel %vm547_vm9, %v4010_v11, -inf  ;;  %v1362_v4 = vrot.slane %v1330_v5, 5 }
 0x2a3   : > { %v1217_v9 = vsel %vm547_vm9, %v4000_v8, -inf  ;;  %v3473_v7 = vld [vmem:[%s3705_s11 + $0x9c] ss:$0 sps:$4 sm:$0x11]   ;;  %v1359_v19 = vsel %vm293_vm1, %v1358_v0, %v1357_v14  ;;  %v1372_v41 = vrot.slane %v1336_v23, 7  ;;  %v1382_v51 = vrot.slane %v1341_v2, 2 }
 0x2a4   : > { %1218 = vmax.xlane.f32.xlu1 %v1217_v9  ;;  %v4006_v10 = vsel %vm120_vm8, %v1212_v6, -1e+30  ;;  %v1364_v6 = vrot.slane %v1331_v45, 4  ;;  %v1366_v9 = vrot.slane %v1332_v49, 3  ;;  %v1361_v25 = vsel %vm296_vm2, %v1360_v1, %v1359_v19 }
 0x2a5   : > { %v1220_v12 = vsel %vm547_vm9, %v4006_v10, -inf  ;;  %v1337_v26 = vunpack.c.l.b16 %v3473_v7  ;;  %v1363_v31 = vsel %vm299_vm3, %v1362_v4, %v1361_v25  ;;  %v3480_v35 = vld [vmem:[%s3705_s11 + $0x10] ss:$0 sps:$4 sm:$0x88]   ;;  %v1371_v49 = vsel %vm290_vm0, %v1335_v22, %v1370_v40 }
 0x2a6   : > { %1221 = vmax.xlane.f32.xlu0 %v1220_v12  ;;  %v3474_v12 = vld [vmem:[%s3705_s11 + $0xa4] ss:$0 sps:$4 sm:$0x11]   ;;  %v3481_v36 = vld [vmem:[%s3705_s11 + $0x18] ss:$0 sps:$4 sm:$0x88]   ;;  %v1365_v38 = vsel %vm302_vm4, %v1364_v6, %v1363_v31  ;;  %v1373_v54 = vsel %vm293_vm1, %v1372_v41, %v1371_v49  ;;  %v1758_v0 = vunpack.c.l.b16 %v3479_v29  ;;  %v1759_v1 = vunpack.c.l.b16 %v3480_v35 }
 0x2a7   : > { %v1338_v27 = vunpack.c.l.b16 %v3474_v12  ;;  %v3482_v43 = vld [vmem:[%s3705_s11 + $0x20] ss:$0 sps:$4 sm:$0x88]   ;;  %v1367_v5 = vsel %vm305_vm5, %v1366_v9, %v1365_v38  ;;  %v1374_v44 = vrot.slane %v1337_v26, 6  ;;  %v1760_v6 = vunpack.c.l.b16 %v3481_v36 }
 0x2a8   : > { %1224 = vmax.xlane.f32.xlu1 %v1223_v13  ;;  %v1349_v13 = vsel %vm299_vm3, %v1348_v52, %v1347_v3  ;;  %v1369_v48 = vsel %vm308_vm6, %v1368_v15, %v1367_v5  ;;  %v3485_v52 = vld [vmem:[%s3705_s11 + $0x38] ss:$0 sps:$4 sm:$0x88]   ;;  %v3487_v61 = vld [vmem:[%s3705_s11 + $0x48] ss:$0 sps:$4 sm:$0x88]   ;;  %v1761_v9 = vunpack.c.l.b16 %v3482_v43  ;;  %v1762_v12 = vunpack.c.l.b16 %v3483_v47 }
 0x2a9   : > { %v1351_v18 = vsel %vm302_vm4, %v1350_v42, %v1349_v13  ;;  %v1376_v45 = vrot.slane %v1338_v27, 5  ;;  %v3484_v42 = vld [vmem:[%s3705_s11 + $0x30] ss:$0 sps:$4 sm:$0x88]   ;;  %v1375_v57 = vsel %vm296_vm2, %v1374_v44, %v1373_v54  ;;  %v1764_v16 = vunpack.c.l.b16 %v3485_v52 }
 0x2aa   : > { %v1353_v24 = vsel %vm305_vm5, %v1352_v55, %v1351_v18  ;;  %v3486_v55 = vld [vmem:[%s3705_s11 + $0x40] ss:$0 sps:$4 sm:$0x88]   ;;  %v3488_v63 = vld [vmem:[%s3705_s11 + $0x50] ss:$0 sps:$4 sm:$0x88]   ;;  %v1763_v15 = vunpack.c.l.b16 %v3484_v42  ;;  %v1766_v20 = vunpack.c.l.b16 %v3487_v61 }
 0x2ab   : > { %v1355_v30 = vsel %vm308_vm6, %v1354_v56, %v1353_v24  ;;  %v1757_v56 = vunpack.c.l.b16 %v3478_v28  ;;  %v1377_v7 = vsel %vm299_vm3, %v1376_v45, %v1375_v57  ;;  %v3489_v3 = vld [vmem:[%s3705_s11 + $0x58] ss:$0 sps:$4 sm:$0x88]   ;;  %v3490_v4 = vld [vmem:[%s3705_s11 + $0x60] ss:$0 sps:$4 sm:$0x88]   ;;  %v1765_v17 = vunpack.c.l.b16 %v3486_v55 }
 0x2ac   : > { %v1384_v53 = vpack.c.b16 %v1369_v48, %v1355_v30  ;;  %v1379_v13 = vsel %vm302_vm4, %v1378_v46, %v1377_v7  ;;  %v3491_v14 = vld [vmem:[%s3705_s11 + $0x68] ss:$0 sps:$4 sm:$0x88]   ;;  %v3493_v19 = vld [vmem:[%s3705_s11 + $0x78] ss:$0 sps:$4 sm:$0x88]   ;;  %v1767_v21 = vunpack.c.l.b16 %v3488_v63  ;;  %v1768_v24 = vunpack.c.l.b16 %v3489_v3 }
 0x2ad   : > { %v1381_v18 = vsel %vm305_vm5, %v1380_v50, %v1379_v13  ;;  %v1781_v22 = vrot.slane %v1757_v56, 6  ;;  %v1769_v25 = vunpack.c.l.b16 %v3490_v4  ;;  %v1782_v26 = vrot.slane %v1758_v0, 5  ;;  %v3492_v31 = vld [vmem:[%s3705_s11 + $0x70] ss:$0 sps:$4 sm:$0x88]  }
 0x2ae   : > { %3269 = vmatprep.subr.bf16.mxu0 %v1384_v53  ;;  %v1383_v23 = vsel %vm308_vm6, %v1382_v51, %v1381_v18  ;;  %v1770_v28 = vunpack.c.l.b16 %v3491_v14  ;;  %v1784_v29 = vrot.slane %v1759_v1, 4  ;;  %v1786_v30 = vrot.slane %v1760_v6, 3  ;;  %v3494_v1 = vld [vmem:[%s3705_s11 + $0x80] ss:$0 sps:$4 sm:$0x88]  }
 0x2af   : > { %3270 = vmatpush3.bf16.msra.mxu0 %v1384_v53  ;;  %v1385_v27 = vpack.c.b16 %v1383_v23, %v1383_v23  ;;  %v1772_v33 = vunpack.c.l.b16 %v3493_v19  ;;  %v1783_v34 = vsel %vm290_vm0, %v1782_v26, %v1781_v22  ;;  %v1788_v35 = vrot.slane %v1761_v9, 2  ;;  %v3495_v7 = vld [vmem:[%s3705_s11 + $0x88] ss:$0 sps:$4 sm:$0x88]  }
 0x2b0   : > { %v1790_v36 = vrot.slane %v1762_v12, 1  ;;  %v1785_v2 = vsel %vm293_vm1, %v1784_v29, %v1783_v34  ;;  %v1795_v40 = vrot.slane %v1765_v17, 6  ;;  %v1796_v41 = vrot.slane %v1766_v20, 5  ;;  %v3502_v3 = vld [vmem:[%s3705_s11] ss:$0 sps:$4 sm:$0x22]  }
 0x2b1   : > { %3314 = vmatprep.subr.msk.bf16.mxu0 %vm724_vm10, %v1385_v27  ;;  %v1394_v38 = vsel %vm724_vm10, %v1385_v27, 0  ;;  %v1787_v43 = vsel %vm296_vm2, %v1786_v30, %v1785_v2  ;;  %v1798_v5 = vrot.slane %v1767_v21, 4  ;;  %v1800_v44 = vrot.slane %v1768_v24, 3  ;;  %v3503_v4 = vld [vmem:[%s3705_s11 + $0x8] ss:$0 sps:$4 sm:$0x22]  }
 0x2b2   : > { %v1802_v45 = vrot.slane %v1769_v25, 2  ;;  %v1789_v46 = vsel %vm299_vm3, %v1788_v35, %v1787_v43  ;;  %v1793_v47 = vrot.slane %v1764_v16, 7  ;;  %v1797_v48 = vsel %vm290_vm0, %v1796_v41, %v1795_v40  ;;  %v3510_v6 = vld [vmem:[%s3705_s11 + $0x40] ss:$0 sps:$4 sm:$0x22]  }
 0x2b3   : > { %3272 = vmatpush3.bf16.msra.mxu0 %v1394_v38  ;;  %v1804_v49 = vrot.slane %v1770_v28, 1  ;;  %v1771_v50 = vunpack.c.l.b16 %v3492_v31  ;;  %v1791_v51 = vsel %vm302_vm4, %v1790_v36, %v1789_v46  ;;  %v1799_v52 = vsel %vm293_vm1, %v1798_v5, %v1797_v48  ;;  %v3511_v9 = vld [vmem:[%s3705_s11 + $0x48] ss:$0 sps:$4 sm:$0x22]  }
 0x2b4   : > { %v1792_v53 = vsel %vm305_vm5, %v1763_v15, %v1791_v51  ;;  %v1801_v54 = vsel %vm296_vm2, %v1800_v44, %v1799_v52  ;;  %v1807_v42 = vrot.slane %v1772_v33, 7  ;;  %v3496_v12 = vld [vmem:[%s3705_s11 + $0x90] ss:$0 sps:$4 sm:$0x88]   ;;  %v1773_v13 = vunpack.c.l.b16 %v3494_v1 }
 0x2b5   : > { %v1803_v55 = vsel %vm299_vm3, %v1802_v45, %v1801_v54  ;;  %v1794_v56 = vsel %vm308_vm6, %v1793_v47, %v1792_v53  ;;  %v1774_v14 = vunpack.c.l.b16 %v3495_v7  ;;  %v3497_v15 = vld [vmem:[%s3705_s11 + $0x98] ss:$0 sps:$4 sm:$0x88]   ;;  %v1617_v16 = vunpack.c.l.b16 %v3502_v3  ;;  %v3504_v21 = vld [vmem:[%s3705_s11 + $0x10] ss:$0 sps:$4 sm:$0x22]  }
 0x2b6   : > { %v1805_v57 = vsel %vm302_vm4, %v1804_v49, %v1803_v55  ;;  %v1618_v17 = vunpack.c.l.b16 %v3503_v4  ;;  %v1625_v18 = vunpack.c.l.b16 %v3510_v6  ;;  %v1626_v19 = vunpack.c.l.b16 %v3511_v9  ;;  %v3505_v22 = vld [vmem:[%s3705_s11 + $0x18] ss:$0 sps:$4 sm:$0x22]   ;;  %v3498_v23 = vld [vmem:[%s3705_s11 + $0xa0] ss:$0 sps:$4 sm:$0x88]  }
 0x2b7   : > { %v1806_v61 = vsel %vm305_vm5, %v1771_v50, %v1805_v57  ;;  %v1775_v20 = vunpack.c.l.b16 %v3496_v12  ;;  %v1809_v24 = vrot.slane %v1773_v13, 6  ;;  %v1810_v25 = vrot.slane %v1774_v14, 5  ;;  %v3513_v26 = vld [vmem:[%s3705_s11 + $0x58] ss:$0 sps:$4 sm:$0x22]  }
 0x2b8   : > { %v1808_v63 = vsel %vm308_vm6, %v1807_v42, %v1806_v61  ;;  %v1776_v27 = vunpack.c.l.b16 %v3497_v15  ;;  %v3506_v28 = vld [vmem:[%s3705_s11 + $0x20] ss:$0 sps:$4 sm:$0x22]   ;;  %v3512_v29 = vld [vmem:[%s3705_s11 + $0x50] ss:$0 sps:$4 sm:$0x22]   ;;  %v1620_v40 = vunpack.c.l.b16 %v3505_v22  ;;  %v1628_v41 = vunpack.c.l.b16 %v3513_v26 }
 0x2b9   : > { %v4093_v0 = vpack.c.b16 %v1808_v63, %v1794_v56  ;;  %v1641_v30 = vrot.slane %v1617_v16, 2  ;;  %v1642_v31 = vrot.slane %v1618_v17, 1  ;;  %v1655_v33 = vrot.slane %v1625_v18, 2  ;;  %v3514_v36 = vld [vmem:[%s3705_s11 + $0x60] ss:$0 sps:$4 sm:$0x22]  }
 0x2ba   : > { %v1656_v34 = vrot.slane %v1626_v19, 1  ;;  %v1812_v35 = vrot.slane %v1775_v20, 4  ;;  %v3499_v38 = vld [vmem:[%s3705_s11 + $0xa8] ss:$0 sps:$4 sm:$0x88]   ;;  %v1811_v2 = vsel %vm290_vm0, %v1810_v25, %v1809_v24  ;;  %v1814_v5 = vrot.slane %v1776_v27, 3 }
 0x2bb   : > { %3315 = vmatprep.subr.msk.bf16.mxu0 %vm480_vm7, %v4093_v0  ;;  %v4115_v43 = vld [vmem:[%s3705_s11 + $0xb8] ss:$0 sps:$4 sm:$0x88]   ;;  %v1619_v44 = vunpack.c.l.b16 %v3504_v21  ;;  %v1627_v45 = vunpack.c.l.b16 %v3512_v29  ;;  %v1777_v46 = vunpack.c.l.b16 %v3498_v23  ;;  %v3507_v47 = vld [vmem:[%s3705_s11 + $0x28] ss:$0 sps:$4 sm:$0x22]   ;;  %v1643_v49 = vsel %vm290_vm0, %v1642_v31, %v1641_v30 }
 0x2bc   : > { %v3515_v48 = vld [vmem:[%s3705_s11 + $0x68] ss:$0 sps:$4 sm:$0x22]   ;;  %v1657_v50 = vsel %vm290_vm0, %v1656_v34, %v1655_v33  ;;  %v1813_v51 = vsel %vm293_vm1, %v1812_v35, %v1811_v2  ;;  %v3508_v52 = vld [vmem:[%s3705_s11 + $0x30] ss:$0 sps:$4 sm:$0x22]   ;;  %v1621_v53 = vunpack.c.l.b16 %v3506_v28  ;;  %v1629_v54 = vunpack.c.l.b16 %v3514_v36 }
 0x2bd   : > { %v1778_v55 = vunpack.c.l.b16 %v3499_v38  ;;  %v3516_v56 = vld [vmem:[%s3705_s11 + $0x70] ss:$0 sps:$4 sm:$0x22]   ;;  %v1645_v57 = vrot.slane %v1620_v40, 7  ;;  %v1659_v61 = vrot.slane %v1628_v41, 7  ;;  %v1780_v1 = vunpack.c.l.b16 %v4115_v43 }
 0x2be   : > { %v1644_v7 = vsel %vm293_vm1, %v1619_v44, %v1643_v49  ;;  %v1658_v3 = vsel %vm293_vm1, %v1627_v45, %v1657_v50  ;;  %v3518_v4 = vld [vmem:[%s3705_s11 + $0x80] ss:$0 sps:$4 sm:$0x22]   ;;  %v3519_v6 = vld [vmem:[%s3705_s11 + $0x88] ss:$0 sps:$4 sm:$0x22]   ;;  %v1815_v12 = vsel %vm296_vm2, %v1814_v5, %v1813_v51  ;;  %v1622_v14 = vunpack.c.l.b16 %v3507_v47 }
 0x2bf   : > { %v1816_v13 = vrot.slane %v1777_v46, 2  ;;  %v1630_v15 = vunpack.c.l.b16 %v3515_v48  ;;  %v1647_v17 = vrot.slane %v1621_v53, 6  ;;  %v1661_v18 = vrot.slane %v1629_v54, 6  ;;  %v3509_v20 = vld [vmem:[%s3705_s11 + $0x38] ss:$0 sps:$4 sm:$0x22]  }
 0x2c0   : > { %v3517_v21 = vld [vmem:[%s3705_s11 + $0x78] ss:$0 sps:$4 sm:$0x22]   ;;  %v1623_v22 = vunpack.c.l.b16 %v3508_v52  ;;  %v1631_v23 = vunpack.c.l.b16 %v3516_v56  ;;  %v1646_v24 = vsel %vm296_vm2, %v1645_v57, %v1644_v7  ;;  %v1660_v25 = vsel %vm296_vm2, %v1659_v61, %v1658_v3  ;;  %v3520_v43 = vld [vmem:[%s3705_s11 + $0x90] ss:$0 sps:$4 sm:$0x22]  }
 0x2c1   : > { %v1633_v28 = vunpack.c.l.b16 %v3518_v4  ;;  %v1634_v29 = vunpack.c.l.b16 %v3519_v6  ;;  %v1818_v30 = vrot.slane %v1778_v55, 1  ;;  %v1649_v31 = vrot.slane %v1622_v14, 5  ;;  %v3521_v38 = vld [vmem:[%s3705_s11 + $0x98] ss:$0 sps:$4 sm:$0x22]  }
 0x2c2   : > { %v1663_v33 = vrot.slane %v1630_v15, 5  ;;  %v1648_v35 = vsel %vm299_vm3, %v1647_v17, %v1646_v24  ;;  %v1662_v36 = vsel %vm299_vm3, %v1661_v18, %v1660_v25  ;;  %v1817_v2 = vsel %vm299_vm3, %v1816_v13, %v1815_v12  ;;  %v3522_v49 = vld [vmem:[%s3705_s11 + $0xa0] ss:$0 sps:$4 sm:$0x22]  }
 0x2c3   : > { %v1624_v40 = vunpack.c.l.b16 %v3509_v20  ;;  %v1651_v41 = vrot.slane %v1623_v22, 4  ;;  %v1665_v5 = vrot.slane %v1631_v23, 4  ;;  %v1669_v44 = vrot.slane %v1633_v28, 2  ;;  %v3523_v57 = vld [vmem:[%s3705_s11 + $0xa8] ss:$0 sps:$4 sm:$0x22]  }
 0x2c4   : > { %v1670_v45 = vrot.slane %v1634_v29, 1  ;;  %v1650_v47 = vsel %vm302_vm4, %v1649_v31, %v1648_v35  ;;  %v1664_v48 = vsel %vm302_vm4, %v1663_v33, %v1662_v36  ;;  %v1819_v50 = vsel %vm302_vm4, %v1818_v30, %v1817_v2  ;;  %v3524_v12 = vld [vmem:[%s3705_s11 + $0xb0] ss:$0 sps:$4 sm:$0x22]  }
 0x2c5   : > { %v1636_v51 = vunpack.c.l.b16 %v3521_v38  ;;  %v1653_v52 = vrot.slane %v1624_v40, 3  ;;  %v1635_v54 = vunpack.c.l.b16 %v3520_v43  ;;  %v1652_v55 = vsel %vm305_vm5, %v1651_v41, %v1650_v47 }
 0x2c6   : > { %v1666_v56 = vsel %vm305_vm5, %v1665_v5, %v1664_v48  ;;  %v1671_v61 = vsel %vm290_vm0, %v1670_v45, %v1669_v44  ;;  %v1637_v7 = vunpack.c.l.b16 %v3522_v49  ;;  %v1638_v15 = vunpack.c.l.b16 %v3523_v57  ;;  %v3530_v57 = vld [vmem:[%s3705_s11 + $0x24] ss:$0 sps:$4 sm:$0x22]  }
 0x2c7   : > { %v1673_v3 = vrot.slane %v1636_v51, 7  ;;  %v1654_v6 = vsel %vm308_vm6, %v1653_v52, %v1652_v55  ;;  %v1832_v22 = vsel %vm480_vm7, %v4093_v0, 0  ;;  %v1639_v24 = vunpack.c.l.b16 %v3524_v12  ;;  %v3526_v51 = vld [vmem:[%s3705_s11 + $0x4] ss:$0 sps:$4 sm:$0x22]  }
 0x2c8   : > { %v1677_v25 = vrot.slane %v1638_v15, 5  ;;  %v3527_v52 = vld [vmem:[%s3705_s11 + $0xc] ss:$0 sps:$4 sm:$0x22]  }
 0x2c9   : > { %v1679_v28 = vrot.slane %v1639_v24, 4  ;;  %v3537_v55 = vld [vmem:[%s3705_s11 + $0x5c] ss:$0 sps:$4 sm:$0x22]  }
 0x2ca   : > { %v3539_v15 = vld [vmem:[%s3705_s11 + $0x6c] ss:$0 sps:$4 sm:$0x22]  }
 0x331   : > { %v1219_v42 = vpop.xlane.xlu1 %1218 }
 0x332   : > { %v1226_v63 = vsub.f32 %v4000_v8, %v1219_v42  ;;  %v1821_v42 = vrot.slane %v1780_v1, 7  ;;  %v1672_v1 = vsel %vm293_vm1, %v1635_v54, %v1671_v61  ;;  %v3535_v54 = vld [vmem:[%s3705_s11 + $0x4c] ss:$0 sps:$4 sm:$0x22]  }
 0x333   : > { %v1222_v9 = vpop.xlane.xlu0 %1221  ;;  %v1674_v20 = vsel %vm296_vm2, %v1673_v3, %v1672_v1  ;;  %v3531_v61 = vld [vmem:[%s3705_s11 + $0x2c] ss:$0 sps:$4 sm:$0x22]   ;;  %v1993_v3 = vunpack.c.l.b16 %v3527_v52  ;;  %v1996_v1 = vunpack.c.l.b16 %v3530_v57 }
 0x334   : > { %v1229_v16 = vmul.f32 1.442695, %v1226_v63  ;;  %v1227_v8 = vsub.f32 %v4006_v10, %v1222_v9  ;;  %v3500_v10 = vld [vmem:[%s3705_s11 + $0xb0] ss:$0 sps:$4 sm:$0x88]  }
 0x335   : > { %v1225_v19 = vpop.xlane.xlu1 %1224  ;;  %v1779_v46 = vunpack.c.l.b16 %v3500_v10 }
 0x336   : > { %v1231_v26 = vmul.f32 1.442695, %v1227_v8  ;;  %v1228_v27 = vsub.f32 %v4010_v11, %v1225_v19  ;;  %3628 = vpow2.f32 %v1229_v16  ;;  %v1632_v11 = vunpack.c.l.b16 %v3517_v21  ;;  %v3525_v19 = vld [vmem:[%s3705_s11 + $0xb8] ss:$0 sps:$4 sm:$0x22]  }
 0x337   : > { %v1820_v63 = vsel %vm305_vm5, %v1779_v46, %v1819_v50  ;;  %v1675_v8 = vrot.slane %v1637_v7, 6  ;;  %v1992_v7 = vunpack.c.l.b16 %v3526_v51 }
 0x338   : > { %3630 = vpow2.f32 %v1231_v26  ;;  %v1233_v34 = vmul.f32 1.442695, %v1228_v27  ;;  %v1667_v53 = vrot.slane %v1632_v11, 3  ;;  %v1822_v14 = vsel %vm308_vm6, %v1821_v42, %v1820_v63  ;;  %v3529_v42 = vld [vmem:[%s3705_s11 + $0x1c] ss:$0 sps:$4 sm:$0x22]  }
 0x339   : > { %v1824_v23 = vpack.c.b16 %v1822_v14, %v1822_v14  ;;  %v1676_v26 = vsel %vm299_vm3, %v1675_v8, %v1674_v20  ;;  %v1640_v27 = vunpack.c.l.b16 %v3525_v19  ;;  %v3536_v63 = vld [vmem:[%s3705_s11 + $0x54] ss:$0 sps:$4 sm:$0x22]   ;;  %v1995_v12 = vunpack.c.l.b16 %v3529_v42  ;;  %v3533_v14 = vld [vmem:[%s3705_s11 + $0x3c] ss:$0 sps:$4 sm:$0x22]  }
 0x33a   : > { %3632 = vpow2.f32 %v1233_v34  ;;  %v1668_v9 = vsel %vm308_vm6, %v1667_v53, %v1666_v56  ;;  %v1678_v29 = vsel %vm302_vm4, %v1677_v25, %v1676_v26  ;;  %v3534_v53 = vld [vmem:[%s3705_s11 + $0x44] ss:$0 sps:$4 sm:$0x22]   ;;  %v3528_v56 = vld [vmem:[%s3705_s11 + $0x14] ss:$0 sps:$4 sm:$0x22]   ;;  %v2003_v19 = vunpack.c.l.b16 %v3537_v55 }
 0x33b   : > { %v1683_v18 = vpack.c.b16 %v1668_v9, %v1654_v6  ;;  %v1681_v10 = vrot.slane %v1640_v27, 3  ;;  %v1835_v30 = vsel %vm480_vm7, %v1824_v23, 0  ;;  %v1680_v0 = vsel %vm305_vm5, %v1679_v28, %v1678_v29  ;;  %v3532_v6 = vld [vmem:[%s3705_s11 + $0x34] ss:$0 sps:$4 sm:$0x22]  }
 0x33c   : > { %v3538_v9 = vld [vmem:[%s3705_s11 + $0x64] ss:$0 sps:$4 sm:$0x22]   ;;  %v2000_v8 = vunpack.c.l.b16 %v3534_v53  ;;  %v3540_v20 = vld [vmem:[%s3705_s11 + $0x74] ss:$0 sps:$4 sm:$0x22]   ;;  %v2002_v24 = vunpack.c.l.b16 %v3536_v63  ;;  %v1999_v26 = vunpack.c.l.b16 %v3533_v14  ;;  %v2005_v27 = vunpack.c.l.b16 %v3539_v15 }
 0x33d   : > { %v1682_v31 = vsel %vm308_vm6, %v1681_v10, %v1680_v0  ;;  %v2004_v25 = vunpack.c.l.b16 %v3538_v9  ;;  %v2016_v28 = vrot.slane %v1992_v7, 2  ;;  %v2017_v29 = vrot.slane %v1993_v3, 1  ;;  %v3542_v10 = vld [vmem:[%s3705_s11 + $0x84] ss:$0 sps:$4 sm:$0x22]  }
 0x33e   : > { %v1684_v33 = vpack.c.b16 %v1682_v31, %v1682_v31  ;;  %v2020_v31 = vrot.slane %v1995_v12, 7  ;;  %v2038_v53 = vrot.slane %v2005_v27, 5  ;;  %v3546_v42 = vld [vmem:[%s3705_s11 + $0xa4] ss:$0 sps:$4 sm:$0x22]   ;;  %v2008_v63 = vunpack.c.l.b16 %v3542_v10 }
 0x33f   : > { %v2036_v52 = vrot.slane %v2004_v25, 6  ;;  %v3549_v9 = vld [vmem:[%s3705_s11 + $0xbc] ss:$0 sps:$4 sm:$0x22]  }
 0x340   : > { %v4152_v4 = vpop.eup %3628  ;;  %v3553_v25 = vld [vmem:[%s3705_s11 + $0x18] ss:$0 sps:$4 sm:$0x88]   ;;  %v2015_v27 = vunpack.c.l.b16 %v3549_v9  ;;  %v3554_v10 = vld [vmem:[%s3705_s11 + $0x20] ss:$0 sps:$4 sm:$0x88]  }
 0x342   : > { %v4158_v13 = vpop.eup %3630 }
 0x343   : > { %v1244_v16 = vpack.c.bf16 %v4158_v13, %v4152_v4  ;;  %v1238_v59 = vsel %vm547_vm9, %v4158_v13, 0.0  ;;  %v3599_v13 = vld [vmem:[%s3705_s11 + $0xc] ss:$0 sps:$4 sm:$0x22]  }
 0x344   : > { %v4163_v17 = vpop.eup %3632 }
 0x345   : > { %3273 = vmatprep.mubr.msk.bf16.mxu0 %vm547_vm9, %v1244_v16  ;;  %v1245_v21 = vpack.c.bf16 %v4163_v17, %v4163_v17  ;;  %v1997_v16 = vunpack.c.l.b16 %v3531_v61  ;;  %v3547_v61 = vld [vmem:[%s3705_s11 + $0xac] ss:$0 sps:$4 sm:$0x22]  }
 0x347   : > { %3274 = vmatmul.mubr.msk.bf16.vlgmr.msra.gmra.mrb[4].mxu0 %vm547_vm9, %v1245_v21  ;;  %v3541_v21 = vld [vmem:[%s3705_s11 + $0x7c] ss:$0 sps:$4 sm:$0x22]  }
 0x348   : > { %3278 = vmatpush3.bf16.xpose.msra.mxu0 %v1832_v22  ;;  %3281 = vmatprep.mubr.msk.bf16.mxu0 %vm480_vm7, %v1683_v18  ;;  %v2001_v18 = vunpack.c.l.b16 %v3535_v54  ;;  %v1994_v22 = vunpack.c.l.b16 %v3528_v56  ;;  %v2007_v0 = vunpack.c.l.b16 %v3541_v21 }
 0x349   : > { %3316 = vmatprep.subr.msk.bf16.mxu0 %vm480_vm7, %v1824_v23  ;;  %v1998_v23 = vunpack.c.l.b16 %v3532_v6  ;;  %v3548_v6 = vld [vmem:[%s3705_s11 + $0xb4] ss:$0 sps:$4 sm:$0x22]  }
 0x34a   : > { %v2042_v57 = vrot.slane %v2007_v0, 3 }
 0x350   : > { %3280 = vmatpush3.bf16.xpose.msra.mxu0 %v1835_v30  ;;  %v2006_v30 = vunpack.c.l.b16 %v3540_v20 }
 0x352   : > { %v2040_v54 = vrot.slane %v2006_v30, 4 }
 0x357   : > { %3282 = vmatmul.mubr.msk.bf16.vlgmr.msra.gmra.mrb[8].mxu0 %vm480_vm7, %v1684_v33  ;;  %v2022_v33 = vrot.slane %v1996_v1, 6 }
 0x41a   : > { %v4181_v34 = vpop.f32.mrb[4].mxu0 }
 0x41b   : > { %v4183_v35 = vpop.f32.mrb[5].mxu0 }
 0x41c   : > { %v3276_v36 = vpop.f32.mrb[6].mxu0 }
 0x41d   : > { %v4185_v38 = vpop.f32.mrb[7].mxu0  ;;  %v3543_v36 = vld [vmem:[%s3705_s11 + $0x8c] ss:$0 sps:$4 sm:$0x22]  }
 0x41e   : > { %v2009_v12 = vunpack.c.l.b16 %v3543_v36 }
 0x42a   : > { %v3283_v2 = vpop.f32.mrb[8].mxu0 }
 0x42b   : > { %v1871_v40 = vpop.f32.mrb[9].mxu0  ;;  %v1887_v11 = vmul.f32 0.35355338, %v3283_v2  ;;  %v2018_v2 = vsel %vm290_vm0, %v2017_v29, %v2016_v28  ;;  %v2044_v28 = vrot.slane %v2008_v63, 2  ;;  %v2045_v29 = vrot.slane %v2009_v12, 1 }
 0x42c   : > { %v1885_v41 = vmul.f32 0.35355338, %v1871_v40  ;;  %v3284_v43 = vpop.f32.mrb[10].mxu0  ;;  %v2024_v40 = vrot.slane %v1997_v16, 5 }
 0x42d   : > { %v1874_v5 = vpop.f32.mrb[11].mxu0  ;;  %v4199_v48 = vsel %vm120_vm8, %v1887_v11, -1e+30  ;;  %v2026_v11 = vrot.slane %v1998_v23, 4  ;;  %v2014_v23 = vunpack.c.l.b16 %v3548_v6 }
 0x42e   : > { %v1886_v44 = vmul.f32 0.35355338, %v1874_v5  ;;  %v4189_v45 = vsel %vm120_vm8, %v1885_v41, -1e+30  ;;  %v1897_v50 = vsel %vm547_vm9, %v4199_v48, -inf  ;;  %v2028_v41 = vrot.slane %v1999_v26, 3 }
 0x42f   : > { %v1891_v46 = vsel %vm547_vm9, %v4189_v45, -inf  ;;  %v3544_v43 = vld [vmem:[%s3705_s11 + $0x94] ss:$0 sps:$4 sm:$0x22]   ;;  %v2019_v5 = vsel %vm293_vm1, %v1994_v22, %v2018_v2  ;;  %v2013_v22 = vunpack.c.l.b16 %v3547_v61  ;;  %v2046_v2 = vsel %vm290_vm0, %v2045_v29, %v2044_v28 }
 0x430   : > { %1892 = vmax.xlane.f32.xlu0 %v1891_v46  ;;  %v4195_v47 = vsel %vm120_vm8, %v1886_v44, -1e+30  ;;  %v2030_v44 = vrot.slane %v2000_v8, 2  ;;  %v2031_v46 = vrot.slane %v2001_v18, 1  ;;  %v2021_v51 = vsel %vm296_vm2, %v2020_v31, %v2019_v5 }
 0x431   : > { %v1894_v49 = vsel %vm547_vm9, %v4195_v47, -inf  ;;  %v2023_v55 = vsel %vm299_vm3, %v2022_v33, %v2021_v51  ;;  %v2010_v1 = vunpack.c.l.b16 %v3544_v43  ;;  %v2012_v8 = vunpack.c.l.b16 %v3546_v42  ;;  %v3550_v18 = vld [vmem:[%s3705_s11] ss:$0 sps:$4 sm:$0x88]  }
 0x432   : > { %1895 = vmax.xlane.f32.xlu1 %v1894_v49  ;;  %v2034_v49 = vrot.slane %v2003_v19, 7  ;;  %v2032_v56 = vsel %vm290_vm0, %v2031_v46, %v2030_v44  ;;  %v2025_v7 = vsel %vm302_vm4, %v2024_v40, %v2023_v55  ;;  %v3551_v19 = vld [vmem:[%s3705_s11 + $0x8] ss:$0 sps:$4 sm:$0x88]   ;;  %v2052_v40 = vrot.slane %v2013_v22, 5 }
 0x433   : > { %v2033_v3 = vsel %vm293_vm1, %v2002_v24, %v2032_v56  ;;  %v2027_v14 = vsel %vm305_vm5, %v2026_v11, %v2025_v7  ;;  %v3552_v24 = vld [vmem:[%s3705_s11 + $0x10] ss:$0 sps:$4 sm:$0x88]   ;;  %v2050_v31 = vrot.slane %v2012_v8, 6  ;;  %v2054_v11 = vrot.slane %v2014_v23, 4 }
 0x434   : > { %1898 = vmax.xlane.f32.xlu0 %v1897_v50  ;;  %v3545_v50 = vld [vmem:[%s3705_s11 + $0x9c] ss:$0 sps:$4 sm:$0x22]   ;;  %v2035_v15 = vsel %vm296_vm2, %v2034_v49, %v2033_v3  ;;  %v2029_v20 = vsel %vm308_vm6, %v2028_v41, %v2027_v14  ;;  %v3555_v33 = vld [vmem:[%s3705_s11 + $0x28] ss:$0 sps:$4 sm:$0x88]   ;;  %v2047_v5 = vsel %vm293_vm1, %v2010_v1, %v2046_v2  ;;  %v2431_v49 = vunpack.c.l.b16 %v3550_v18 }
 0x435   : > { %v2011_v16 = vunpack.c.l.b16 %v3545_v50  ;;  %v2037_v21 = vsel %vm299_vm3, %v2036_v52, %v2035_v15  ;;  %v3556_v41 = vld [vmem:[%s3705_s11 + $0x30] ss:$0 sps:$4 sm:$0x88]   ;;  %v3558_v44 = vld [vmem:[%s3705_s11 + $0x40] ss:$0 sps:$4 sm:$0x88]   ;;  %v2435_v61 = vunpack.c.l.b16 %v3554_v10  ;;  %v2436_v63 = vunpack.c.l.b16 %v3555_v33 }
 0x436   : > { %v2039_v26 = vsel %vm302_vm4, %v2038_v53, %v2037_v21  ;;  %v3559_v46 = vld [vmem:[%s3705_s11 + $0x48] ss:$0 sps:$4 sm:$0x88]   ;;  %v2056_v51 = vrot.slane %v2015_v27, 3  ;;  %v2432_v53 = vunpack.c.l.b16 %v3551_v19  ;;  %v2437_v9 = vunpack.c.l.b16 %v3556_v41 }
 0x437   : > { %v2041_v30 = vsel %vm305_vm5, %v2040_v54, %v2039_v26  ;;  %v2048_v0 = vrot.slane %v2011_v16, 7  ;;  %v3560_v52 = vld [vmem:[%s3705_s11 + $0x50] ss:$0 sps:$4 sm:$0x88]   ;;  %v2433_v54 = vunpack.c.l.b16 %v3552_v24  ;;  %v2439_v12 = vunpack.c.l.b16 %v3558_v44 }
 0x438   : > { %v2043_v36 = vsel %vm308_vm6, %v2042_v57, %v2041_v30  ;;  %v3561_v55 = vld [vmem:[%s3705_s11 + $0x58] ss:$0 sps:$4 sm:$0x88]   ;;  %v3562_v56 = vld [vmem:[%s3705_s11 + $0x60] ss:$0 sps:$4 sm:$0x88]   ;;  %v2434_v57 = vunpack.c.l.b16 %v3553_v25  ;;  %v2440_v1 = vunpack.c.l.b16 %v3559_v46  ;;  %v2441_v15 = vunpack.c.l.b16 %v3560_v52 }
 0x439   : > { %v2058_v43 = vpack.c.b16 %v2043_v36, %v2029_v20  ;;  %v2049_v50 = vsel %vm296_vm2, %v2048_v0, %v2047_v5  ;;  %v3563_v3 = vld [vmem:[%s3705_s11 + $0x68] ss:$0 sps:$4 sm:$0x88]   ;;  %v3564_v6 = vld [vmem:[%s3705_s11 + $0x70] ss:$0 sps:$4 sm:$0x88]   ;;  %v2442_v16 = vunpack.c.l.b16 %v3561_v55  ;;  %v2443_v19 = vunpack.c.l.b16 %v3562_v56 }
 0x43a   : > { %v2051_v42 = vsel %vm299_vm3, %v2050_v31, %v2049_v50  ;;  %v2455_v8 = vrot.slane %v2431_v49, 7  ;;  %v2444_v20 = vunpack.c.l.b16 %v3563_v3  ;;  %v2456_v21 = vrot.slane %v2432_v53, 6  ;;  %v3557_v23 = vld [vmem:[%s3705_s11 + $0x38] ss:$0 sps:$4 sm:$0x88]  }
 0x43b   : > { %3285 = vmatprep.subr.bf16.mxu1 %v2058_v43  ;;  %v2053_v7 = vsel %vm302_vm4, %v2052_v40, %v2051_v42  ;;  %v2445_v24 = vunpack.c.l.b16 %v3564_v6  ;;  %v2458_v25 = vrot.slane %v2433_v54, 5  ;;  %v2460_v26 = vrot.slane %v2434_v57, 4  ;;  %v3565_v0 = vld [vmem:[%s3705_s11 + $0x78] ss:$0 sps:$4 sm:$0x88]  }
 0x43c   : > { %3286 = vmatpush3.bf16.msra.mxu1 %v2058_v43  ;;  %v2055_v14 = vsel %vm305_vm5, %v2054_v11, %v2053_v7  ;;  %v2457_v27 = vsel %vm290_vm0, %v2456_v21, %v2455_v8  ;;  %v2462_v28 = vrot.slane %v2435_v61, 3  ;;  %v2464_v29 = vrot.slane %v2436_v63, 2  ;;  %v3566_v7 = vld [vmem:[%s3705_s11 + $0x80] ss:$0 sps:$4 sm:$0x88]  }
 0x43d   : > { %v2057_v18 = vsel %vm308_vm6, %v2056_v51, %v2055_v14  ;;  %v2466_v10 = vrot.slane %v2437_v9, 1  ;;  %v2459_v31 = vsel %vm293_vm1, %v2458_v25, %v2457_v27  ;;  %v2469_v33 = vrot.slane %v2439_v12, 7  ;;  %v3567_v3 = vld [vmem:[%s3705_s11 + $0x88] ss:$0 sps:$4 sm:$0x88]  }
 0x43e   : > { %v2059_v22 = vpack.c.b16 %v2057_v18, %v2057_v18  ;;  %v2470_v36 = vrot.slane %v2440_v1, 6  ;;  %v2461_v2 = vsel %vm296_vm2, %v2460_v26, %v2459_v31  ;;  %v2472_v40 = vrot.slane %v2441_v15, 5  ;;  %v3574_v6 = vld [vmem:[%s3705_s11] ss:$0 sps:$4 sm:$0x22]  }
 0x43f   : > { %v2474_v11 = vrot.slane %v2442_v16, 4  ;;  %v2476_v41 = vrot.slane %v2443_v19, 3  ;;  %v2438_v43 = vunpack.c.l.b16 %v3557_v23  ;;  %v2463_v5 = vsel %vm299_vm3, %v2462_v28, %v2461_v2  ;;  %v3575_v9 = vld [vmem:[%s3705_s11 + $0x8] ss:$0 sps:$4 sm:$0x22]  }
 0x440   : > { %3317 = vmatprep.subr.msk.bf16.mxu1 %vm724_vm10, %v2059_v22  ;;  %v2068_v30 = vsel %vm724_vm10, %v2059_v22, 0  ;;  %v2471_v44 = vsel %vm290_vm0, %v2470_v36, %v2469_v33  ;;  %v2478_v46 = vrot.slane %v2444_v20, 2  ;;  %v2465_v49 = vsel %vm302_vm4, %v2464_v29, %v2463_v5  ;;  %v3582_v12 = vld [vmem:[%s3705_s11 + $0x40] ss:$0 sps:$4 sm:$0x22]  }
 0x441   : > { %3288 = vmatpush3.bf16.msra.mxu1 %v2068_v30  ;;  %v2473_v50 = vsel %vm293_vm1, %v2472_v40, %v2471_v44  ;;  %v2480_v51 = vrot.slane %v2445_v24, 1  ;;  %v2446_v52 = vunpack.c.l.b16 %v3565_v0  ;;  %v2467_v53 = vsel %vm305_vm5, %v2466_v10, %v2465_v49  ;;  %v3583_v1 = vld [vmem:[%s3705_s11 + $0x48] ss:$0 sps:$4 sm:$0x22]  }
 0x442   : > { %v2475_v54 = vsel %vm296_vm2, %v2474_v11, %v2473_v50  ;;  %v2468_v55 = vsel %vm308_vm6, %v2438_v43, %v2467_v53  ;;  %v3568_v14 = vld [vmem:[%s3705_s11 + $0x90] ss:$0 sps:$4 sm:$0x88]   ;;  %v3569_v15 = vld [vmem:[%s3705_s11 + $0x98] ss:$0 sps:$4 sm:$0x88]   ;;  %v2447_v16 = vunpack.c.l.b16 %v3566_v7  ;;  %v2448_v8 = vunpack.c.l.b16 %v3567_v3 }
 0x443   : > { %v2477_v42 = vsel %vm299_vm3, %v2476_v41, %v2475_v54  ;;  %v3576_v18 = vld [vmem:[%s3705_s11 + $0x10] ss:$0 sps:$4 sm:$0x22]   ;;  %v2291_v20 = vunpack.c.l.b16 %v3574_v6  ;;  %v2292_v21 = vunpack.c.l.b16 %v3575_v9  ;;  %v2299_v22 = vunpack.c.l.b16 %v3582_v12  ;;  %v3570_v24 = vld [vmem:[%s3705_s11 + $0xa0] ss:$0 sps:$4 sm:$0x88]  }
 0x444   : > { %v2479_v56 = vsel %vm302_vm4, %v2478_v46, %v2477_v42  ;;  %v3584_v19 = vld [vmem:[%s3705_s11 + $0x50] ss:$0 sps:$4 sm:$0x22]   ;;  %v2300_v23 = vunpack.c.l.b16 %v3583_v1  ;;  %v2449_v25 = vunpack.c.l.b16 %v3568_v14  ;;  %v2483_v26 = vrot.slane %v2447_v16, 7 }
 0x445   : > { %v2481_v57 = vsel %vm305_vm5, %v2480_v51, %v2479_v56  ;;  %v2484_v27 = vrot.slane %v2448_v8, 6  ;;  %v3571_v28 = vld [vmem:[%s3705_s11 + $0xa8] ss:$0 sps:$4 sm:$0x88]   ;;  %v2450_v29 = vunpack.c.l.b16 %v3569_v15  ;;  %v2293_v30 = vunpack.c.l.b16 %v3576_v18 }
 0x446   : > { %v2482_v61 = vsel %vm308_vm6, %v2446_v52, %v2481_v57  ;;  %v3578_v10 = vld [vmem:[%s3705_s11 + $0x20] ss:$0 sps:$4 sm:$0x22]   ;;  %v2301_v0 = vunpack.c.l.b16 %v3584_v19  ;;  %v2315_v31 = vrot.slane %v2291_v20, 3  ;;  %v2316_v33 = vrot.slane %v2292_v21, 2 }
 0x447   : > { %v4282_v63 = vpack.c.b16 %v2482_v61, %v2468_v55  ;;  %v2329_v36 = vrot.slane %v2299_v22, 3  ;;  %v2330_v2 = vrot.slane %v2300_v23, 2  ;;  %v2451_v40 = vunpack.c.l.b16 %v3570_v24  ;;  %v3586_v41 = vld [vmem:[%s3705_s11 + $0x60] ss:$0 sps:$4 sm:$0x22]  }
 0x448   : > { %v2486_v11 = vrot.slane %v2449_v25, 5  ;;  %v2485_v43 = vsel %vm290_vm0, %v2484_v27, %v2483_v26  ;;  %v3577_v5 = vld [vmem:[%s3705_s11 + $0x18] ss:$0 sps:$4 sm:$0x22]   ;;  %v2488_v49 = vrot.slane %v2450_v29, 4  ;;  %v2318_v50 = vrot.slane %v2293_v30, 1 }
 0x449   : > { %3318 = vmatprep.subr.msk.bf16.mxu1 %vm480_vm7, %v4282_v63  ;;  %v3585_v44 = vld [vmem:[%s3705_s11 + $0x58] ss:$0 sps:$4 sm:$0x22]   ;;  %v3572_v46 = vld [vmem:[%s3705_s11 + $0xb0] ss:$0 sps:$4 sm:$0x88]   ;;  %v2452_v52 = vunpack.c.l.b16 %v3571_v28  ;;  %v2317_v42 = vsel %vm290_vm0, %v2316_v33, %v2315_v31  ;;  %v2331_v55 = vsel %vm290_vm0, %v2330_v2, %v2329_v36  ;;  %v2295_v61 = vunpack.c.l.b16 %v3578_v10 }
 0x44a   : > { %v2332_v51 = vrot.slane %v2301_v0, 1  ;;  %v3579_v53 = vld [vmem:[%s3705_s11 + $0x28] ss:$0 sps:$4 sm:$0x22]   ;;  %v2487_v56 = vsel %vm293_vm1, %v2486_v11, %v2485_v43  ;;  %v2490_v57 = vrot.slane %v2451_v40, 3  ;;  %v2303_v7 = vunpack.c.l.b16 %v3586_v41 }
 0x44b   : > { %v3587_v54 = vld [vmem:[%s3705_s11 + $0x68] ss:$0 sps:$4 sm:$0x22]   ;;  %v3580_v6 = vld [vmem:[%s3705_s11 + $0x30] ss:$0 sps:$4 sm:$0x22]   ;;  %v2294_v12 = vunpack.c.l.b16 %v3577_v5  ;;  %v2302_v1 = vunpack.c.l.b16 %v3585_v44  ;;  %v2453_v15 = vunpack.c.l.b16 %v3572_v46  ;;  %v2319_v16 = vsel %vm293_vm1, %v2318_v50, %v2317_v42 }
 0x44c   : > { %v3588_v9 = vld [vmem:[%s3705_s11 + $0x70] ss:$0 sps:$4 sm:$0x22]   ;;  %v2333_v8 = vsel %vm293_vm1, %v2332_v51, %v2331_v55  ;;  %v3590_v18 = vld [vmem:[%s3705_s11 + $0x80] ss:$0 sps:$4 sm:$0x22]   ;;  %v2489_v21 = vsel %vm296_vm2, %v2488_v49, %v2487_v56  ;;  %v2296_v24 = vunpack.c.l.b16 %v3579_v53  ;;  %v2304_v25 = vunpack.c.l.b16 %v3587_v54 }
 0x44d   : > { %v3591_v19 = vld [vmem:[%s3705_s11 + $0x88] ss:$0 sps:$4 sm:$0x22]   ;;  %v2492_v22 = vrot.slane %v2452_v52, 2  ;;  %v2335_v28 = vrot.slane %v2303_v7, 7  ;;  %v2297_v30 = vunpack.c.l.b16 %v3580_v6  ;;  %v2305_v0 = vunpack.c.l.b16 %v3588_v9 }
 0x44e   : > { %v3581_v23 = vld [vmem:[%s3705_s11 + $0x38] ss:$0 sps:$4 sm:$0x22]   ;;  %v2320_v31 = vsel %vm296_vm2, %v2294_v12, %v2319_v16  ;;  %v2334_v33 = vsel %vm296_vm2, %v2302_v1, %v2333_v8  ;;  %v3592_v36 = vld [vmem:[%s3705_s11 + $0x90] ss:$0 sps:$4 sm:$0x22]   ;;  %v2307_v11 = vunpack.c.l.b16 %v3590_v18  ;;  %v2308_v41 = vunpack.c.l.b16 %v3591_v19 }
 0x44f   : > { %v3589_v10 = vld [vmem:[%s3705_s11 + $0x78] ss:$0 sps:$4 sm:$0x22]   ;;  %v2323_v43 = vrot.slane %v2296_v24, 6  ;;  %v2337_v5 = vrot.slane %v2304_v25, 6  ;;  %v2336_v49 = vsel %vm299_vm3, %v2335_v28, %v2334_v33  ;;  %v2298_v50 = vunpack.c.l.b16 %v3581_v23 }
 0x450   : > { %v2306_v51 = vunpack.c.l.b16 %v3589_v10  ;;  %v2325_v52 = vrot.slane %v2297_v30, 5  ;;  %v3573_v53 = vld [vmem:[%s3705_s11 + $0xb8] ss:$0 sps:$4 sm:$0x88]   ;;  %v2339_v54 = vrot.slane %v2305_v0, 5  ;;  %v2343_v42 = vrot.slane %v2307_v11, 3 }
 0x451   : > { %v2344_v55 = vrot.slane %v2308_v41, 2  ;;  %v2494_v56 = vrot.slane %v2453_v15, 1  ;;  %v3594_v7 = vld [vmem:[%s3705_s11 + $0xa0] ss:$0 sps:$4 sm:$0x22]   ;;  %v2327_v9 = vrot.slane %v2298_v50, 4 }
 0x452   : > { %v3593_v6 = vld [vmem:[%s3705_s11 + $0x98] ss:$0 sps:$4 sm:$0x22]   ;;  %v2341_v12 = vrot.slane %v2306_v51, 4 }
 0x453   : > { %v3595_v18 = vld [vmem:[%s3705_s11 + $0xa8] ss:$0 sps:$4 sm:$0x22]   ;;  %v2345_v15 = vsel %vm290_vm0, %v2344_v55, %v2343_v42  ;;  %v3596_v25 = vld [vmem:[%s3705_s11 + $0xb0] ss:$0 sps:$4 sm:$0x22]  }
 0x454   : > { %v2312_v28 = vunpack.c.l.b16 %v3595_v18  ;;  %v2313_v11 = vunpack.c.l.b16 %v3596_v25  ;;  %v1241_v18 = vsel %vm547_vm9, %v4163_v17, 0.0  ;;  %v3607_v17 = vld [vmem:[%s3705_s11 + $0x4c] ss:$0 sps:$4 sm:$0x22]  }
 0x455   : > { %v3602_v25 = vld [vmem:[%s3705_s11 + $0x24] ss:$0 sps:$4 sm:$0x22]  }
 0x456   : > { %v2351_v41 = vrot.slane %v2312_v28, 6  ;;  %v2667_v28 = vunpack.c.l.b16 %v3599_v13 }
 0x4bd   : > { %v1893_v3 = vpop.xlane.xlu0 %1892 }
 0x4be   : > { %v1900_v14 = vsub.f32 %v4189_v45, %v1893_v3  ;;  %v2321_v45 = vrot.slane %v2295_v61, 7  ;;  %v2338_v61 = vsel %vm302_vm4, %v2337_v5, %v2336_v49  ;;  %v2353_v5 = vrot.slane %v2313_v11, 5 }
 0x4bf   : > { %v1896_v20 = vpop.xlane.xlu1 %1895  ;;  %v2340_v8 = vsel %vm305_vm5, %v2339_v54, %v2338_v61 }
 0x4c0   : > { %v1903_v26 = vmul.f32 1.442695, %v1900_v14  ;;  %v1901_v27 = vsub.f32 %v4195_v47, %v1896_v20  ;;  %v2491_v47 = vsel %vm299_vm3, %v2490_v57, %v2489_v21  ;;  %v2322_v46 = vsel %vm299_vm3, %v2321_v45, %v2320_v31  ;;  %v3597_v31 = vld [vmem:[%s3705_s11 + $0xb8] ss:$0 sps:$4 sm:$0x22]  }
 0x4c1   : > { %v1899_v29 = vpop.xlane.xlu0 %1898  ;;  %v2324_v57 = vsel %vm302_vm4, %v2323_v43, %v2322_v46  ;;  %v2493_v3 = vsel %vm302_vm4, %v2492_v22, %v2491_v47  ;;  %v2454_v14 = vunpack.c.l.b16 %v3573_v53  ;;  %v2311_v20 = vunpack.c.l.b16 %v3594_v7 }
 0x4c2   : > { %v1905_v2 = vmul.f32 1.442695, %v1901_v27  ;;  %v1902_v40 = vsub.f32 %v4199_v48, %v1899_v29  ;;  %3634 = vpow2.f32 %v1903_v26  ;;  %v2309_v48 = vunpack.c.l.b16 %v3592_v36 }
 0x4c3   : > { %v2326_v16 = vsel %vm305_vm5, %v2325_v52, %v2324_v57  ;;  %v2495_v19 = vsel %vm305_vm5, %v2494_v56, %v2493_v3  ;;  %v2310_v21 = vunpack.c.l.b16 %v3593_v6  ;;  %v2342_v24 = vsel %vm308_vm6, %v2341_v12, %v2340_v8 }
 0x4c4   : > { %3636 = vpow2.f32 %v1905_v2  ;;  %v1907_v44 = vmul.f32 1.442695, %v1902_v40  ;;  %v2346_v1 = vrot.slane %v2309_v48, 1  ;;  %v2328_v22 = vsel %vm308_vm6, %v2327_v9, %v2326_v16 }
 0x4c5   : > { %v2496_v45 = vsel %vm308_vm6, %v2454_v14, %v2495_v19  ;;  %v2349_v10 = vrot.slane %v2311_v20, 7  ;;  %v2357_v0 = vpack.c.b16 %v2342_v24, %v2328_v22  ;;  %v2506_v2 = vsel %vm480_vm7, %v4282_v63, 0  ;;  %v3598_v20 = vld [vmem:[%s3705_s11 + $0x4] ss:$0 sps:$4 sm:$0x22]  }
 0x4c6   : > { %3638 = vpow2.f32 %v1907_v44  ;;  %v2347_v26 = vsel %vm293_vm1, %v2346_v1, %v2345_v15  ;;  %v2498_v40 = vpack.c.b16 %v2496_v45, %v2496_v45  ;;  %v2314_v43 = vunpack.c.l.b16 %v3597_v31  ;;  %v3606_v22 = vld [vmem:[%s3705_s11 + $0x44] ss:$0 sps:$4 sm:$0x22]   ;;  %v3608_v24 = vld [vmem:[%s3705_s11 + $0x54] ss:$0 sps:$4 sm:$0x22]  }
 0x4c7   : > { %v2348_v33 = vsel %vm296_vm2, %v2310_v21, %v2347_v26  ;;  %v1235_v8 = vsel %vm547_vm9, %v4152_v4, 0.0  ;;  %v3600_v21 = vld [vmem:[%s3705_s11 + $0x14] ss:$0 sps:$4 sm:$0x22]   ;;  %v2666_v45 = vunpack.c.l.b16 %v3598_v20  ;;  %v2676_v11 = vunpack.c.l.b16 %v3608_v24 }
 0x4c8   : > { %v2350_v47 = vsel %vm299_vm3, %v2349_v10, %v2348_v33  ;;  %v2355_v46 = vrot.slane %v2314_v43, 4  ;;  %v2509_v49 = vsel %vm480_vm7, %v2498_v40, 0  ;;  %v3601_v26 = vld [vmem:[%s3705_s11 + $0x1c] ss:$0 sps:$4 sm:$0x22]  }
 0x4c9   : > { %v2352_v44 = vsel %vm302_vm4, %v2351_v41, %v2350_v47  ;;  %v3609_v10 = vld [vmem:[%s3705_s11 + $0x5c] ss:$0 sps:$4 sm:$0x22]   ;;  %v3611_v33 = vld [vmem:[%s3705_s11 + $0x6c] ss:$0 sps:$4 sm:$0x22]   ;;  %v2669_v43 = vunpack.c.l.b16 %v3601_v26 }
 0x4ca   : > { %v2354_v63 = vsel %vm305_vm5, %v2353_v5, %v2352_v44  ;;  %v3605_v31 = vld [vmem:[%s3705_s11 + $0x3c] ss:$0 sps:$4 sm:$0x22]   ;;  %v3612_v41 = vld [vmem:[%s3705_s11 + $0x74] ss:$0 sps:$4 sm:$0x22]   ;;  %v2677_v44 = vunpack.c.l.b16 %v3609_v10 }
 0x4cb   : > { %v2356_v50 = vsel %vm308_vm6, %v2355_v46, %v2354_v63  ;;  %v3613_v47 = vld [vmem:[%s3705_s11 + $0x7c] ss:$0 sps:$4 sm:$0x22]   ;;  %v2679_v63 = vunpack.c.l.b16 %v3611_v33 }
 0x4cc   : > { %v3635_v23 = vpop.eup %3634  ;;  %v2358_v51 = vpack.c.b16 %v2356_v50, %v2356_v50  ;;  %v2690_v50 = vrot.slane %v2666_v45, 3 }
 0x4cd   : > { %v1909_v15 = vsel %vm547_vm9, %v3635_v23, 0.0  ;;  %v2712_v13 = vrot.slane %v2679_v63, 6 }
 0x4ce   : > { %v3637_v27 = vpop.eup %3636 }
 0x4cf   : > { %v1918_v29 = vpack.c.bf16 %v3637_v27, %v3635_v23  ;;  %v1912_v19 = vsel %vm547_vm9, %v3637_v27, 0.0  ;;  %v3610_v23 = vld [vmem:[%s3705_s11 + $0x64] ss:$0 sps:$4 sm:$0x22]  }
 0x4d0   : > { %v3639_v30 = vpop.eup %3638  ;;  %v3603_v27 = vld [vmem:[%s3705_s11 + $0x2c] ss:$0 sps:$4 sm:$0x22]   ;;  %v2678_v46 = vunpack.c.l.b16 %v3610_v23 }
 0x4d1   : > { %3289 = vmatprep.mubr.msk.bf16.mxu1 %vm547_vm9, %v1918_v29  ;;  %v1919_v36 = vpack.c.bf16 %v3639_v30, %v3639_v30  ;;  %v1915_v4 = vsel %vm547_vm9, %v3639_v30, 0.0  ;;  %v3604_v29 = vld [vmem:[%s3705_s11 + $0x34] ss:$0 sps:$4 sm:$0x22]   ;;  %v2668_v30 = vunpack.c.l.b16 %v3600_v21 }
 0x4d2   : > { %v2672_v5 = vunpack.c.l.b16 %v3604_v29  ;;  %v2710_v20 = vrot.slane %v2678_v46, 7  ;;  %v3619_v23 = vld [vmem:[%s3705_s11 + $0xac] ss:$0 sps:$4 sm:$0x22]  }
 0x4d3   : > { %3290 = vmatmul.mubr.msk.bf16.vlgmr.msra.gmra.mrb[8].mxu1 %vm547_vm9, %v1919_v36  ;;  %v2671_v36 = vunpack.c.l.b16 %v3603_v27  ;;  %v3621_v29 = vld [vmem:[%s3705_s11 + $0xbc] ss:$0 sps:$4 sm:$0x22]  }
 0x4d4   : > { %3294 = vmatpush3.bf16.xpose.msra.mxu1 %v2506_v2  ;;  %3297 = vmatprep.mubr.msk.bf16.mxu1 %vm480_vm7, %v2357_v0  ;;  %v2670_v0 = vunpack.c.l.b16 %v3602_v25  ;;  %v2674_v2 = vunpack.c.l.b16 %v3606_v22  ;;  %v3618_v22 = vld [vmem:[%s3705_s11 + $0xa4] ss:$0 sps:$4 sm:$0x22]  }
 0x4d5   : > { %3319 = vmatprep.subr.msk.bf16.mxu1 %vm480_vm7, %v2498_v40  ;;  %v2675_v40 = vunpack.c.l.b16 %v3607_v17 }
 0x4dc   : > { %3296 = vmatpush3.bf16.xpose.msra.mxu1 %v2509_v49  ;;  %v2673_v49 = vunpack.c.l.b16 %v3605_v31 }
 0x4e3   : > { %3298 = vmatmul.mubr.msk.bf16.vlgmr.msra.gmra.mrb[12].mxu1 %vm480_vm7, %v2358_v51  ;;  %v2691_v51 = vrot.slane %v2667_v28, 2  ;;  %v3620_v28 = vld [vmem:[%s3705_s11 + $0xb4] ss:$0 sps:$4 sm:$0x22]  }
 0x5a6   : > { %v4357_v52 = vpop.f32.mrb[8].mxu1 }
 0x5a7   : > { %v4359_v48 = vpop.f32.mrb[9].mxu1 }
 0x5a8   : > { %v3292_v53 = vpop.f32.mrb[10].mxu1 }
 0x5a9   : > { %v4361_v54 = vpop.f32.mrb[11].mxu1  ;;  %v3614_v53 = vld [vmem:[%s3705_s11 + $0x84] ss:$0 sps:$4 sm:$0x22]  }
 0x5aa   : > { %v2682_v26 = vunpack.c.l.b16 %v3614_v53 }
 0x5b6   : > { %v3299_v42 = vpop.f32.mrb[12].mxu1 }
 0x5b7   : > { %v2545_v55 = vpop.f32.mrb[13].mxu1  ;;  %v2561_v56 = vmul.f32 0.35355338, %v3299_v42  ;;  %v2680_v42 = vunpack.c.l.b16 %v3612_v41  ;;  %v2688_v41 = vunpack.c.l.b16 %v3620_v28  ;;  %v566_v28 = vsel %vm547_vm9, %v3969_v37, 0.0 }
 0x5b8   : > { %v2559_v57 = vmul.f32 0.35355338, %v2545_v55  ;;  %v3300_v61 = vpop.f32.mrb[14].mxu1  ;;  %v2681_v55 = vunpack.c.l.b16 %v3613_v47 }
 0x5b9   : > { %v2548_v7 = vpop.f32.mrb[15].mxu1  ;;  %v4375_v1 = vsel %vm120_vm8, %v2561_v56, -1e+30  ;;  %v2693_v56 = vrot.slane %v2668_v30, 1  ;;  %v2714_v21 = vrot.slane %v2680_v42, 5 }
 0x5ba   : > { %v2560_v3 = vmul.f32 0.35355338, %v2548_v7  ;;  %v4365_v6 = vsel %vm120_vm8, %v2559_v57, -1e+30  ;;  %v2571_v16 = vsel %vm547_vm9, %v4375_v1, -inf  ;;  %v2696_v57 = vrot.slane %v2670_v0, 7 }
 0x5bb   : > { %v2565_v9 = vsel %vm547_vm9, %v4365_v6, -inf  ;;  %v3615_v61 = vld [vmem:[%s3705_s11 + $0x8c] ss:$0 sps:$4 sm:$0x22]   ;;  %v2692_v7 = vsel %vm290_vm0, %v2691_v51, %v2690_v50  ;;  %v2716_v25 = vrot.slane %v2681_v55, 4 }
 0x5bc   : > { %2566 = vmax.xlane.f32.xlu1 %v2565_v9  ;;  %v4371_v12 = vsel %vm120_vm8, %v2560_v3, -1e+30  ;;  %v2698_v3 = vrot.slane %v2671_v36, 6  ;;  %v2700_v9 = vrot.slane %v2672_v5, 5  ;;  %v2683_v10 = vunpack.c.l.b16 %v3615_v61 }
 0x5bd   : > { %v2568_v14 = vsel %vm547_vm9, %v4371_v12, -inf  ;;  %v2686_v36 = vunpack.c.l.b16 %v3618_v22  ;;  %v2718_v5 = vrot.slane %v2682_v26, 3 }
 0x5be   : > { %2569 = vmax.xlane.f32.xlu0 %v2568_v14  ;;  %v2702_v14 = vrot.slane %v2673_v49, 4  ;;  %v2719_v46 = vrot.slane %v2683_v10, 2  ;;  %v569_v10 = vsel %vm547_vm9, %v3972_v39, 0.0 }
 0x5bf   : > { %v2724_v50 = vrot.slane %v2686_v36, 7 }
 0x5c0   : > { %2572 = vmax.xlane.f32.xlu1 %v2571_v16  ;;  %v3616_v16 = vld [vmem:[%s3705_s11 + $0x94] ss:$0 sps:$4 sm:$0x22]  }
 0x5c1   : > { %v2684_v30 = vunpack.c.l.b16 %v3616_v16 }
 0x5c2   : > { %1236 = vadd.xlane.f32.xlu0 %v1235_v8  ;;  %v2694_v8 = vsel %vm293_vm1, %v2693_v56, %v2692_v7  ;;  %v2728_v56 = vrot.slane %v2688_v41, 5 }
 0x5c3   : > { %v2721_v63 = vrot.slane %v2684_v30, 1  ;;  %v572_v30 = vsel %vm547_vm9, %v3963_v32, 0.0 }
 0x5c4   : > { %1239 = vadd.xlane.f32.xlu1 %v1238_v59  ;;  %v2704_v59 = vrot.slane %v2674_v2, 3 }
 0x5c6   : > { %1242 = vadd.xlane.f32.xlu0 %v1241_v18  ;;  %v2705_v18 = vrot.slane %v2675_v40, 2 }
 0x5c8   : > { %1910 = vadd.xlane.f32.xlu1 %v1909_v15  ;;  %v2707_v15 = vrot.slane %v2676_v11, 1  ;;  %v2706_v24 = vsel %vm290_vm0, %v2705_v18, %v2704_v59  ;;  %v2687_v11 = vunpack.c.l.b16 %v3619_v23 }
 0x5ca   : > { %1913 = vadd.xlane.f32.xlu0 %v1912_v19  ;;  %v3617_v19 = vld [vmem:[%s3705_s11 + $0x9c] ss:$0 sps:$4 sm:$0x22]   ;;  %v2708_v45 = vsel %vm293_vm1, %v2707_v15, %v2706_v24  ;;  %v2726_v53 = vrot.slane %v2687_v11, 6 }
 0x5cb   : > { %v2709_v31 = vsel %vm296_vm2, %v2677_v44, %v2708_v45  ;;  %v2685_v33 = vunpack.c.l.b16 %v3617_v19  ;;  %v2720_v44 = vsel %vm290_vm0, %v2719_v46, %v2718_v5 }
 0x5cc   : > { %1916 = vadd.xlane.f32.xlu1 %v1915_v4  ;;  %v2695_v4 = vsel %vm296_vm2, %v2669_v43, %v2694_v8  ;;  %v2711_v40 = vsel %vm299_vm3, %v2710_v20, %v2709_v31  ;;  %v2689_v43 = vunpack.c.l.b16 %v3621_v29  ;;  %v2722_v55 = vsel %vm293_vm1, %v2721_v63, %v2720_v44 }
 0x5cd   : > { %v2697_v17 = vsel %vm299_vm3, %v2696_v57, %v2695_v4  ;;  %v2713_v47 = vsel %vm302_vm4, %v2712_v13, %v2711_v40  ;;  %v2723_v57 = vsel %vm296_vm2, %v2685_v33, %v2722_v55 }
 0x5ce   : > { %v2699_v27 = vsel %vm302_vm4, %v2698_v3, %v2697_v17  ;;  %v2715_v49 = vsel %vm305_vm5, %v2714_v21, %v2713_v47  ;;  %v2730_v61 = vrot.slane %v2689_v43, 4  ;;  %v2725_v7 = vsel %vm299_vm3, %v2724_v50, %v2723_v57 }
 0x5cf   : > { %v2701_v0 = vsel %vm305_vm5, %v2700_v9, %v2699_v27  ;;  %v2717_v51 = vsel %vm308_vm6, %v2716_v25, %v2715_v49  ;;  %v2727_v3 = vsel %vm302_vm4, %v2726_v53, %v2725_v7 }
 0x5d0   : > { %v2703_v2 = vsel %vm308_vm6, %v2702_v14, %v2701_v0  ;;  %v2729_v9 = vsel %vm305_vm5, %v2728_v56, %v2727_v3 }
 0x5d1   : > { %v2732_v42 = vpack.c.b16 %v2717_v51, %v2703_v2  ;;  %v2731_v14 = vsel %vm308_vm6, %v2730_v61, %v2729_v9 }
 0x5d2   : > { %v2733_v16 = vpack.c.b16 %v2731_v14, %v2731_v14 }
 0x5d3   : > { %3301 = vmatprep.subr.bf16.mxu0 %v2732_v42 }
 0x5d4   : > { %3302 = vmatpush3.bf16.msra.mxu0 %v2732_v42  ;;  %v2742_v8 = vsel %vm724_vm10, %v2733_v16, 0 }
 0x5d5   : > { %3320 = vmatprep.subr.msk.bf16.mxu0 %vm724_vm10, %v2733_v16 }
 0x5d8   : > { %3304 = vmatpush3.bf16.msra.mxu0 %v2742_v8 }
 0x649   : > { %v2567_v59 = vpop.xlane.xlu1 %2566 }
 0x64a   : > { %v2574_v18 = vsub.f32 %v4365_v6, %v2567_v59 }
 0x64b   : > { %v2570_v15 = vpop.xlane.xlu0 %2569 }
 0x64c   : > { %v2577_v19 = vmul.f32 1.442695, %v2574_v18  ;;  %v2575_v4 = vsub.f32 %v4371_v12, %v2570_v15 }
 0x64d   : > { %v2573_v20 = vpop.xlane.xlu1 %2572 }
 0x64e   : > { %3640 = vpow2.f32 %v2577_v19  ;;  %v2579_v13 = vmul.f32 1.442695, %v2575_v4  ;;  %v2576_v21 = vsub.f32 %v4375_v1, %v2573_v20 }
 0x64f   : > { %v1237_v23 = vpop.xlane.xlu0 %1236 }
 0x650   : > { %3642 = vpow2.f32 %v2579_v13  ;;  %v2581_v22 = vmul.f32 1.442695, %v2576_v21 }
 0x651   : > { %v1240_v1 = vpop.xlane.xlu1 %1239 }
 0x652   : > { %3644 = vpow2.f32 %v2581_v22 }
 0x653   : > { %v1243_v29 = vpop.xlane.xlu0 %1242  ;;  %3646 = vrcp.f32 %v1240_v1 }
 0x654   : > { %3648 = vrcp.f32 %v1237_v23 }
 0x655   : > { %v1911_v0 = vpop.xlane.xlu1 %1910  ;;  %3650 = vrcp.f32 %v1243_v29 }
 0x657   : > { %v1914_v31 = vpop.xlane.xlu0 %1913 }
 0x658   : > { %v3641_v17 = vpop.eup %3640  ;;  %3652 = vrcp.f32 %v1914_v31 }
 0x659   : > { %v2583_v24 = vsel %vm547_vm9, %v3641_v17, 0.0  ;;  %3654 = vrcp.f32 %v1911_v0  ;;  %v1917_v33 = vpop.xlane.xlu1 %1916 }
 0x65a   : > { %v3643_v25 = vpop.eup %3642  ;;  %2584 = vadd.xlane.f32.xlu0 %v2583_v24  ;;  %3656 = vrcp.f32 %v1917_v33 }
 0x65b   : > { %v2586_v6 = vsel %vm547_vm9, %v3643_v25, 0.0  ;;  %v2592_v26 = vpack.c.bf16 %v3643_v25, %v3641_v17 }
 0x65c   : > { %v3645_v27 = vpop.eup %3644  ;;  %2587 = vadd.xlane.f32.xlu1 %v2586_v6 }
 0x65d   : > { %3305 = vmatprep.mubr.msk.bf16.mxu0 %vm547_vm9, %v2592_v26  ;;  %v2589_v12 = vsel %vm547_vm9, %v3645_v27, 0.0  ;;  %v2593_v45 = vpack.c.bf16 %v3645_v27, %v3645_v27  ;;  %v3647_v36 = vpop.eup %3646 }
 0x65e   : > { %2590 = vadd.xlane.f32.xlu0 %v2589_v12  ;;  %v3649_v37 = vpop.eup %3648  ;;  %v1447_v2 = vmul.f32 %v3647_v36, %v4185_v38 }
 0x65f   : > { %3306 = vmatmul.mubr.msk.bf16.vlgmr.msra.gmra.mrb[12].mxu0 %vm547_vm9, %v2593_v45  ;;  %v3651_v40 = vpop.eup %3650  ;;  %v1445_v39 = vmul.f32 %v3649_v37, %v4183_v35 }
 0x660   : > { %567 = vadd.xlane.f32.xlu1 %v566_v28  ;;  %v3205_v41 = vpack.c.bf16 %v1447_v2, %v1447_v2  ;;  %v1449_v32 = vmul.f32 %v3651_v40, %v4181_v34 }
 0x661   : > { %v3204_v43 = vpack.c.bf16 %v1445_v39, %v1445_v39 }
 0x662   : > { %570 = vadd.xlane.f32.xlu0 %v569_v10  ;;  %v3653_v11 = vpop.eup %3652  ;;  %v3206_v46 = vpack.c.bf16 %v1449_v32, %v1449_v32 }
 0x663   : > { %v3655_v47 = vpop.eup %3654  ;;  %v2121_v5 = vmul.f32 %v3653_v11, %v4361_v54 }
 0x664   : > { %573 = vadd.xlane.f32.xlu1 %v572_v30  ;;  %v2119_v49 = vmul.f32 %v3655_v47, %v4359_v48  ;;  %v3657_v63 = vpop.eup %3656 }
 0x665   : > { %v3208_v38 = vpack.c.bf16 %v2121_v5, %v2121_v5  ;;  %v2123_v35 = vmul.f32 %v3657_v63, %v4357_v52 }
 0x666   : > { %v3207_v50 = vpack.c.bf16 %v2119_v49, %v2119_v49 }
 0x667   : > { %v3209_v34 = vpack.c.bf16 %v2123_v35, %v2123_v35 }
 0x675   : > { %1462 = vrot.lane.b32.xlu1 %v3205_v41, %s3678_s12 }
 0x678   : > { %1460 = vrot.lane.b32.xlu0 %v3204_v43, %s3678_s12 }
 0x679   : > { %1464 = vrot.lane.b32.xlu1 %v3206_v46, %s3678_s12 }
 0x67c   : > { %2136 = vrot.lane.b32.xlu0 %v3208_v38, %s3679_s13 }
 0x67d   : > { %2134 = vrot.lane.b32.xlu1 %v3207_v50, %s3679_s13 }
 0x681   : > { %2138 = vrot.lane.b32.xlu1 %v3209_v34, %s3679_s13 }
 0x6e7   : > { %v2585_v51 = vpop.xlane.xlu0 %2584 }
 0x6e9   : > { %v2588_v44 = vpop.xlane.xlu1 %2587 }
 0x6eb   : > { %v2591_v53 = vpop.xlane.xlu0 %2590 }
 0x6ed   : > { %v568_v54 = vpop.xlane.xlu1 %567 }
 0x6ee   : > { %3658 = vrcp.f32 %v568_v54 }
 0x6ef   : > { %v571_v42 = vpop.xlane.xlu0 %570 }
 0x6f0   : > { %3660 = vrcp.f32 %v571_v42 }
 0x6f1   : > { %v574_v48 = vpop.xlane.xlu1 %573 }
 0x6f2   : > { %3662 = vrcp.f32 %v574_v48 }
 0x6f3   : > { %v1461_v7 = vpop.permute.xlu0 %1460  ;;  %3664 = vrcp.f32 %v2591_v53 }
 0x6f4   : > { %3666 = vrcp.f32 %v2585_v51 }
 0x6f5   : > { %v1463_v55 = vpop.permute.xlu1 %1462  ;;  %3668 = vrcp.f32 %v2588_v44 }
 0x6f8   : > { %v3659_v56 = vpop.eup %3658 }
 0x6f9   : > { %v777_v52 = vmul.f32 %v3659_v56, %v3994_v60  ;;  %v1465_v57 = vpop.permute.xlu1 %1464 }
 0x6fa   : > { %v3661_v61 = vpop.eup %3660 }
 0x6fb   : > { %v779_v3 = vmul.f32 %v3661_v61, %v3996_v62  ;;  %v3201_v9 = vpack.c.bf16 %v777_v52, %v777_v52  ;;  %v2137_v62 = vpop.permute.xlu0 %2136 }
 0x6fc   : > { %v3663_v60 = vpop.eup %3662 }
 0x6fd   : > { %v781_v14 = vmul.f32 %v3663_v60, %v3992_v58  ;;  %796 = vst.msk [vmem:[%s4462_s17] sm:$0xf] %vm795_vm11, %v3201_v9  ;;  %v3202_v16 = vpack.c.bf16 %v779_v3, %v779_v3  ;;  %v2135_v8 = vpop.permute.xlu1 %2134  ;;  %v3665_v58 = vpop.eup %3664 }
 0x6fe   : > { %1470 = vst.msk [vmem:[%s4462_s17] sm:$0xf] %vm1469_vm12, %v1461_v7  ;;  %v3667_v19 = vpop.eup %3666 }
 0x6ff   : > { %797 = vst.msk [vmem:[%s4462_s17 + $0x4] sm:$0xf] %vm795_vm11, %v3202_v16  ;;  %v3203_v59 = vpack.c.bf16 %v781_v14, %v781_v14  ;;  %v3669_v22 = vpop.eup %3668 }
 0x700   : > { %2144 = vst.msk [vmem:[%s4462_s17] sm:$0xf] %vm2143_vm13, %v2135_v8 }
 0x701   : > { %1471 = vst.msk [vmem:[%s4462_s17 + $0x4] sm:$0xf] %vm1469_vm12, %v1463_v55  ;;  %v2139_v18 = vpop.permute.xlu1 %2138 }
 0x702   : > { %2145 = vst.msk [vmem:[%s4462_s17 + $0x4] sm:$0xf] %vm2143_vm13, %v2137_v62 }
 0x703   : > { %798 = vst.msk [vmem:[%s4462_s17 + $0x8] sm:$0xf] %vm795_vm11, %v3203_v59 }
 0x704   : > { %1472 = vst.msk [vmem:[%s4462_s17 + $0x8] sm:$0xf] %vm1469_vm12, %v1465_v57 }
 0x705   : > { %2146 = vst.msk [vmem:[%s4462_s17 + $0x8] sm:$0xf] %vm2143_vm13, %v2139_v18 }
 0x732   : > { %v3307_v15 = vpop.f32.mrb[12].mxu0 }
 0x733   : > { %v2797_v4 = vmul.f32 %v3665_v58, %v3307_v15  ;;  %v2778_v20 = vpop.f32.mrb[13].mxu0 }
 0x734   : > { %v2793_v13 = vmul.f32 %v3667_v19, %v2778_v20  ;;  %v3308_v21 = vpop.f32.mrb[14].mxu0 }
 0x735   : > { %v2781_v17 = vpop.f32.mrb[15].mxu0  ;;  %v3212_v6 = vpack.c.bf16 %v2797_v4, %v2797_v4 }
 0x736   : > { %v3210_v24 = vpack.c.bf16 %v2793_v13, %v2793_v13  ;;  %v2795_v25 = vmul.f32 %v3669_v22, %v2781_v17 }
 0x738   : > { %v3211_v23 = vpack.c.bf16 %v2795_v25, %v2795_v25  ;;  %2808 = vrot.lane.b32.xlu0 %v3210_v24, %s3680_s18 }
 0x73a   : > { %2810 = vrot.lane.b32.xlu1 %v3211_v23, %s3680_s18 }
 0x73c   : > { %2812 = vrot.lane.b32.xlu0 %v3212_v6, %s3680_s18 }
 0x7aa   : > { %v2809_v26 = vpop.permute.xlu0 %2808 }
 0x7ab   : > { %2818 = vst.msk [vmem:[%s4462_s17] sm:$0xf] %vm2817_vm14, %v2809_v26 }
 0x7ac   : > { %v2811_v27 = vpop.permute.xlu1 %2810 }
 0x7ad   : > { %2819 = vst.msk [vmem:[%s4462_s17 + $0x4] sm:$0xf] %vm2817_vm14, %v2811_v27 }
 0x7ae   : > { %v2813_v12 = vpop.permute.xlu0 %2812 }
 0x7af   : > { %2820 = vst.msk [vmem:[%s4462_s17 + $0x8] sm:$0xf] %vm2817_vm14, %v2813_v12 }
 0x7b0 PF: > { %s11_s6 = sadd.s32 1, %s3676_s6  }
 0x7b1   : > { %p8_p4 = scmp.ge.s32.totalorder %s11_s6, 4  }
 0x7b3   :  { %10 = sbr.rel (!%p8_p4) target bundleno = 1 (0x1), region = 54 }

</bundles_post_ra>
